<compile_context>
chip_gen: v7x
topology: tpu7x:2x2x1
jax: 0.10.0
libtpu: 0.0.40
codegen_flags: <defaults>
</compile_context>

<pallas_src>
import functools
import math

import jax
import jax.numpy as jnp
from jax import lax
from jax.experimental import pallas as pl
from jax.experimental.pallas import tpu as pltpu


class KeyGen:
    def __init__(self, key):
        self.key = key

    def next(self):
        self.key, sub = jax.random.split(self.key)
        return sub


# --------------------------------------------------------------------- param init
def init_linear_params(kg, din, dout):
    s = 1.0 / math.sqrt(din)
    w = jax.random.uniform(kg.next(), (din, dout), jnp.float32, minval=-s, maxval=s)
    b = jax.random.uniform(kg.next(), (dout,), jnp.float32, minval=-s, maxval=s)
    return w, b


def init_decoder(kg, channel, h=4):
    d = channel
    dk = d // h
    scale = 1.0 / math.sqrt(dk)
    bf, f32 = jnp.bfloat16, jnp.float32

    # masked self-attention: q/k/v fused into one wide matmul, scale folded into q
    wq, bq = init_linear_params(kg, d, d)
    wk, bk = init_linear_params(kg, d, d)
    wv, bv = init_linear_params(kg, d, d)
    wo1, bo1 = init_linear_params(kg, d, d)
    wqkv = jnp.concatenate([wq * scale, wk, wv], axis=1)
    bqkv = jnp.concatenate([bq * scale, bk, bv])

    # cross-attention: k/v fused, scale folded into q, plus h->1 map compression
    cwq, cbq = init_linear_params(kg, d, d)
    cwk, cbk = init_linear_params(kg, d, d)
    cwv, cbv = init_linear_params(kg, d, d)
    cwo, cbo = init_linear_params(kg, d, d)
    wc, bc = init_linear_params(kg, h, 1)
    wkv = jnp.concatenate([cwk, cwv], axis=1)
    bkv = jnp.concatenate([cbk, cbv])

    # position-wise feed forward
    w1, b1 = init_linear_params(kg, d, 2 * d)
    w2, b2 = init_linear_params(kg, 2 * d, d)

    return {
        "h": h,
        "wqkv": wqkv.astype(bf), "bqkv": bqkv.reshape(1, -1).astype(f32),
        "wo1": wo1.astype(bf),   "bo1": bo1.reshape(1, -1).astype(f32),
        "g1": jnp.ones((1, d), f32), "be1": jnp.zeros((1, d), f32),
        "wq2": (cwq * scale).astype(bf), "bq2": (cbq * scale).reshape(1, -1).astype(f32),
        "wkv2": wkv.astype(bf),  "bkv2": bkv.reshape(1, -1).astype(f32),
        "wo2": cwo.astype(bf),   "bo2": cbo.reshape(1, -1).astype(f32),
        "cw": wc[:, 0].astype(f32), "cb": bc.astype(f32),
        "g2": jnp.ones((1, d), f32), "be2": jnp.zeros((1, d), f32),
        "w1": w1.astype(bf), "b1": b1.reshape(1, -1).astype(f32),
        "w2": w2.astype(bf), "b2": b2.reshape(1, -1).astype(f32),
        "g3": jnp.ones((1, d), f32), "be3": jnp.zeros((1, d), f32),
    }


_PARAM_ORDER = ["wqkv", "bqkv", "wo1", "bo1", "g1", "be1",
                "wq2", "bq2", "wkv2", "bkv2", "wo2", "bo2",
                "cw", "cb", "g2", "be2",
                "w1", "b1", "w2", "b2", "g3", "be3"]


# --------------------------------------------------------------- fused decoder kernel
def _decoder_kernel(
        text_ref, kv_ref,
        wqkv_ref, bqkv_ref, wo1_ref, bo1_ref, g1_ref, be1_ref,
        wq2_ref, bq2_ref, wkv2_ref, bkv2_ref, wo2_ref, bo2_ref,
        cw_ref, cb_ref, g2_ref, be2_ref,
        w1_ref, b1_ref, w2_ref, b2_ref, g3_ref, be3_ref,
        out_ref, map_ref, *, h, eps):
    bf16 = jnp.bfloat16
    L = text_ref.shape[1]
    D = text_ref.shape[2]
    dk = D // h

    def linear(a_f32, w_ref, b_ref):
        # bf16 MXU inputs, f32 accumulation, fused bias.
        return jnp.dot(a_f32.astype(bf16), w_ref[...],
                       preferred_element_type=jnp.float32) + b_ref[...]

    def layer_norm(x, g_ref, b_ref):
        # torch.std(): unbiased (D-1), eps added to std.
        mean = jnp.mean(x, axis=-1, keepdims=True)
        xc = x - mean
        var = jnp.sum(xc * xc, axis=-1, keepdims=True) * (1.0 / (D - 1.0))
        return g_ref[...] * (xc / (jnp.sqrt(var) + eps)) + b_ref[...]

    def mha_block(q, k, v, wo_ref, bo_ref, causal, compress):
        """q:(L,D), k/v:(Lk,D). Per-head attention with the output projection
        accumulated per head (avoids concat / relayout); optional causal mask
        and fused nn.Linear(h, 1) attention-map compression."""
        out = None
        comp = None
        for hi in range(h):
            lo, hi_ = hi * dk, (hi + 1) * dk
            qh = q[:, lo:hi_].astype(bf16)
            kh = k[:, lo:hi_].astype(bf16)
            vh = v[:, lo:hi_].astype(bf16)
            # scores (q already carries the 1/sqrt(dk) scale, folded into Wq)
            s = lax.dot_general(qh, kh, (((1,), (1,)), ((), ())),
                                preferred_element_type=jnp.float32)
            if causal:
                Lq, Lk = s.shape
                row = lax.broadcasted_iota(jnp.int32, (Lq, Lk), 0)
                col = lax.broadcasted_iota(jnp.int32, (Lq, Lk), 1)
                s = jnp.where(col <= row, s, -1e30)     # finite fill: no NaN risk
            s = s - jnp.max(s, axis=-1, keepdims=True)
            e = jnp.exp(s)
            p = e / jnp.sum(e, axis=-1, keepdims=True)  # f32 softmax
            if compress:
                term = p * cw_ref[hi]
                comp = term if comp is None else comp + term
            ctx_h = jnp.dot(p.astype(bf16), vh, preferred_element_type=jnp.float32)
            proj = jnp.dot(ctx_h.astype(bf16), wo_ref[lo:hi_, :],
                           preferred_element_type=jnp.float32)
            out = proj if out is None else out + proj
        return out + bo_ref[...], comp

    x = text_ref[0]                                              # (L, D) f32

    # ---- sublayer 1: masked multi-head self-attention + add & LayerNorm ----
    qkv = linear(x, wqkv_ref, bqkv_ref)                          # (L, 3D)
    sa_out, _ = mha_block(qkv[:, :D], qkv[:, D:2 * D], qkv[:, 2 * D:],
                          wo1_ref, bo1_ref, causal=True, compress=False)
    res1 = layer_norm(x + sa_out, g1_ref, be1_ref)

    # ---- sublayer 2: cross-attention over conv features + compressed map ----
    kvin = kv_ref[0]                                             # (Lk, D) f32
    q = linear(res1, wq2_ref, bq2_ref)                           # (L, D)
    kvp = linear(kvin, wkv2_ref, bkv2_ref)                       # (Lk, 2D)
    ca_out, comp = mha_block(q, kvp[:, :D], kvp[:, D:],
                             wo2_ref, bo2_ref, causal=False, compress=True)
    map_ref[0, 0] = comp + cb_ref[0]                             # (L, Lk)
    res2 = layer_norm(res1 + ca_out, g2_ref, be2_ref)

    # ---- sublayer 3: position-wise feed forward + add & LayerNorm ----
    hid = jnp.maximum(linear(res2, w1_ref, b1_ref), 0.0)         # (L, 2D), ReLU fused
    ff = linear(hid, w2_ref, b2_ref)
    out_ref[0] = layer_norm(res2 + ff, g3_ref, be3_ref)


# ----------------------------------------------------------------------- forward
def decoder_forward(params, text, conv_feature):
    """text: (b, L, channel) f32; conv_feature: (b, channel, h, w) f32 (NCHW)."""
    b, L, d = text.shape
    _, c, fh, fw = conv_feature.shape
    assert c == d
    Lk = fh * fw
    h = params["h"]

    kv = conv_feature.reshape(b, c, Lk).transpose(0, 2, 1)        # (b, Lk, d)

    def full_spec(arr):
        zeros = (0,) * arr.ndim
        return pl.BlockSpec(arr.shape, lambda i: zeros)           # resident, fetched once

    smem_spec = pl.BlockSpec(memory_space=pltpu.MemorySpace.SMEM)

    in_specs = [
        pl.BlockSpec((1, L, d), lambda i: (i, 0, 0)),             # text
        pl.BlockSpec((1, Lk, d), lambda i: (i, 0, 0)),            # kv
    ]
    args = [text.astype(jnp.float32), kv.astype(jnp.float32)]
    for name in _PARAM_ORDER:
        arr = params[name]
        args.append(arr)
        in_specs.append(smem_spec if name in ("cw", "cb") else full_spec(arr))

    out_shapes = (jax.ShapeDtypeStruct((b, L, d), jnp.float32),
                  jax.ShapeDtypeStruct((b, 1, L, Lk), jnp.float32))
    out_specs = [pl.BlockSpec((1, L, d), lambda i: (i, 0, 0)),
                 pl.BlockSpec((1, 1, L, Lk), lambda i: (i, 0, 0, 0))]

    result, attention_map = pl.pallas_call(
        functools.partial(_decoder_kernel, h=h, eps=1e-6),
        out_shape=out_shapes,
        grid_spec=pltpu.PrefetchScalarGridSpec(
            num_scalar_prefetch=0,
            grid=(b,),
            in_specs=in_specs,
            out_specs=out_specs,
        ),
        compiler_params=pltpu.CompilerParams(
            dimension_semantics=("parallel",),   # v7x: one batch element per TC
        ),
    )(*args)
    return result, attention_map


# ----------------------------------------------------- pure-JAX reference (f32 math)
def decoder_reference(params, text, conv_feature):
    h = params["h"]
    b, L, d = text.shape
    dk = d // h
    f32 = jnp.float32

    def ln(x, g, be):
        mean = x.mean(-1, keepdims=True)
        var = ((x - mean) ** 2).sum(-1, keepdims=True) / (d - 1)
        return g * (x - mean) / (jnp.sqrt(var) + 1e-6) + be

    def lin(x, w, bias):
        return x @ w.astype(f32) + bias

    def split_heads(x):
        return x.reshape(b, -1, h, dk).transpose(0, 2, 1, 3)

    qkv = lin(text, params["wqkv"], params["bqkv"])
    q, k, v = (split_heads(t) for t in jnp.split(qkv, 3, axis=-1))
    s = jnp.einsum('bhqd,bhkd->bhqk', q, k)
    mask = jnp.tril(jnp.ones((L, L), bool))
    p = jax.nn.softmax(jnp.where(mask, s, -1e30), axis=-1)
    ctx = jnp.einsum('bhqk,bhkd->bhqd', p, v).transpose(0, 2, 1, 3).reshape(b, L, d)
    res1 = ln(text + lin(ctx, params["wo1"], params["bo1"]), params["g1"], params["be1"])

    kvin = conv_feature.reshape(b, d, -1).transpose(0, 2, 1)
    q = split_heads(lin(res1, params["wq2"], params["bq2"]))
    kvp = lin(kvin, params["wkv2"], params["bkv2"])
    kk, vv = (split_heads(t) for t in jnp.split(kvp, 2, axis=-1))
    s = jnp.einsum('bhqd,bhkd->bhqk', q, kk)
    p = jax.nn.softmax(s, axis=-1)
    amap = jnp.einsum('bhqk,h->bqk', p, params["cw"])[:, None] + params["cb"][0]
    ctx = jnp.einsum('bhqk,bhkd->bhqd', p, vv).transpose(0, 2, 1, 3).reshape(b, L, d)
    res2 = ln(res1 + lin(ctx, params["wo2"], params["bo2"]), params["g2"], params["be2"])

    hid = jax.nn.relu(lin(res2, params["w1"], params["b1"]))
    res3 = ln(res2 + lin(hid, params["w2"], params["b2"]), params["g3"], params["be3"])
    return res3, amap


# --------------------------------------------------------------------------- main
if __name__ == "__main__":
    CHANNEL = 256                       # d_model == conv channel (divisible by h=4)
    kg = KeyGen(jax.random.PRNGKey(0))
    params = init_decoder(kg, CHANNEL)

    b, L, fh, fw = 2, 8, 2, 4
    k1, k2 = jax.random.split(jax.random.PRNGKey(0))
    text = jax.random.normal(k1, (b, L, CHANNEL), jnp.float32)
    conv_feature = jax.random.normal(k2, (b, CHANNEL, fh, fw), jnp.float32)

    fwd = jax.jit(lambda t, cf: decoder_forward(params, t, cf))
    result, attention_map = fwd(text, conv_feature)
    result, attention_map = jax.block_until_ready((result, attention_map))

    assert result.shape == (b, L, CHANNEL)
    assert attention_map.shape == (b, 1, L, fh * fw)
    assert bool(jnp.all(jnp.isfinite(result)))
    assert bool(jnp.all(jnp.isfinite(attention_map)))

    # loose tolerance: kernel uses bf16 MXU operands, reference is all-f32
    ref_result, ref_map = decoder_reference(params, text, conv_feature)
    err_r = float(jnp.max(jnp.abs(result - ref_result)))
    err_m = float(jnp.max(jnp.abs(attention_map - ref_map)))
    assert err_r < 0.1 and err_m < 0.1, (err_r, err_m)

    print("KERNEL_OK")
</pallas_src>

<mosaic_0001>
module attributes {stable_mosaic.version = 11 : i64} {
  func.func @_decoder_kernel(%arg0: i32, %arg1: memref<1x8x256xf32, #tpu.memory_space<vmem>>, %arg2: memref<1x8x256xf32, #tpu.memory_space<vmem>>, %arg3: memref<256x768xbf16, #tpu.memory_space<vmem>>, %arg4: memref<1x768xf32, #tpu.memory_space<vmem>>, %arg5: memref<256x256xbf16, #tpu.memory_space<vmem>>, %arg6: memref<1x256xf32, #tpu.memory_space<vmem>>, %arg7: memref<1x256xf32, #tpu.memory_space<vmem>>, %arg8: memref<1x256xf32, #tpu.memory_space<vmem>>, %arg9: memref<256x256xbf16, #tpu.memory_space<vmem>>, %arg10: memref<1x256xf32, #tpu.memory_space<vmem>>, %arg11: memref<256x512xbf16, #tpu.memory_space<vmem>>, %arg12: memref<1x512xf32, #tpu.memory_space<vmem>>, %arg13: memref<256x256xbf16, #tpu.memory_space<vmem>>, %arg14: memref<1x256xf32, #tpu.memory_space<vmem>>, %arg15: memref<4xf32, #tpu.memory_space<smem>>, %arg16: memref<1xf32, #tpu.memory_space<smem>>, %arg17: memref<1x256xf32, #tpu.memory_space<vmem>>, %arg18: memref<1x256xf32, #tpu.memory_space<vmem>>, %arg19: memref<256x512xbf16, #tpu.memory_space<vmem>>, %arg20: memref<1x512xf32, #tpu.memory_space<vmem>>, %arg21: memref<512x256xbf16, #tpu.memory_space<vmem>>, %arg22: memref<1x256xf32, #tpu.memory_space<vmem>>, %arg23: memref<1x256xf32, #tpu.memory_space<vmem>>, %arg24: memref<1x256xf32, #tpu.memory_space<vmem>>, %arg25: memref<1x8x256xf32, #tpu.memory_space<vmem>>, %arg26: memref<1x1x8x8xf32, #tpu.memory_space<vmem>>) attributes {dimension_semantics = [#tpu.dimension_semantics<parallel>], iteration_bounds = array<i64: 2>, scalar_prefetch = 0 : i64, scratch_operands = 0 : i64, tpu.core_type = #tpu.core_type<tc>, window_params = [{transform_indices = @transform_0, window_bounds = array<i64: 1, 8, 256>}, {transform_indices = @transform_1, window_bounds = array<i64: 1, 8, 256>}, {pipeline_mode = #tpu.pipeline_mode<synchronous>, transform_indices = @transform_2, window_bounds = array<i64: 256, 768>}, {pipeline_mode = #tpu.pipeline_mode<synchronous>, transform_indices = @transform_3, window_bounds = array<i64: 1, 768>}, {pipeline_mode = #tpu.pipeline_mode<synchronous>, transform_indices = @transform_4, window_bounds = array<i64: 256, 256>}, {pipeline_mode = #tpu.pipeline_mode<synchronous>, transform_indices = @transform_5, window_bounds = array<i64: 1, 256>}, {pipeline_mode = #tpu.pipeline_mode<synchronous>, transform_indices = @transform_6, window_bounds = array<i64: 1, 256>}, {pipeline_mode = #tpu.pipeline_mode<synchronous>, transform_indices = @transform_7, window_bounds = array<i64: 1, 256>}, {pipeline_mode = #tpu.pipeline_mode<synchronous>, transform_indices = @transform_8, window_bounds = array<i64: 256, 256>}, {pipeline_mode = #tpu.pipeline_mode<synchronous>, transform_indices = @transform_9, window_bounds = array<i64: 1, 256>}, {pipeline_mode = #tpu.pipeline_mode<synchronous>, transform_indices = @transform_10, window_bounds = array<i64: 256, 512>}, {pipeline_mode = #tpu.pipeline_mode<synchronous>, transform_indices = @transform_11, window_bounds = array<i64: 1, 512>}, {pipeline_mode = #tpu.pipeline_mode<synchronous>, transform_indices = @transform_12, window_bounds = array<i64: 256, 256>}, {pipeline_mode = #tpu.pipeline_mode<synchronous>, transform_indices = @transform_13, window_bounds = array<i64: 1, 256>}, {transform_indices = @transform_14, window_bounds = array<i64: 4>}, {transform_indices = @transform_15, window_bounds = array<i64: 1>}, {pipeline_mode = #tpu.pipeline_mode<synchronous>, transform_indices = @transform_16, window_bounds = array<i64: 1, 256>}, {pipeline_mode = #tpu.pipeline_mode<synchronous>, transform_indices = @transform_17, window_bounds = array<i64: 1, 256>}, {pipeline_mode = #tpu.pipeline_mode<synchronous>, transform_indices = @transform_18, window_bounds = array<i64: 256, 512>}, {pipeline_mode = #tpu.pipeline_mode<synchronous>, transform_indices = @transform_19, window_bounds = array<i64: 1, 512>}, {pipeline_mode = #tpu.pipeline_mode<synchronous>, transform_indices = @transform_20, window_bounds = array<i64: 512, 256>}, {pipeline_mode = #tpu.pipeline_mode<synchronous>, transform_indices = @transform_21, window_bounds = array<i64: 1, 256>}, {pipeline_mode = #tpu.pipeline_mode<synchronous>, transform_indices = @transform_22, window_bounds = array<i64: 1, 256>}, {pipeline_mode = #tpu.pipeline_mode<synchronous>, transform_indices = @transform_23, window_bounds = array<i64: 1, 256>}, {transform_indices = @transform_24, window_bounds = array<i64: 1, 8, 256>}, {transform_indices = @transform_25, window_bounds = array<i64: 1, 1, 8, 8>}]} {
    %c0 = arith.constant 0 : index
    %c0_0 = arith.constant 0 : index
    %c0_1 = arith.constant 0 : index
    %0 = vector.load %arg1[%c0, %c0_0, %c0_1] : memref<1x8x256xf32, #tpu.memory_space<vmem>>, vector<1x8x256xf32>
    %1 = vector.shape_cast %0 : vector<1x8x256xf32> to vector<8x256xf32>
    %2 = arith.truncf %1 : vector<8x256xf32> to vector<8x256xbf16>
    %c0_2 = arith.constant 0 : index
    %c0_3 = arith.constant 0 : index
    %3 = vector.load %arg3[%c0_2, %c0_3] : memref<256x768xbf16, #tpu.memory_space<vmem>>, vector<256x768xbf16>
    %cst = arith.constant dense<0.000000e+00> : vector<8x768xf32>
    %4 = tpu.matmul %2, %3, %cst {dimension_numbers = #tpu.dot_dimension_numbers<[1], [0], [0], [1], [0, 0, 1, 1], [], []>} : vector<8x256xbf16>, vector<256x768xbf16>, vector<8x768xf32> -> vector<8x768xf32>
    %c0_4 = arith.constant 0 : index
    %c0_5 = arith.constant 0 : index
    %5 = vector.load %arg4[%c0_4, %c0_5] : memref<1x768xf32, #tpu.memory_space<vmem>>, vector<1x768xf32>
    %6 = vector.broadcast %5 : vector<1x768xf32> to vector<8x768xf32>
    %7 = arith.addf %4, %6 : vector<8x768xf32>
    %8 = vector.extract_strided_slice %7 {offsets = [0, 0], sizes = [8, 256], strides = [1, 1]} : vector<8x768xf32> to vector<8x256xf32>
    %9 = vector.extract_strided_slice %7 {offsets = [0, 256], sizes = [8, 256], strides = [1, 1]} : vector<8x768xf32> to vector<8x256xf32>
    %10 = vector.extract_strided_slice %7 {offsets = [0, 512], sizes = [8, 256], strides = [1, 1]} : vector<8x768xf32> to vector<8x256xf32>
    %11 = vector.extract_strided_slice %8 {offsets = [0, 0], sizes = [8, 64], strides = [1, 1]} : vector<8x256xf32> to vector<8x64xf32>
    %12 = arith.truncf %11 : vector<8x64xf32> to vector<8x64xbf16>
    %13 = vector.extract_strided_slice %9 {offsets = [0, 0], sizes = [8, 64], strides = [1, 1]} : vector<8x256xf32> to vector<8x64xf32>
    %14 = arith.truncf %13 : vector<8x64xf32> to vector<8x64xbf16>
    %15 = vector.extract_strided_slice %10 {offsets = [0, 0], sizes = [8, 64], strides = [1, 1]} : vector<8x256xf32> to vector<8x64xf32>
    %16 = arith.truncf %15 : vector<8x64xf32> to vector<8x64xbf16>
    %cst_6 = arith.constant dense<0.000000e+00> : vector<8x8xf32>
    %17 = tpu.matmul %12, %14, %cst_6 {dimension_numbers = #tpu.dot_dimension_numbers<[1], [1], [0], [0], [0, 0, 1, 0], [], []>} : vector<8x64xbf16>, vector<8x64xbf16>, vector<8x8xf32> -> vector<8x8xf32>
    %18 = tpu.iota {dimensions = array<i32: 0>} : vector<8x8xi32>
    %19 = tpu.iota {dimensions = array<i32: 1>} : vector<8x8xi32>
    %20 = arith.cmpi sle, %19, %18 : vector<8x8xi32>
    %cst_7 = arith.constant -1.000000e+30 : f32
    %21 = vector.broadcast %cst_7 : f32 to vector<8x8xf32>
    %22 = arith.select %20, %17, %21 : vector<8x8xi1>, vector<8x8xf32>
    %cst_8 = arith.constant dense<0xFF800000> : vector<8xf32>
    %23 = vector.multi_reduction <maximumf>, %22, %cst_8 [1] : vector<8x8xf32> to vector<8xf32>
    %24 = vector.shape_cast %23 : vector<8xf32> to vector<8x1xf32>
    %25 = vector.broadcast %24 : vector<8x1xf32> to vector<8x8xf32>
    %26 = arith.subf %22, %25 : vector<8x8xf32>
    %27 = math.exp %26 : vector<8x8xf32>
    %cst_9 = arith.constant dense<0.000000e+00> : vector<8xf32>
    %28 = vector.multi_reduction <add>, %27, %cst_9 [1] : vector<8x8xf32> to vector<8xf32>
    %29 = vector.shape_cast %28 : vector<8xf32> to vector<8x1xf32>
    %30 = vector.broadcast %29 : vector<8x1xf32> to vector<8x8xf32>
    %31 = arith.divf %27, %30 : vector<8x8xf32>
    %32 = arith.truncf %31 : vector<8x8xf32> to vector<8x8xbf16>
    %cst_10 = arith.constant dense<0.000000e+00> : vector<8x64xf32>
    %33 = tpu.matmul %32, %16, %cst_10 {dimension_numbers = #tpu.dot_dimension_numbers<[1], [0], [0], [1], [0, 0, 1, 1], [], []>} : vector<8x8xbf16>, vector<8x64xbf16>, vector<8x64xf32> -> vector<8x64xf32>
    %34 = arith.truncf %33 : vector<8x64xf32> to vector<8x64xbf16>
    %c0_11 = arith.constant 0 : index
    %c0_12 = arith.constant 0 : index
    %35 = vector.load %arg5[%c0_11, %c0_12] : memref<256x256xbf16, #tpu.memory_space<vmem>>, vector<64x256xbf16>
    %cst_13 = arith.constant dense<0.000000e+00> : vector<8x256xf32>
    %36 = tpu.matmul %34, %35, %cst_13 {dimension_numbers = #tpu.dot_dimension_numbers<[1], [0], [0], [1], [0, 0, 1, 1], [], []>} : vector<8x64xbf16>, vector<64x256xbf16>, vector<8x256xf32> -> vector<8x256xf32>
    %37 = vector.extract_strided_slice %8 {offsets = [0, 64], sizes = [8, 64], strides = [1, 1]} : vector<8x256xf32> to vector<8x64xf32>
    %38 = arith.truncf %37 : vector<8x64xf32> to vector<8x64xbf16>
    %39 = vector.extract_strided_slice %9 {offsets = [0, 64], sizes = [8, 64], strides = [1, 1]} : vector<8x256xf32> to vector<8x64xf32>
    %40 = arith.truncf %39 : vector<8x64xf32> to vector<8x64xbf16>
    %41 = vector.extract_strided_slice %10 {offsets = [0, 64], sizes = [8, 64], strides = [1, 1]} : vector<8x256xf32> to vector<8x64xf32>
    %42 = arith.truncf %41 : vector<8x64xf32> to vector<8x64xbf16>
    %cst_14 = arith.constant dense<0.000000e+00> : vector<8x8xf32>
    %43 = tpu.matmul %38, %40, %cst_14 {dimension_numbers = #tpu.dot_dimension_numbers<[1], [1], [0], [0], [0, 0, 1, 0], [], []>} : vector<8x64xbf16>, vector<8x64xbf16>, vector<8x8xf32> -> vector<8x8xf32>
    %44 = tpu.iota {dimensions = array<i32: 0>} : vector<8x8xi32>
    %45 = tpu.iota {dimensions = array<i32: 1>} : vector<8x8xi32>
    %46 = arith.cmpi sle, %45, %44 : vector<8x8xi32>
    %cst_15 = arith.constant -1.000000e+30 : f32
    %47 = vector.broadcast %cst_15 : f32 to vector<8x8xf32>
    %48 = arith.select %46, %43, %47 : vector<8x8xi1>, vector<8x8xf32>
    %cst_16 = arith.constant dense<0xFF800000> : vector<8xf32>
    %49 = vector.multi_reduction <maximumf>, %48, %cst_16 [1] : vector<8x8xf32> to vector<8xf32>
    %50 = vector.shape_cast %49 : vector<8xf32> to vector<8x1xf32>
    %51 = vector.broadcast %50 : vector<8x1xf32> to vector<8x8xf32>
    %52 = arith.subf %48, %51 : vector<8x8xf32>
    %53 = math.exp %52 : vector<8x8xf32>
    %cst_17 = arith.constant dense<0.000000e+00> : vector<8xf32>
    %54 = vector.multi_reduction <add>, %53, %cst_17 [1] : vector<8x8xf32> to vector<8xf32>
    %55 = vector.shape_cast %54 : vector<8xf32> to vector<8x1xf32>
    %56 = vector.broadcast %55 : vector<8x1xf32> to vector<8x8xf32>
    %57 = arith.divf %53, %56 : vector<8x8xf32>
    %58 = arith.truncf %57 : vector<8x8xf32> to vector<8x8xbf16>
    %cst_18 = arith.constant dense<0.000000e+00> : vector<8x64xf32>
    %59 = tpu.matmul %58, %42, %cst_18 {dimension_numbers = #tpu.dot_dimension_numbers<[1], [0], [0], [1], [0, 0, 1, 1], [], []>} : vector<8x8xbf16>, vector<8x64xbf16>, vector<8x64xf32> -> vector<8x64xf32>
    %60 = arith.truncf %59 : vector<8x64xf32> to vector<8x64xbf16>
    %c64 = arith.constant 64 : index
    %c0_19 = arith.constant 0 : index
    %61 = vector.load %arg5[%c64, %c0_19] : memref<256x256xbf16, #tpu.memory_space<vmem>>, vector<64x256xbf16>
    %cst_20 = arith.constant dense<0.000000e+00> : vector<8x256xf32>
    %62 = tpu.matmul %60, %61, %cst_20 {dimension_numbers = #tpu.dot_dimension_numbers<[1], [0], [0], [1], [0, 0, 1, 1], [], []>} : vector<8x64xbf16>, vector<64x256xbf16>, vector<8x256xf32> -> vector<8x256xf32>
    %63 = arith.addf %36, %62 : vector<8x256xf32>
    %64 = vector.extract_strided_slice %8 {offsets = [0, 128], sizes = [8, 64], strides = [1, 1]} : vector<8x256xf32> to vector<8x64xf32>
    %65 = arith.truncf %64 : vector<8x64xf32> to vector<8x64xbf16>
    %66 = vector.extract_strided_slice %9 {offsets = [0, 128], sizes = [8, 64], strides = [1, 1]} : vector<8x256xf32> to vector<8x64xf32>
    %67 = arith.truncf %66 : vector<8x64xf32> to vector<8x64xbf16>
    %68 = vector.extract_strided_slice %10 {offsets = [0, 128], sizes = [8, 64], strides = [1, 1]} : vector<8x256xf32> to vector<8x64xf32>
    %69 = arith.truncf %68 : vector<8x64xf32> to vector<8x64xbf16>
    %cst_21 = arith.constant dense<0.000000e+00> : vector<8x8xf32>
    %70 = tpu.matmul %65, %67, %cst_21 {dimension_numbers = #tpu.dot_dimension_numbers<[1], [1], [0], [0], [0, 0, 1, 0], [], []>} : vector<8x64xbf16>, vector<8x64xbf16>, vector<8x8xf32> -> vector<8x8xf32>
    %71 = tpu.iota {dimensions = array<i32: 0>} : vector<8x8xi32>
    %72 = tpu.iota {dimensions = array<i32: 1>} : vector<8x8xi32>
    %73 = arith.cmpi sle, %72, %71 : vector<8x8xi32>
    %cst_22 = arith.constant -1.000000e+30 : f32
    %74 = vector.broadcast %cst_22 : f32 to vector<8x8xf32>
    %75 = arith.select %73, %70, %74 : vector<8x8xi1>, vector<8x8xf32>
    %cst_23 = arith.constant dense<0xFF800000> : vector<8xf32>
    %76 = vector.multi_reduction <maximumf>, %75, %cst_23 [1] : vector<8x8xf32> to vector<8xf32>
    %77 = vector.shape_cast %76 : vector<8xf32> to vector<8x1xf32>
    %78 = vector.broadcast %77 : vector<8x1xf32> to vector<8x8xf32>
    %79 = arith.subf %75, %78 : vector<8x8xf32>
    %80 = math.exp %79 : vector<8x8xf32>
    %cst_24 = arith.constant dense<0.000000e+00> : vector<8xf32>
    %81 = vector.multi_reduction <add>, %80, %cst_24 [1] : vector<8x8xf32> to vector<8xf32>
    %82 = vector.shape_cast %81 : vector<8xf32> to vector<8x1xf32>
    %83 = vector.broadcast %82 : vector<8x1xf32> to vector<8x8xf32>
    %84 = arith.divf %80, %83 : vector<8x8xf32>
    %85 = arith.truncf %84 : vector<8x8xf32> to vector<8x8xbf16>
    %cst_25 = arith.constant dense<0.000000e+00> : vector<8x64xf32>
    %86 = tpu.matmul %85, %69, %cst_25 {dimension_numbers = #tpu.dot_dimension_numbers<[1], [0], [0], [1], [0, 0, 1, 1], [], []>} : vector<8x8xbf16>, vector<8x64xbf16>, vector<8x64xf32> -> vector<8x64xf32>
    %87 = arith.truncf %86 : vector<8x64xf32> to vector<8x64xbf16>
    %c128 = arith.constant 128 : index
    %c0_26 = arith.constant 0 : index
    %88 = vector.load %arg5[%c128, %c0_26] : memref<256x256xbf16, #tpu.memory_space<vmem>>, vector<64x256xbf16>
    %cst_27 = arith.constant dense<0.000000e+00> : vector<8x256xf32>
    %89 = tpu.matmul %87, %88, %cst_27 {dimension_numbers = #tpu.dot_dimension_numbers<[1], [0], [0], [1], [0, 0, 1, 1], [], []>} : vector<8x64xbf16>, vector<64x256xbf16>, vector<8x256xf32> -> vector<8x256xf32>
    %90 = arith.addf %63, %89 : vector<8x256xf32>
    %91 = vector.extract_strided_slice %8 {offsets = [0, 192], sizes = [8, 64], strides = [1, 1]} : vector<8x256xf32> to vector<8x64xf32>
    %92 = arith.truncf %91 : vector<8x64xf32> to vector<8x64xbf16>
    %93 = vector.extract_strided_slice %9 {offsets = [0, 192], sizes = [8, 64], strides = [1, 1]} : vector<8x256xf32> to vector<8x64xf32>
    %94 = arith.truncf %93 : vector<8x64xf32> to vector<8x64xbf16>
    %95 = vector.extract_strided_slice %10 {offsets = [0, 192], sizes = [8, 64], strides = [1, 1]} : vector<8x256xf32> to vector<8x64xf32>
    %96 = arith.truncf %95 : vector<8x64xf32> to vector<8x64xbf16>
    %cst_28 = arith.constant dense<0.000000e+00> : vector<8x8xf32>
    %97 = tpu.matmul %92, %94, %cst_28 {dimension_numbers = #tpu.dot_dimension_numbers<[1], [1], [0], [0], [0, 0, 1, 0], [], []>} : vector<8x64xbf16>, vector<8x64xbf16>, vector<8x8xf32> -> vector<8x8xf32>
    %98 = tpu.iota {dimensions = array<i32: 0>} : vector<8x8xi32>
    %99 = tpu.iota {dimensions = array<i32: 1>} : vector<8x8xi32>
    %100 = arith.cmpi sle, %99, %98 : vector<8x8xi32>
    %cst_29 = arith.constant -1.000000e+30 : f32
    %101 = vector.broadcast %cst_29 : f32 to vector<8x8xf32>
    %102 = arith.select %100, %97, %101 : vector<8x8xi1>, vector<8x8xf32>
    %cst_30 = arith.constant dense<0xFF800000> : vector<8xf32>
    %103 = vector.multi_reduction <maximumf>, %102, %cst_30 [1] : vector<8x8xf32> to vector<8xf32>
    %104 = vector.shape_cast %103 : vector<8xf32> to vector<8x1xf32>
    %105 = vector.broadcast %104 : vector<8x1xf32> to vector<8x8xf32>
    %106 = arith.subf %102, %105 : vector<8x8xf32>
    %107 = math.exp %106 : vector<8x8xf32>
    %cst_31 = arith.constant dense<0.000000e+00> : vector<8xf32>
    %108 = vector.multi_reduction <add>, %107, %cst_31 [1] : vector<8x8xf32> to vector<8xf32>
    %109 = vector.shape_cast %108 : vector<8xf32> to vector<8x1xf32>
    %110 = vector.broadcast %109 : vector<8x1xf32> to vector<8x8xf32>
    %111 = arith.divf %107, %110 : vector<8x8xf32>
    %112 = arith.truncf %111 : vector<8x8xf32> to vector<8x8xbf16>
    %cst_32 = arith.constant dense<0.000000e+00> : vector<8x64xf32>
    %113 = tpu.matmul %112, %96, %cst_32 {dimension_numbers = #tpu.dot_dimension_numbers<[1], [0], [0], [1], [0, 0, 1, 1], [], []>} : vector<8x8xbf16>, vector<8x64xbf16>, vector<8x64xf32> -> vector<8x64xf32>
    %114 = arith.truncf %113 : vector<8x64xf32> to vector<8x64xbf16>
    %c192 = arith.constant 192 : index
    %c0_33 = arith.constant 0 : index
    %115 = vector.load %arg5[%c192, %c0_33] : memref<256x256xbf16, #tpu.memory_space<vmem>>, vector<64x256xbf16>
    %cst_34 = arith.constant dense<0.000000e+00> : vector<8x256xf32>
    %116 = tpu.matmul %114, %115, %cst_34 {dimension_numbers = #tpu.dot_dimension_numbers<[1], [0], [0], [1], [0, 0, 1, 1], [], []>} : vector<8x64xbf16>, vector<64x256xbf16>, vector<8x256xf32> -> vector<8x256xf32>
    %117 = arith.addf %90, %116 : vector<8x256xf32>
    %c0_35 = arith.constant 0 : index
    %c0_36 = arith.constant 0 : index
    %118 = vector.load %arg6[%c0_35, %c0_36] : memref<1x256xf32, #tpu.memory_space<vmem>>, vector<1x256xf32>
    %119 = vector.broadcast %118 : vector<1x256xf32> to vector<8x256xf32>
    %120 = arith.addf %117, %119 : vector<8x256xf32>
    %121 = arith.addf %1, %120 : vector<8x256xf32>
    %cst_37 = arith.constant dense<0.000000e+00> : vector<8xf32>
    %122 = vector.multi_reduction <add>, %121, %cst_37 [1] : vector<8x256xf32> to vector<8xf32>
    %123 = vector.shape_cast %122 : vector<8xf32> to vector<8x1xf32>
    %cst_38 = arith.constant 2.560000e+02 : f32
    %124 = vector.broadcast %cst_38 : f32 to vector<8x1xf32>
    %125 = arith.divf %123, %124 : vector<8x1xf32>
    %126 = vector.broadcast %125 : vector<8x1xf32> to vector<8x256xf32>
    %127 = arith.subf %121, %126 : vector<8x256xf32>
    %128 = arith.mulf %127, %127 : vector<8x256xf32>
    %cst_39 = arith.constant dense<0.000000e+00> : vector<8xf32>
    %129 = vector.multi_reduction <add>, %128, %cst_39 [1] : vector<8x256xf32> to vector<8xf32>
    %130 = vector.shape_cast %129 : vector<8xf32> to vector<8x1xf32>
    %cst_40 = arith.constant 0.00392156886 : f32
    %131 = vector.broadcast %cst_40 : f32 to vector<8x1xf32>
    %132 = arith.mulf %130, %131 : vector<8x1xf32>
    %c0_41 = arith.constant 0 : index
    %c0_42 = arith.constant 0 : index
    %133 = vector.load %arg7[%c0_41, %c0_42] : memref<1x256xf32, #tpu.memory_space<vmem>>, vector<1x256xf32>
    %134 = math.sqrt %132 : vector<8x1xf32>
    %cst_43 = arith.constant 9.99999997E-7 : f32
    %135 = vector.broadcast %cst_43 : f32 to vector<8x1xf32>
    %136 = arith.addf %134, %135 : vector<8x1xf32>
    %137 = vector.broadcast %136 : vector<8x1xf32> to vector<8x256xf32>
    %138 = arith.divf %127, %137 : vector<8x256xf32>
    %139 = vector.broadcast %133 : vector<1x256xf32> to vector<8x256xf32>
    %140 = arith.mulf %139, %138 : vector<8x256xf32>
    %c0_44 = arith.constant 0 : index
    %c0_45 = arith.constant 0 : index
    %141 = vector.load %arg8[%c0_44, %c0_45] : memref<1x256xf32, #tpu.memory_space<vmem>>, vector<1x256xf32>
    %142 = vector.broadcast %141 : vector<1x256xf32> to vector<8x256xf32>
    %143 = arith.addf %140, %142 : vector<8x256xf32>
    %c0_46 = arith.constant 0 : index
    %c0_47 = arith.constant 0 : index
    %c0_48 = arith.constant 0 : index
    %144 = vector.load %arg2[%c0_46, %c0_47, %c0_48] : memref<1x8x256xf32, #tpu.memory_space<vmem>>, vector<1x8x256xf32>
    %145 = vector.shape_cast %144 : vector<1x8x256xf32> to vector<8x256xf32>
    %146 = arith.truncf %143 : vector<8x256xf32> to vector<8x256xbf16>
    %c0_49 = arith.constant 0 : index
    %c0_50 = arith.constant 0 : index
    %147 = vector.load %arg9[%c0_49, %c0_50] : memref<256x256xbf16, #tpu.memory_space<vmem>>, vector<256x256xbf16>
    %cst_51 = arith.constant dense<0.000000e+00> : vector<8x256xf32>
    %148 = tpu.matmul %146, %147, %cst_51 {dimension_numbers = #tpu.dot_dimension_numbers<[1], [0], [0], [1], [0, 0, 1, 1], [], []>} : vector<8x256xbf16>, vector<256x256xbf16>, vector<8x256xf32> -> vector<8x256xf32>
    %c0_52 = arith.constant 0 : index
    %c0_53 = arith.constant 0 : index
    %149 = vector.load %arg10[%c0_52, %c0_53] : memref<1x256xf32, #tpu.memory_space<vmem>>, vector<1x256xf32>
    %150 = vector.broadcast %149 : vector<1x256xf32> to vector<8x256xf32>
    %151 = arith.addf %148, %150 : vector<8x256xf32>
    %152 = arith.truncf %145 : vector<8x256xf32> to vector<8x256xbf16>
    %c0_54 = arith.constant 0 : index
    %c0_55 = arith.constant 0 : index
    %153 = vector.load %arg11[%c0_54, %c0_55] : memref<256x512xbf16, #tpu.memory_space<vmem>>, vector<256x512xbf16>
    %cst_56 = arith.constant dense<0.000000e+00> : vector<8x512xf32>
    %154 = tpu.matmul %152, %153, %cst_56 {dimension_numbers = #tpu.dot_dimension_numbers<[1], [0], [0], [1], [0, 0, 1, 1], [], []>} : vector<8x256xbf16>, vector<256x512xbf16>, vector<8x512xf32> -> vector<8x512xf32>
    %c0_57 = arith.constant 0 : index
    %c0_58 = arith.constant 0 : index
    %155 = vector.load %arg12[%c0_57, %c0_58] : memref<1x512xf32, #tpu.memory_space<vmem>>, vector<1x512xf32>
    %156 = vector.broadcast %155 : vector<1x512xf32> to vector<8x512xf32>
    %157 = arith.addf %154, %156 : vector<8x512xf32>
    %158 = vector.extract_strided_slice %157 {offsets = [0, 0], sizes = [8, 256], strides = [1, 1]} : vector<8x512xf32> to vector<8x256xf32>
    %159 = vector.extract_strided_slice %157 {offsets = [0, 256], sizes = [8, 256], strides = [1, 1]} : vector<8x512xf32> to vector<8x256xf32>
    %160 = vector.extract_strided_slice %151 {offsets = [0, 0], sizes = [8, 64], strides = [1, 1]} : vector<8x256xf32> to vector<8x64xf32>
    %161 = arith.truncf %160 : vector<8x64xf32> to vector<8x64xbf16>
    %162 = vector.extract_strided_slice %158 {offsets = [0, 0], sizes = [8, 64], strides = [1, 1]} : vector<8x256xf32> to vector<8x64xf32>
    %163 = arith.truncf %162 : vector<8x64xf32> to vector<8x64xbf16>
    %164 = vector.extract_strided_slice %159 {offsets = [0, 0], sizes = [8, 64], strides = [1, 1]} : vector<8x256xf32> to vector<8x64xf32>
    %165 = arith.truncf %164 : vector<8x64xf32> to vector<8x64xbf16>
    %cst_59 = arith.constant dense<0.000000e+00> : vector<8x8xf32>
    %166 = tpu.matmul %161, %163, %cst_59 {dimension_numbers = #tpu.dot_dimension_numbers<[1], [1], [0], [0], [0, 0, 1, 0], [], []>} : vector<8x64xbf16>, vector<8x64xbf16>, vector<8x8xf32> -> vector<8x8xf32>
    %cst_60 = arith.constant dense<0xFF800000> : vector<8xf32>
    %167 = vector.multi_reduction <maximumf>, %166, %cst_60 [1] : vector<8x8xf32> to vector<8xf32>
    %168 = vector.shape_cast %167 : vector<8xf32> to vector<8x1xf32>
    %169 = vector.broadcast %168 : vector<8x1xf32> to vector<8x8xf32>
    %170 = arith.subf %166, %169 : vector<8x8xf32>
    %171 = math.exp %170 : vector<8x8xf32>
    %cst_61 = arith.constant dense<0.000000e+00> : vector<8xf32>
    %172 = vector.multi_reduction <add>, %171, %cst_61 [1] : vector<8x8xf32> to vector<8xf32>
    %173 = vector.shape_cast %172 : vector<8xf32> to vector<8x1xf32>
    %174 = vector.broadcast %173 : vector<8x1xf32> to vector<8x8xf32>
    %175 = arith.divf %171, %174 : vector<8x8xf32>
    %c0_62 = arith.constant 0 : index
    %176 = memref.load %arg15[%c0_62] : memref<4xf32, #tpu.memory_space<smem>>
    %177 = vector.broadcast %176 : f32 to vector<8x8xf32>
    %178 = arith.mulf %175, %177 : vector<8x8xf32>
    %179 = arith.truncf %175 : vector<8x8xf32> to vector<8x8xbf16>
    %cst_63 = arith.constant dense<0.000000e+00> : vector<8x64xf32>
    %180 = tpu.matmul %179, %165, %cst_63 {dimension_numbers = #tpu.dot_dimension_numbers<[1], [0], [0], [1], [0, 0, 1, 1], [], []>} : vector<8x8xbf16>, vector<8x64xbf16>, vector<8x64xf32> -> vector<8x64xf32>
    %181 = arith.truncf %180 : vector<8x64xf32> to vector<8x64xbf16>
    %c0_64 = arith.constant 0 : index
    %c0_65 = arith.constant 0 : index
    %182 = vector.load %arg13[%c0_64, %c0_65] : memref<256x256xbf16, #tpu.memory_space<vmem>>, vector<64x256xbf16>
    %cst_66 = arith.constant dense<0.000000e+00> : vector<8x256xf32>
    %183 = tpu.matmul %181, %182, %cst_66 {dimension_numbers = #tpu.dot_dimension_numbers<[1], [0], [0], [1], [0, 0, 1, 1], [], []>} : vector<8x64xbf16>, vector<64x256xbf16>, vector<8x256xf32> -> vector<8x256xf32>
    %184 = vector.extract_strided_slice %151 {offsets = [0, 64], sizes = [8, 64], strides = [1, 1]} : vector<8x256xf32> to vector<8x64xf32>
    %185 = arith.truncf %184 : vector<8x64xf32> to vector<8x64xbf16>
    %186 = vector.extract_strided_slice %158 {offsets = [0, 64], sizes = [8, 64], strides = [1, 1]} : vector<8x256xf32> to vector<8x64xf32>
    %187 = arith.truncf %186 : vector<8x64xf32> to vector<8x64xbf16>
    %188 = vector.extract_strided_slice %159 {offsets = [0, 64], sizes = [8, 64], strides = [1, 1]} : vector<8x256xf32> to vector<8x64xf32>
    %189 = arith.truncf %188 : vector<8x64xf32> to vector<8x64xbf16>
    %cst_67 = arith.constant dense<0.000000e+00> : vector<8x8xf32>
    %190 = tpu.matmul %185, %187, %cst_67 {dimension_numbers = #tpu.dot_dimension_numbers<[1], [1], [0], [0], [0, 0, 1, 0], [], []>} : vector<8x64xbf16>, vector<8x64xbf16>, vector<8x8xf32> -> vector<8x8xf32>
    %cst_68 = arith.constant dense<0xFF800000> : vector<8xf32>
    %191 = vector.multi_reduction <maximumf>, %190, %cst_68 [1] : vector<8x8xf32> to vector<8xf32>
    %192 = vector.shape_cast %191 : vector<8xf32> to vector<8x1xf32>
    %193 = vector.broadcast %192 : vector<8x1xf32> to vector<8x8xf32>
    %194 = arith.subf %190, %193 : vector<8x8xf32>
    %195 = math.exp %194 : vector<8x8xf32>
    %cst_69 = arith.constant dense<0.000000e+00> : vector<8xf32>
    %196 = vector.multi_reduction <add>, %195, %cst_69 [1] : vector<8x8xf32> to vector<8xf32>
    %197 = vector.shape_cast %196 : vector<8xf32> to vector<8x1xf32>
    %198 = vector.broadcast %197 : vector<8x1xf32> to vector<8x8xf32>
    %199 = arith.divf %195, %198 : vector<8x8xf32>
    %c1 = arith.constant 1 : index
    %200 = memref.load %arg15[%c1] : memref<4xf32, #tpu.memory_space<smem>>
    %201 = vector.broadcast %200 : f32 to vector<8x8xf32>
    %202 = arith.mulf %199, %201 : vector<8x8xf32>
    %203 = arith.addf %178, %202 : vector<8x8xf32>
    %204 = arith.truncf %199 : vector<8x8xf32> to vector<8x8xbf16>
    %cst_70 = arith.constant dense<0.000000e+00> : vector<8x64xf32>
    %205 = tpu.matmul %204, %189, %cst_70 {dimension_numbers = #tpu.dot_dimension_numbers<[1], [0], [0], [1], [0, 0, 1, 1], [], []>} : vector<8x8xbf16>, vector<8x64xbf16>, vector<8x64xf32> -> vector<8x64xf32>
    %206 = arith.truncf %205 : vector<8x64xf32> to vector<8x64xbf16>
    %c64_71 = arith.constant 64 : index
    %c0_72 = arith.constant 0 : index
    %207 = vector.load %arg13[%c64_71, %c0_72] : memref<256x256xbf16, #tpu.memory_space<vmem>>, vector<64x256xbf16>
    %cst_73 = arith.constant dense<0.000000e+00> : vector<8x256xf32>
    %208 = tpu.matmul %206, %207, %cst_73 {dimension_numbers = #tpu.dot_dimension_numbers<[1], [0], [0], [1], [0, 0, 1, 1], [], []>} : vector<8x64xbf16>, vector<64x256xbf16>, vector<8x256xf32> -> vector<8x256xf32>
    %209 = arith.addf %183, %208 : vector<8x256xf32>
    %210 = vector.extract_strided_slice %151 {offsets = [0, 128], sizes = [8, 64], strides = [1, 1]} : vector<8x256xf32> to vector<8x64xf32>
    %211 = arith.truncf %210 : vector<8x64xf32> to vector<8x64xbf16>
    %212 = vector.extract_strided_slice %158 {offsets = [0, 128], sizes = [8, 64], strides = [1, 1]} : vector<8x256xf32> to vector<8x64xf32>
    %213 = arith.truncf %212 : vector<8x64xf32> to vector<8x64xbf16>
    %214 = vector.extract_strided_slice %159 {offsets = [0, 128], sizes = [8, 64], strides = [1, 1]} : vector<8x256xf32> to vector<8x64xf32>
    %215 = arith.truncf %214 : vector<8x64xf32> to vector<8x64xbf16>
    %cst_74 = arith.constant dense<0.000000e+00> : vector<8x8xf32>
    %216 = tpu.matmul %211, %213, %cst_74 {dimension_numbers = #tpu.dot_dimension_numbers<[1], [1], [0], [0], [0, 0, 1, 0], [], []>} : vector<8x64xbf16>, vector<8x64xbf16>, vector<8x8xf32> -> vector<8x8xf32>
    %cst_75 = arith.constant dense<0xFF800000> : vector<8xf32>
    %217 = vector.multi_reduction <maximumf>, %216, %cst_75 [1] : vector<8x8xf32> to vector<8xf32>
    %218 = vector.shape_cast %217 : vector<8xf32> to vector<8x1xf32>
    %219 = vector.broadcast %218 : vector<8x1xf32> to vector<8x8xf32>
    %220 = arith.subf %216, %219 : vector<8x8xf32>
    %221 = math.exp %220 : vector<8x8xf32>
    %cst_76 = arith.constant dense<0.000000e+00> : vector<8xf32>
    %222 = vector.multi_reduction <add>, %221, %cst_76 [1] : vector<8x8xf32> to vector<8xf32>
    %223 = vector.shape_cast %222 : vector<8xf32> to vector<8x1xf32>
    %224 = vector.broadcast %223 : vector<8x1xf32> to vector<8x8xf32>
    %225 = arith.divf %221, %224 : vector<8x8xf32>
    %c2 = arith.constant 2 : index
    %226 = memref.load %arg15[%c2] : memref<4xf32, #tpu.memory_space<smem>>
    %227 = vector.broadcast %226 : f32 to vector<8x8xf32>
    %228 = arith.mulf %225, %227 : vector<8x8xf32>
    %229 = arith.addf %203, %228 : vector<8x8xf32>
    %230 = arith.truncf %225 : vector<8x8xf32> to vector<8x8xbf16>
    %cst_77 = arith.constant dense<0.000000e+00> : vector<8x64xf32>
    %231 = tpu.matmul %230, %215, %cst_77 {dimension_numbers = #tpu.dot_dimension_numbers<[1], [0], [0], [1], [0, 0, 1, 1], [], []>} : vector<8x8xbf16>, vector<8x64xbf16>, vector<8x64xf32> -> vector<8x64xf32>
    %232 = arith.truncf %231 : vector<8x64xf32> to vector<8x64xbf16>
    %c128_78 = arith.constant 128 : index
    %c0_79 = arith.constant 0 : index
    %233 = vector.load %arg13[%c128_78, %c0_79] : memref<256x256xbf16, #tpu.memory_space<vmem>>, vector<64x256xbf16>
    %cst_80 = arith.constant dense<0.000000e+00> : vector<8x256xf32>
    %234 = tpu.matmul %232, %233, %cst_80 {dimension_numbers = #tpu.dot_dimension_numbers<[1], [0], [0], [1], [0, 0, 1, 1], [], []>} : vector<8x64xbf16>, vector<64x256xbf16>, vector<8x256xf32> -> vector<8x256xf32>
    %235 = arith.addf %209, %234 : vector<8x256xf32>
    %236 = vector.extract_strided_slice %151 {offsets = [0, 192], sizes = [8, 64], strides = [1, 1]} : vector<8x256xf32> to vector<8x64xf32>
    %237 = arith.truncf %236 : vector<8x64xf32> to vector<8x64xbf16>
    %238 = vector.extract_strided_slice %158 {offsets = [0, 192], sizes = [8, 64], strides = [1, 1]} : vector<8x256xf32> to vector<8x64xf32>
    %239 = arith.truncf %238 : vector<8x64xf32> to vector<8x64xbf16>
    %240 = vector.extract_strided_slice %159 {offsets = [0, 192], sizes = [8, 64], strides = [1, 1]} : vector<8x256xf32> to vector<8x64xf32>
    %241 = arith.truncf %240 : vector<8x64xf32> to vector<8x64xbf16>
    %cst_81 = arith.constant dense<0.000000e+00> : vector<8x8xf32>
    %242 = tpu.matmul %237, %239, %cst_81 {dimension_numbers = #tpu.dot_dimension_numbers<[1], [1], [0], [0], [0, 0, 1, 0], [], []>} : vector<8x64xbf16>, vector<8x64xbf16>, vector<8x8xf32> -> vector<8x8xf32>
    %cst_82 = arith.constant dense<0xFF800000> : vector<8xf32>
    %243 = vector.multi_reduction <maximumf>, %242, %cst_82 [1] : vector<8x8xf32> to vector<8xf32>
    %244 = vector.shape_cast %243 : vector<8xf32> to vector<8x1xf32>
    %245 = vector.broadcast %244 : vector<8x1xf32> to vector<8x8xf32>
    %246 = arith.subf %242, %245 : vector<8x8xf32>
    %247 = math.exp %246 : vector<8x8xf32>
    %cst_83 = arith.constant dense<0.000000e+00> : vector<8xf32>
    %248 = vector.multi_reduction <add>, %247, %cst_83 [1] : vector<8x8xf32> to vector<8xf32>
    %249 = vector.shape_cast %248 : vector<8xf32> to vector<8x1xf32>
    %250 = vector.broadcast %249 : vector<8x1xf32> to vector<8x8xf32>
    %251 = arith.divf %247, %250 : vector<8x8xf32>
    %c3 = arith.constant 3 : index
    %252 = memref.load %arg15[%c3] : memref<4xf32, #tpu.memory_space<smem>>
    %253 = vector.broadcast %252 : f32 to vector<8x8xf32>
    %254 = arith.mulf %251, %253 : vector<8x8xf32>
    %255 = arith.addf %229, %254 : vector<8x8xf32>
    %256 = arith.truncf %251 : vector<8x8xf32> to vector<8x8xbf16>
    %cst_84 = arith.constant dense<0.000000e+00> : vector<8x64xf32>
    %257 = tpu.matmul %256, %241, %cst_84 {dimension_numbers = #tpu.dot_dimension_numbers<[1], [0], [0], [1], [0, 0, 1, 1], [], []>} : vector<8x8xbf16>, vector<8x64xbf16>, vector<8x64xf32> -> vector<8x64xf32>
    %258 = arith.truncf %257 : vector<8x64xf32> to vector<8x64xbf16>
    %c192_85 = arith.constant 192 : index
    %c0_86 = arith.constant 0 : index
    %259 = vector.load %arg13[%c192_85, %c0_86] : memref<256x256xbf16, #tpu.memory_space<vmem>>, vector<64x256xbf16>
    %cst_87 = arith.constant dense<0.000000e+00> : vector<8x256xf32>
    %260 = tpu.matmul %258, %259, %cst_87 {dimension_numbers = #tpu.dot_dimension_numbers<[1], [0], [0], [1], [0, 0, 1, 1], [], []>} : vector<8x64xbf16>, vector<64x256xbf16>, vector<8x256xf32> -> vector<8x256xf32>
    %261 = arith.addf %235, %260 : vector<8x256xf32>
    %c0_88 = arith.constant 0 : index
    %c0_89 = arith.constant 0 : index
    %262 = vector.load %arg14[%c0_88, %c0_89] : memref<1x256xf32, #tpu.memory_space<vmem>>, vector<1x256xf32>
    %263 = vector.broadcast %262 : vector<1x256xf32> to vector<8x256xf32>
    %264 = arith.addf %261, %263 : vector<8x256xf32>
    %c0_90 = arith.constant 0 : index
    %265 = memref.load %arg16[%c0_90] : memref<1xf32, #tpu.memory_space<smem>>
    %266 = vector.broadcast %265 : f32 to vector<8x8xf32>
    %267 = arith.addf %255, %266 : vector<8x8xf32>
    %c0_91 = arith.constant 0 : index
    %c0_92 = arith.constant 0 : index
    %c0_93 = arith.constant 0 : index
    %c0_94 = arith.constant 0 : index
    %268 = vector.load %arg26[%c0_91, %c0_92, %c0_93, %c0_94] : memref<1x1x8x8xf32, #tpu.memory_space<vmem>>, vector<1x1x8x8xf32>
    %269 = vector.shape_cast %268 : vector<1x1x8x8xf32> to vector<8x8xf32>
    %270 = vector.shape_cast %267 : vector<8x8xf32> to vector<1x1x8x8xf32>
    tpu.vector_store %arg26[%c0_91, %c0_92, %c0_93, %c0_94], %270 {strides = array<i32>} : memref<1x1x8x8xf32, #tpu.memory_space<vmem>>, vector<1x1x8x8xf32>,
    %271 = arith.addf %143, %264 : vector<8x256xf32>
    %cst_95 = arith.constant dense<0.000000e+00> : vector<8xf32>
    %272 = vector.multi_reduction <add>, %271, %cst_95 [1] : vector<8x256xf32> to vector<8xf32>
    %273 = vector.shape_cast %272 : vector<8xf32> to vector<8x1xf32>
    %cst_96 = arith.constant 2.560000e+02 : f32
    %274 = vector.broadcast %cst_96 : f32 to vector<8x1xf32>
    %275 = arith.divf %273, %274 : vector<8x1xf32>
    %276 = vector.broadcast %275 : vector<8x1xf32> to vector<8x256xf32>
    %277 = arith.subf %271, %276 : vector<8x256xf32>
    %278 = arith.mulf %277, %277 : vector<8x256xf32>
    %cst_97 = arith.constant dense<0.000000e+00> : vector<8xf32>
    %279 = vector.multi_reduction <add>, %278, %cst_97 [1] : vector<8x256xf32> to vector<8xf32>
    %280 = vector.shape_cast %279 : vector<8xf32> to vector<8x1xf32>
    %cst_98 = arith.constant 0.00392156886 : f32
    %281 = vector.broadcast %cst_98 : f32 to vector<8x1xf32>
    %282 = arith.mulf %280, %281 : vector<8x1xf32>
    %c0_99 = arith.constant 0 : index
    %c0_100 = arith.constant 0 : index
    %283 = vector.load %arg17[%c0_99, %c0_100] : memref<1x256xf32, #tpu.memory_space<vmem>>, vector<1x256xf32>
    %284 = math.sqrt %282 : vector<8x1xf32>
    %cst_101 = arith.constant 9.99999997E-7 : f32
    %285 = vector.broadcast %cst_101 : f32 to vector<8x1xf32>
    %286 = arith.addf %284, %285 : vector<8x1xf32>
    %287 = vector.broadcast %286 : vector<8x1xf32> to vector<8x256xf32>
    %288 = arith.divf %277, %287 : vector<8x256xf32>
    %289 = vector.broadcast %283 : vector<1x256xf32> to vector<8x256xf32>
    %290 = arith.mulf %289, %288 : vector<8x256xf32>
    %c0_102 = arith.constant 0 : index
    %c0_103 = arith.constant 0 : index
    %291 = vector.load %arg18[%c0_102, %c0_103] : memref<1x256xf32, #tpu.memory_space<vmem>>, vector<1x256xf32>
    %292 = vector.broadcast %291 : vector<1x256xf32> to vector<8x256xf32>
    %293 = arith.addf %290, %292 : vector<8x256xf32>
    %294 = arith.truncf %293 : vector<8x256xf32> to vector<8x256xbf16>
    %c0_104 = arith.constant 0 : index
    %c0_105 = arith.constant 0 : index
    %295 = vector.load %arg19[%c0_104, %c0_105] : memref<256x512xbf16, #tpu.memory_space<vmem>>, vector<256x512xbf16>
    %cst_106 = arith.constant dense<0.000000e+00> : vector<8x512xf32>
    %296 = tpu.matmul %294, %295, %cst_106 {dimension_numbers = #tpu.dot_dimension_numbers<[1], [0], [0], [1], [0, 0, 1, 1], [], []>} : vector<8x256xbf16>, vector<256x512xbf16>, vector<8x512xf32> -> vector<8x512xf32>
    %c0_107 = arith.constant 0 : index
    %c0_108 = arith.constant 0 : index
    %297 = vector.load %arg20[%c0_107, %c0_108] : memref<1x512xf32, #tpu.memory_space<vmem>>, vector<1x512xf32>
    %298 = vector.broadcast %297 : vector<1x512xf32> to vector<8x512xf32>
    %299 = arith.addf %296, %298 : vector<8x512xf32>
    %cst_109 = arith.constant 0.000000e+00 : f32
    %300 = vector.broadcast %cst_109 : f32 to vector<8x512xf32>
    %301 = arith.maximumf %299, %300 : vector<8x512xf32>
    %302 = arith.truncf %301 : vector<8x512xf32> to vector<8x512xbf16>
    %c0_110 = arith.constant 0 : index
    %c0_111 = arith.constant 0 : index
    %303 = vector.load %arg21[%c0_110, %c0_111] : memref<512x256xbf16, #tpu.memory_space<vmem>>, vector<512x256xbf16>
    %cst_112 = arith.constant dense<0.000000e+00> : vector<8x256xf32>
    %304 = tpu.matmul %302, %303, %cst_112 {dimension_numbers = #tpu.dot_dimension_numbers<[1], [0], [0], [1], [0, 0, 1, 1], [], []>} : vector<8x512xbf16>, vector<512x256xbf16>, vector<8x256xf32> -> vector<8x256xf32>
    %c0_113 = arith.constant 0 : index
    %c0_114 = arith.constant 0 : index
    %305 = vector.load %arg22[%c0_113, %c0_114] : memref<1x256xf32, #tpu.memory_space<vmem>>, vector<1x256xf32>
    %306 = vector.broadcast %305 : vector<1x256xf32> to vector<8x256xf32>
    %307 = arith.addf %304, %306 : vector<8x256xf32>
    %308 = arith.addf %293, %307 : vector<8x256xf32>
    %cst_115 = arith.constant dense<0.000000e+00> : vector<8xf32>
    %309 = vector.multi_reduction <add>, %308, %cst_115 [1] : vector<8x256xf32> to vector<8xf32>
    %310 = vector.shape_cast %309 : vector<8xf32> to vector<8x1xf32>
    %cst_116 = arith.constant 2.560000e+02 : f32
    %311 = vector.broadcast %cst_116 : f32 to vector<8x1xf32>
    %312 = arith.divf %310, %311 : vector<8x1xf32>
    %313 = vector.broadcast %312 : vector<8x1xf32> to vector<8x256xf32>
    %314 = arith.subf %308, %313 : vector<8x256xf32>
    %315 = arith.mulf %314, %314 : vector<8x256xf32>
    %cst_117 = arith.constant dense<0.000000e+00> : vector<8xf32>
    %316 = vector.multi_reduction <add>, %315, %cst_117 [1] : vector<8x256xf32> to vector<8xf32>
    %317 = vector.shape_cast %316 : vector<8xf32> to vector<8x1xf32>
    %cst_118 = arith.constant 0.00392156886 : f32
    %318 = vector.broadcast %cst_118 : f32 to vector<8x1xf32>
    %319 = arith.mulf %317, %318 : vector<8x1xf32>
    %c0_119 = arith.constant 0 : index
    %c0_120 = arith.constant 0 : index
    %320 = vector.load %arg23[%c0_119, %c0_120] : memref<1x256xf32, #tpu.memory_space<vmem>>, vector<1x256xf32>
    %321 = math.sqrt %319 : vector<8x1xf32>
    %cst_121 = arith.constant 9.99999997E-7 : f32
    %322 = vector.broadcast %cst_121 : f32 to vector<8x1xf32>
    %323 = arith.addf %321, %322 : vector<8x1xf32>
    %324 = vector.broadcast %323 : vector<8x1xf32> to vector<8x256xf32>
    %325 = arith.divf %314, %324 : vector<8x256xf32>
    %326 = vector.broadcast %320 : vector<1x256xf32> to vector<8x256xf32>
    %327 = arith.mulf %326, %325 : vector<8x256xf32>
    %c0_122 = arith.constant 0 : index
    %c0_123 = arith.constant 0 : index
    %328 = vector.load %arg24[%c0_122, %c0_123] : memref<1x256xf32, #tpu.memory_space<vmem>>, vector<1x256xf32>
    %329 = vector.broadcast %328 : vector<1x256xf32> to vector<8x256xf32>
    %330 = arith.addf %327, %329 : vector<8x256xf32>
    %c0_124 = arith.constant 0 : index
    %c0_125 = arith.constant 0 : index
    %c0_126 = arith.constant 0 : index
    %331 = vector.load %arg25[%c0_124, %c0_125, %c0_126] : memref<1x8x256xf32, #tpu.memory_space<vmem>>, vector<1x8x256xf32>
    %332 = vector.shape_cast %331 : vector<1x8x256xf32> to vector<8x256xf32>
    %333 = vector.shape_cast %330 : vector<8x256xf32> to vector<1x8x256xf32>
    tpu.vector_store %arg25[%c0_124, %c0_125, %c0_126], %333 {strides = array<i32>} : memref<1x8x256xf32, #tpu.memory_space<vmem>>, vector<1x8x256xf32>,
    return
  }
  func.func @transform_0(%arg0: i32) -> (i32, i32, i32) {
    %c0_i32 = arith.constant 0 : i32
    %c0_i32_0 = arith.constant 0 : i32
    %c0_i32_1 = arith.constant 0 : i32
    return %arg0, %c0_i32, %c0_i32_0 : i32, i32, i32
  }
  func.func @transform_1(%arg0: i32) -> (i32, i32, i32) {
    %c0_i32 = arith.constant 0 : i32
    %c0_i32_0 = arith.constant 0 : i32
    %c0_i32_1 = arith.constant 0 : i32
    return %arg0, %c0_i32, %c0_i32_0 : i32, i32, i32
  }
  func.func @transform_2(%arg0: i32) -> (i32, i32) {
    %c0_i32 = arith.constant 0 : i32
    %c0_i32_0 = arith.constant 0 : i32
    %c0_i32_1 = arith.constant 0 : i32
    return %c0_i32, %c0_i32_0 : i32, i32
  }
  func.func @transform_3(%arg0: i32) -> (i32, i32) {
    %c0_i32 = arith.constant 0 : i32
    %c0_i32_0 = arith.constant 0 : i32
    %c0_i32_1 = arith.constant 0 : i32
    return %c0_i32, %c0_i32_0 : i32, i32
  }
  func.func @transform_4(%arg0: i32) -> (i32, i32) {
    %c0_i32 = arith.constant 0 : i32
    %c0_i32_0 = arith.constant 0 : i32
    %c0_i32_1 = arith.constant 0 : i32
    return %c0_i32, %c0_i32_0 : i32, i32
  }
  func.func @transform_5(%arg0: i32) -> (i32, i32) {
    %c0_i32 = arith.constant 0 : i32
    %c0_i32_0 = arith.constant 0 : i32
    %c0_i32_1 = arith.constant 0 : i32
    return %c0_i32, %c0_i32_0 : i32, i32
  }
  func.func @transform_6(%arg0: i32) -> (i32, i32) {
    %c0_i32 = arith.constant 0 : i32
    %c0_i32_0 = arith.constant 0 : i32
    %c0_i32_1 = arith.constant 0 : i32
    return %c0_i32, %c0_i32_0 : i32, i32
  }
  func.func @transform_7(%arg0: i32) -> (i32, i32) {
    %c0_i32 = arith.constant 0 : i32
    %c0_i32_0 = arith.constant 0 : i32
    %c0_i32_1 = arith.constant 0 : i32
    return %c0_i32, %c0_i32_0 : i32, i32
  }
  func.func @transform_8(%arg0: i32) -> (i32, i32) {
    %c0_i32 = arith.constant 0 : i32
    %c0_i32_0 = arith.constant 0 : i32
    %c0_i32_1 = arith.constant 0 : i32
    return %c0_i32, %c0_i32_0 : i32, i32
  }
  func.func @transform_9(%arg0: i32) -> (i32, i32) {
    %c0_i32 = arith.constant 0 : i32
    %c0_i32_0 = arith.constant 0 : i32
    %c0_i32_1 = arith.constant 0 : i32
    return %c0_i32, %c0_i32_0 : i32, i32
  }
  func.func @transform_10(%arg0: i32) -> (i32, i32) {
    %c0_i32 = arith.constant 0 : i32
    %c0_i32_0 = arith.constant 0 : i32
    %c0_i32_1 = arith.constant 0 : i32
    return %c0_i32, %c0_i32_0 : i32, i32
  }
  func.func @transform_11(%arg0: i32) -> (i32, i32) {
    %c0_i32 = arith.constant 0 : i32
    %c0_i32_0 = arith.constant 0 : i32
    %c0_i32_1 = arith.constant 0 : i32
    return %c0_i32, %c0_i32_0 : i32, i32
  }
  func.func @transform_12(%arg0: i32) -> (i32, i32) {
    %c0_i32 = arith.constant 0 : i32
    %c0_i32_0 = arith.constant 0 : i32
    %c0_i32_1 = arith.constant 0 : i32
    return %c0_i32, %c0_i32_0 : i32, i32
  }
  func.func @transform_13(%arg0: i32) -> (i32, i32) {
    %c0_i32 = arith.constant 0 : i32
    %c0_i32_0 = arith.constant 0 : i32
    %c0_i32_1 = arith.constant 0 : i32
    return %c0_i32, %c0_i32_0 : i32, i32
  }
  func.func @transform_14(%arg0: i32) -> i32 {
    %c0_i32 = arith.constant 0 : i32
    %c0_i32_0 = arith.constant 0 : i32
    return %c0_i32 : i32
  }
  func.func @transform_15(%arg0: i32) -> i32 {
    %c0_i32 = arith.constant 0 : i32
    %c0_i32_0 = arith.constant 0 : i32
    return %c0_i32 : i32
  }
  func.func @transform_16(%arg0: i32) -> (i32, i32) {
    %c0_i32 = arith.constant 0 : i32
    %c0_i32_0 = arith.constant 0 : i32
    %c0_i32_1 = arith.constant 0 : i32
    return %c0_i32, %c0_i32_0 : i32, i32
  }
  func.func @transform_17(%arg0: i32) -> (i32, i32) {
    %c0_i32 = arith.constant 0 : i32
    %c0_i32_0 = arith.constant 0 : i32
    %c0_i32_1 = arith.constant 0 : i32
    return %c0_i32, %c0_i32_0 : i32, i32
  }
  func.func @transform_18(%arg0: i32) -> (i32, i32) {
    %c0_i32 = arith.constant 0 : i32
    %c0_i32_0 = arith.constant 0 : i32
    %c0_i32_1 = arith.constant 0 : i32
    return %c0_i32, %c0_i32_0 : i32, i32
  }
  func.func @transform_19(%arg0: i32) -> (i32, i32) {
    %c0_i32 = arith.constant 0 : i32
    %c0_i32_0 = arith.constant 0 : i32
    %c0_i32_1 = arith.constant 0 : i32
    return %c0_i32, %c0_i32_0 : i32, i32
  }
  func.func @transform_20(%arg0: i32) -> (i32, i32) {
    %c0_i32 = arith.constant 0 : i32
    %c0_i32_0 = arith.constant 0 : i32
    %c0_i32_1 = arith.constant 0 : i32
    return %c0_i32, %c0_i32_0 : i32, i32
  }
  func.func @transform_21(%arg0: i32) -> (i32, i32) {
    %c0_i32 = arith.constant 0 : i32
    %c0_i32_0 = arith.constant 0 : i32
    %c0_i32_1 = arith.constant 0 : i32
    return %c0_i32, %c0_i32_0 : i32, i32
  }
  func.func @transform_22(%arg0: i32) -> (i32, i32) {
    %c0_i32 = arith.constant 0 : i32
    %c0_i32_0 = arith.constant 0 : i32
    %c0_i32_1 = arith.constant 0 : i32
    return %c0_i32, %c0_i32_0 : i32, i32
  }
  func.func @transform_23(%arg0: i32) -> (i32, i32) {
    %c0_i32 = arith.constant 0 : i32
    %c0_i32_0 = arith.constant 0 : i32
    %c0_i32_1 = arith.constant 0 : i32
    return %c0_i32, %c0_i32_0 : i32, i32
  }
  func.func @transform_24(%arg0: i32) -> (i32, i32, i32) {
    %c0_i32 = arith.constant 0 : i32
    %c0_i32_0 = arith.constant 0 : i32
    %c0_i32_1 = arith.constant 0 : i32
    return %arg0, %c0_i32, %c0_i32_0 : i32, i32, i32
  }
  func.func @transform_25(%arg0: i32) -> (i32, i32, i32, i32) {
    %c0_i32 = arith.constant 0 : i32
    %c0_i32_0 = arith.constant 0 : i32
    %c0_i32_1 = arith.constant 0 : i32
    %c0_i32_2 = arith.constant 0 : i32
    return %arg0, %c0_i32, %c0_i32_0, %c0_i32_1 : i32, i32, i32, i32
  }
}

</mosaic_0001>

<bundles_post_ra>
// kernel: _lambda_.1
= control target key start
LH: loop header
LB: loop body
LE: loop exit
PB: predicated region body
PF: predicated region fallthrough
CT: control target
= control target key end

     0   :  { %s8421_s0 = inlined_call_operand.vmem [shape: f32[2,8,256], index: 0, kind: input, shape index: {}]   ;;  %s8422_s1 = inlined_call_operand.vmem [shape: f32[2,8,256], index: 1, kind: input, shape index: {}]   ;;  %s8423_s2 = inlined_call_operand.vmem [shape: bf16[256,768], index: 2, kind: input, shape index: {}]   ;;  %s8424_s3 = inlined_call_operand.vmem [shape: f32[1,768], index: 3, kind: input, shape index: {}]   ;;  %s8425_s4 = inlined_call_operand.vmem [shape: bf16[256,256], index: 4, kind: input, shape index: {}]   ;;  %s8426_s5 = inlined_call_operand.vmem [shape: f32[1,256], index: 5, kind: input, shape index: {}]   ;;  %s8427_s6 = inlined_call_operand.vmem [shape: f32[1,256], index: 6, kind: input, shape index: {}, may-alias: {6,16,22}]   ;;  %s8428_s7 = inlined_call_operand.vmem [shape: f32[1,256], index: 7, kind: input, shape index: {}, may-alias: {7,17,23}]   ;;  %s8429_s8 = inlined_call_operand.vmem [shape: bf16[256,256], index: 8, kind: input, shape index: {}]   ;;  %s8430_s9 = inlined_call_operand.vmem [shape: f32[1,256], index: 9, kind: input, shape index: {}]   ;;  %s8431_s10 = inlined_call_operand.vmem [shape: bf16[256,512], index: 10, kind: input, shape index: {}]   ;;  %s8432_s11 = inlined_call_operand.vmem [shape: f32[1,512], index: 11, kind: input, shape index: {}]   ;;  %s8433_s12 = inlined_call_operand.vmem [shape: bf16[256,256], index: 12, kind: input, shape index: {}]   ;;  %s8434_s13 = inlined_call_operand.vmem [shape: f32[1,256], index: 13, kind: input, shape index: {}]   ;;  %s8435_s14 = inlined_call_operand.vmem [shape: f32[4], index: 14, kind: input, shape index: {}]   ;;  %s8436_s15 = inlined_call_operand.<no memory space> [shape: f32[1], index: 15, kind: input, shape index: {}]   ;;  %s8437_s16 = inlined_call_operand.vmem [shape: f32[1,256], index: 16, kind: input, shape index: {}, may-alias: {6,16,22}]   ;;  %s8438_s17 = inlined_call_operand.vmem [shape: f32[1,256], index: 17, kind: input, shape index: {}, may-alias: {7,17,23}]   ;;  %s8439_s18 = inlined_call_operand.vmem [shape: bf16[256,512], index: 18, kind: input, shape index: {}]   ;;  %s8440_s19 = inlined_call_operand.vmem [shape: f32[1,512], index: 19, kind: input, shape index: {}]   ;;  %s8441_s20 = inlined_call_operand.vmem [shape: bf16[512,256], index: 20, kind: input, shape index: {}]   ;;  %s8442_s21 = inlined_call_operand.vmem [shape: f32[1,256], index: 21, kind: input, shape index: {}]   ;;  %s8443_s22 = inlined_call_operand.vmem [shape: f32[1,256], index: 22, kind: input, shape index: {}, may-alias: {6,16,22}]   ;;  %s8444_s23 = inlined_call_operand.vmem [shape: f32[1,256], index: 23, kind: input, shape index: {}, may-alias: {7,17,23}]   ;;  %s8445_s24 = inlined_call_operand.hbm [shape: f32[2,8,256], index: 24, kind: output, shape index: {0}]   ;;  %s8446_s25 = inlined_call_operand.hbm [shape: f32[2,1,8,8], index: 25, kind: output, shape index: {1}]  }
   0x1   :  { %8462 = sst [smem:[#allocation18_spill]] %s8421_s0 }
   0x2   :  { %8463 = sst [smem:[#allocation19_spill]] %s8422_s1 }
   0x3   :  { %8464 = sst [smem:[#allocation20_spill]] %s8423_s2 }
   0x4   :  { %8465 = sst [smem:[#allocation21_spill]] %s8424_s3 }
   0x5   :  { %8466 = sst [smem:[#allocation22_spill]] %s8425_s4 }
   0x6   :  { %8467 = sst [smem:[#allocation23_spill]] %s8426_s5 }
   0x7   :  { %8468 = sst [smem:[#allocation24_spill]] %s8427_s6 }
   0x8   :  { %8469 = sst [smem:[#allocation25_spill]] %s8428_s7 }
   0x9   :  { %8470 = sst [smem:[#allocation26_spill]] %s8429_s8 }
   0xa   :  { %8471 = sst [smem:[#allocation27_spill]] %s8430_s9 }
   0xb   :  { %8472 = sst [smem:[#allocation28_spill]] %s8435_s14 }
   0xc   :  { %8473 = sst [smem:[#allocation29_spill]] %s8444_s23 }
   0xd   :  { %8474 = sst [smem:[#allocation30_spill]] %s8445_s24 }
   0xe   :  { %31 = sst [smem:[#allocation2]] %s8436_s15 }
   0xf   :  { %32 = vsyncpa [#allocation5], 0 }
  0x10   :  { %33 = vsyncpa [#allocation4], 0 }
  0x11   :  { %35 = vsyncpa [#allocation4 + $0x1], 0 }
  0x12   :  { %36 = vsyncpa [#allocation8], 0 }
  0x13   :  { %38 = vsyncpa [#allocation8 + $0x1], 0  ;;  %s6758_s6 = smov 0   ;;  %s6760_s30 = smov 0  }
  0x14   :  { %s6762_s7 = smov 0   ;;  %s6764_s3 = smov 0  }
  0x15 LB: > { %8475 = sst [smem:[#allocation12_spill]] %s6604_s6  ;;  %s6779_s15 = sadd.s32 4294967295, %s6616_s3   ;;  %s6616_s3 = sphi %s6764_s3, %s8502_s3   ;;  %s6612_s7 = sphi %s6762_s7, %s8504_s7   ;;  %s6608_s30 = sphi %s6760_s30, %s8506_s30   ;;  %s6604_s6 = sphi %s6758_s6, %s8505_s6  }
  0x16   : > { %8476 = sst [smem:[#allocation13_spill]] %s6612_s7  ;;  %s5261_s26 = sadd.s32 4294967294, %s6616_s3  }
  0x17   : > { %8477 = sst [smem:[#allocation14_spill]] %s6616_s3  ;;  %s6783_s1 = sadd.s32 1, %s6616_s3  }
  0x18   : > { %8478 = sst [smem:[#allocation15_spill]] %s6783_s1  ;;  %s565_s8 = sadd.s32 1, %s6612_s7 }
  0x19   : > { %s562_s27 = ssub.s32 %s6616_s3, %s6783_s1  ;;  %p575_p0 = scmp.ne.s32.totalorder %s6612_s7, %s6608_s30 }
  0x1a   : > { %p563_p1 = scmp.eq.s32.totalorder %s562_s27, 0  ;;  %p576_p2 = scmp.eq.s32.totalorder %s6779_s15, 1 }
  0x1b   : > { %p581_p3 = scmp.ne.s32.totalorder %s6608_s30, %s6604_s6  ;;  %p582_p4 = scmp.eq.s32.totalorder %s5261_s26, 1 }
  0x1c   : > { %s6794_s4 = scalar_select %p563_p1, %s6612_s7, %s565_s8  }
  0x1d   : > { %p6796_p5 = por %p576_p2, %p575_p0  ;;  %p6800_p6 = por %p582_p4, %p581_p3 }
  0x1e   : > { %8479 = sst [smem:[#allocation16_spill]] %s6794_s4  ;;  %p5262_p7 = scmp.ge.s32.totalorder %s6616_s3, 1 }
  0x1f   : > { %s8481_s9 = scalar_select %p6800_p6, 1, 0 }
  0x20   : > { %p615_p8 = scmp.lt.s32.totalorder %s6616_s3, 3  ;;  %p5841_p9 = scmp.eq.s32.totalorder %s6779_s15, 0 }
  0x21   : > { %8482 = sst [smem:[#allocation17_spill]] %s8481_s9 }
  0x22   : > { %p6807_p10 = pnand %p5262_p7, %p615_p8  ;;  %s8484_s14 = sld [smem:[#allocation28_spill]] }
  0x24   : > { %p5830_p11 = pneg %p6807_p10 }
  0x26   : > { %p5831_p12 = pnand %p5841_p9, %p5830_p11 }
  0x28   : > { %s664_s2 = sshll.u32 %s8484_s14, 4  ;;  %p6505_p0 = pneg %p5831_p12  ;;  %s665_s2 = int_to_ptr.vmem [resolvable:$true] %s664_s2 }
  0x29   : > { %s6503_s26 = scalar_lea.vmem %s665_s2, 16  ;;  %p6511_p3 = scmp.lt.s32.totalorder %s665_s2, %s665_s2 }
  0x2a   : > { %p6504_p13 = scmp.ne.s32.totalorder %s665_s2, %s6503_s26  ;;  %p6512_p4 = scmp.lt.s32.totalorder %s6503_s26, %s6503_s26 }
  0x2c   : > { %p6506_p1 = pnand %p6505_p0, %p6504_p13  ;;  %p6513_p7 = por %p6512_p4, %p6511_p3 }
  0x2e   : > { %p6507_p2 = pneg %p6506_p1 }
  0x30   : > { %p6514_p8 = pnand %p6513_p7, %p6507_p2 }
  0x32   : > { %6517 = shalt.err (!%p6514_p8)
}
  0x33   : > { %s6618_s8 = smov [#allocation3]   ;;  %720 = sbr.rel (%p6807_p10) target bundleno = 6379 (0x18eb), region = 116 }
  0x34   : > { %5833 = dma.vmem_to_smem (!%p5831_p12), %s665_s2, 16, %s6618_s8, [#allocation5]  }
  0x3a   : > { %6591 = dma.done.wait (%p5841_p9), [#allocation5], 16  }
  0x3b   : > { %6593 = vsyncadd (%p5841_p9), [#allocation5], 4294967280 }
  0x3c   : > { %726 = sfence }
  0x3d   : > { %s8485_s29 = sld [smem:[#allocation20_spill]]  ;;  %p799_p9 = scmp.lt.s32.totalorder %s6779_s15, 1  ;;  %vm6620_vm0 = vmmov 0   ;;  %vm1548_vm1 = vcmask 523264   ;;  %vm1601_vm3 = vcmask 64512   ;;  %vm1617_vm4 = vcmask 1043456  }
  0x3e   : > { %s8486_s5 = sld [smem:[#allocation18_spill]]  ;;  %s8487_s8 = sld [smem:[#allocation21_spill]] }
  0x3f   : > { %s6931_s27 = scalar_select %p799_p9, %s6779_s15, 1 }
  0x40   : > { %s8456_s4 = smov 64   ;;  %s8488_s26 = smov 64  }
  0x41   : > { %s8455_s1 = sshll.u32 %s6931_s27, 4  ;;  %s8490_s0 = sld [smem:[#allocation23_spill]] }
  0x42   : > { %s8495_s14 = sld [smem:[#allocation25_spill]]  ;;  %s3240_s9 = sld [smem:[#allocation3]] }
  0x43   : > { %v5881_v0 = vld [vmem:[%s8485_s29 + $0xc] ss:$24 sps:$4 sm:$0xff]   ;;  %v5883_v1 = vld [vmem:[%s8485_s29 + $0x8] ss:$24 sps:$4 sm:$0xff]   ;;  %v5884_v2 = vld [vmem:[%s8485_s29 + $0x3c] ss:$24 sps:$4 sm:$0xff]  }
  0x44   : > { %1463 = vmatprep.subr.bf16.mxu1 %v5881_v0  ;;  %v5886_v3 = vld [vmem:[%s8485_s29 + $0x4] ss:$24 sps:$4 sm:$0xff]   ;;  %v5888_v4 = vld [vmem:[%s8485_s29 + $0x38] ss:$24 sps:$4 sm:$0xff]   ;;  %v5892_v7 = vld [vmem:[%s8485_s29 + $0x34] ss:$24 sps:$4 sm:$0xff]   ;;  %s6960_s7 = scalar_lea.vmem %s8486_s5, %s8455_s1 }
  0x45   : > { %1464 = vmatpush1.bf16.msra.mxu1 %v5883_v1  ;;  %v5889_v5 = vld [vmem:[%s8485_s29] ss:$24 sps:$4 sm:$0xff]   ;;  %v5890_v6 = vld [vmem:[%s8485_s29 + $0x6c] ss:$24 sps:$4 sm:$0xff]   ;;  %1422 = vmatprep.subr.bf16.mxu0 %v5886_v3  ;;  %v5895_v8 = vld [vmem:[%s8485_s29 + $0x30] ss:$24 sps:$4 sm:$0xff]  }
  0x46   : > { %1465 = vmatprep.subr.bf16.mxu1 %v5884_v2  ;;  %1423 = vmatpush1.bf16.msra.mxu0 %v5889_v5  ;;  %v5894_v9 = vld [vmem:[%s8485_s29 + $0x68] ss:$24 sps:$4 sm:$0xff]   ;;  %v5896_v10 = vld [vmem:[%s8485_s29 + $0x9c] ss:$24 sps:$4 sm:$0xff]   ;;  %v5900_v13 = vld [vmem:[%s8485_s29 + $0x98] ss:$24 sps:$4 sm:$0xff]   ;;  %v912_v5 = vlaneseq }
  0x47   : > { %1424 = vmatprep.subr.bf16.mxu0 %v5892_v7  ;;  %v5898_v11 = vld [vmem:[%s8485_s29 + $0x64] ss:$24 sps:$4 sm:$0xff]   ;;  %v5901_v12 = vld [vmem:[%s8485_s29 + $0x60] ss:$24 sps:$4 sm:$0xff]   ;;  %v5904_v14 = vld [vmem:[%s8485_s29 + $0x94] ss:$24 sps:$4 sm:$0xff]  }
  0x48   : > { %v5902_v15 = vld [vmem:[%s8485_s29 + $0xcc] ss:$24 sps:$4 sm:$0xff]   ;;  %v5906_v16 = vld [vmem:[%s8485_s29 + $0xc8] ss:$24 sps:$4 sm:$0xff]   ;;  %v5908_v19 = vld [vmem:[%s8485_s29 + $0xfc] ss:$24 sps:$4 sm:$0xff]  }
  0x49   : > { %1466 = vmatpush1.bf16.msra.mxu1 %v5888_v4  ;;  %v5907_v17 = vld [vmem:[%s8485_s29 + $0x90] ss:$24 sps:$4 sm:$0xff]   ;;  %v5910_v18 = vld [vmem:[%s8485_s29 + $0xc4] ss:$24 sps:$4 sm:$0xff]   ;;  %v5913_v20 = vld [vmem:[%s8485_s29 + $0xc0] ss:$24 sps:$4 sm:$0xff]  }
  0x4a   : > { %1467 = vmatprep.subr.bf16.mxu1 %v5890_v6  ;;  %1425 = vmatpush1.bf16.msra.mxu0 %v5895_v8  ;;  %v5912_v21 = vld [vmem:[%s8485_s29 + $0xf8] ss:$24 sps:$4 sm:$0xff]   ;;  %v5916_v22 = vld [vmem:[%s8485_s29 + $0xf4] ss:$24 sps:$4 sm:$0xff]   ;;  %v5918_v24 = vld [vmem:[%s8485_s29 + $0x128] ss:$24 sps:$4 sm:$0xff]  }
  0x4b   : > { %1426 = vmatprep.subr.bf16.mxu0 %v5898_v11  ;;  %v5914_v23 = vld [vmem:[%s8485_s29 + $0x12c] ss:$24 sps:$4 sm:$0xff]   ;;  %v5919_v25 = vld [vmem:[%s8485_s29 + $0xf0] ss:$24 sps:$4 sm:$0xff]   ;;  %v5920_v27 = vld [vmem:[%s8485_s29 + $0x15c] ss:$24 sps:$4 sm:$0xff]  }
  0x4c   : > { %v5922_v26 = vld [vmem:[%s8485_s29 + $0x124] ss:$24 sps:$4 sm:$0xff]   ;;  %v5925_v28 = vld [vmem:[%s8485_s29 + $0x120] ss:$24 sps:$4 sm:$0xff]   ;;  %v5928_v30 = vld [vmem:[%s8485_s29 + $0x154] ss:$24 sps:$4 sm:$0xff]  }
  0x4d   : > { %1468 = vmatpush1.bf16.msra.mxu1 %v5894_v9  ;;  %v5924_v29 = vld [vmem:[%s8485_s29 + $0x158] ss:$24 sps:$4 sm:$0xff]   ;;  %v5926_v31 = vld [vmem:[%s8485_s29 + $0x18c] ss:$24 sps:$4 sm:$0xff]   ;;  %v5930_v32 = vld [vmem:[%s8485_s29 + $0x188] ss:$24 sps:$4 sm:$0xff]  }
  0x4e   : > { %1469 = vmatprep.subr.bf16.mxu1 %v5896_v10  ;;  %1427 = vmatpush1.bf16.msra.mxu0 %v5901_v12  ;;  %v5931_v33 = vld [vmem:[%s8485_s29 + $0x150] ss:$24 sps:$4 sm:$0xff]   ;;  %v5934_v34 = vld [vmem:[%s8485_s29 + $0x184] ss:$24 sps:$4 sm:$0xff]   ;;  %v5937_v36 = vld [vmem:[%s8485_s29 + $0x180] ss:$24 sps:$4 sm:$0xff]  }
  0x4f   : > { %1428 = vmatprep.subr.bf16.mxu0 %v5904_v14  ;;  %v5932_v35 = vld [vmem:[%s8485_s29 + $0x1bc] ss:$24 sps:$4 sm:$0xff]   ;;  %v5936_v37 = vld [vmem:[%s8485_s29 + $0x1b8] ss:$24 sps:$4 sm:$0xff]   ;;  %v5938_v39 = vld [vmem:[%s8485_s29 + $0x1ec] ss:$24 sps:$4 sm:$0xff]  }
  0x50   : > { %v5940_v38 = vld [vmem:[%s8485_s29 + $0x1b4] ss:$24 sps:$4 sm:$0xff]   ;;  %v5942_v40 = vld [vmem:[%s8485_s29 + $0x1e8] ss:$24 sps:$4 sm:$0xff]   ;;  %v5946_v42 = vld [vmem:[%s8485_s29 + $0x1e4] ss:$24 sps:$4 sm:$0xff]  }
  0x51   : > { %1470 = vmatpush1.bf16.msra.mxu1 %v5900_v13  ;;  %v5943_v41 = vld [vmem:[%s8485_s29 + $0x1b0] ss:$24 sps:$4 sm:$0xff]   ;;  %v5944_v43 = vld [vmem:[%s8485_s29 + $0x21c] ss:$24 sps:$4 sm:$0xff]   ;;  %v5949_v46 = vld [vmem:[%s8485_s29 + $0x1e0] ss:$24 sps:$4 sm:$0xff]  }
  0x52   : > { %1471 = vmatprep.subr.bf16.mxu1 %v5902_v15  ;;  %1429 = vmatpush1.bf16.msra.mxu0 %v5907_v17  ;;  %v5948_v44 = vld [vmem:[%s8485_s29 + $0x218] ss:$24 sps:$4 sm:$0xff]   ;;  %v811_v45 = vld [vmem:[%s6960_s7 + $0x8] sm:$0xff]  ;;  %v5958_v52 = vld [vmem:[%s8485_s29 + $0x244] ss:$24 sps:$4 sm:$0xff]   ;;  %v6619_v4 = vmov 0.0  }
  0x53   : > { %1430 = vmatprep.subr.bf16.mxu0 %v5910_v18  ;;  %v813_v47 = vpack.c.bf16 %v811_v45, %v811_v45  ;;  %v5950_v48 = vld [vmem:[%s8485_s29 + $0x24c] ss:$24 sps:$4 sm:$0xff]   ;;  %v5955_v50 = vld [vmem:[%s8485_s29 + $0x210] ss:$24 sps:$4 sm:$0xff]   ;;  %v5956_v53 = vld [vmem:[%s8485_s29 + $0x27c] ss:$24 sps:$4 sm:$0xff]  }
  0x54   : > { %v5952_v49 = vld [vmem:[%s8485_s29 + $0x214] ss:$24 sps:$4 sm:$0xff]   ;;  %v5954_v51 = vld [vmem:[%s8485_s29 + $0x248] ss:$24 sps:$4 sm:$0xff]   ;;  %v5960_v55 = vld [vmem:[%s8485_s29 + $0x278] ss:$24 sps:$4 sm:$0xff]  }
  0x55   : > { %1472 = vmatpush1.bf16.msra.mxu1 %v5906_v16  ;;  %1495 = vmatprep.mubr.bf16.mxu1 %v813_v47  ;;  %v5961_v54 = vld [vmem:[%s8485_s29 + $0x240] ss:$24 sps:$4 sm:$0xff]   ;;  %v5964_v56 = vld [vmem:[%s8485_s29 + $0x274] ss:$24 sps:$4 sm:$0xff]   ;;  %v5967_v58 = vld [vmem:[%s8485_s29 + $0x270] ss:$24 sps:$4 sm:$0xff]  }
  0x56   : > { %1473 = vmatprep.subr.bf16.mxu1 %v5908_v19  ;;  %1431 = vmatpush1.bf16.msra.mxu0 %v5913_v20  ;;  %v5962_v57 = vld [vmem:[%s8485_s29 + $0x2ac] ss:$24 sps:$4 sm:$0xff]   ;;  %v5966_v59 = vld [vmem:[%s8485_s29 + $0x2a8] ss:$24 sps:$4 sm:$0xff]   ;;  %v5968_v61 = vld [vmem:[%s8485_s29 + $0x2dc] ss:$24 sps:$4 sm:$0xff]  }
  0x57   : > { %1432 = vmatprep.subr.bf16.mxu0 %v5916_v22  ;;  %1454 = vmatprep.mubr.bf16.mxu0 %v813_v47  ;;  %v5970_v60 = vld [vmem:[%s8485_s29 + $0x2a4] ss:$24 sps:$4 sm:$0xff]   ;;  %v5973_v62 = vld [vmem:[%s8485_s29 + $0x2a0] ss:$24 sps:$4 sm:$0xff]   ;;  %v5974_v1 = vld [vmem:[%s8485_s29 + $0x2d4] ss:$24 sps:$4 sm:$0xff]  }
  0x58   : > { %v5972_v63 = vld [vmem:[%s8485_s29 + $0x2d8] ss:$24 sps:$4 sm:$0xff]   ;;  %v810_v0 = vld [vmem:[%s6960_s7] sm:$0xff]  ;;  %v7038_v6 = vshrl.u32 %v912_v5, 7  ;;  %v6009_v45 = vld [vmem:[%s8485_s29 + $0x1f4] ss:$24 sps:$4 sm:$0xff]  }
  0x59   : > { %1474 = vmatpush1.bf16.msra.mxu1 %v5912_v21  ;;  %v5976_v2 = vld [vmem:[%s8485_s29 + $0x2d0] ss:$24 sps:$4 sm:$0xff]   ;;  %v7030_v3 = vpack.c.bf16 %v810_v0, %v810_v0  ;;  %v7046_v8 = vld [vmem:[%s8487_s8] sm:$0x3f]  ;;  %s8489_s1 = sld [smem:[#allocation22_spill]]  ;;  %s8491_s5 = sld [smem:[#allocation26_spill]] }
  0x5a   : > { %1475 = vmatprep.subr.bf16.mxu1 %v5914_v23  ;;  %1433 = vmatpush1.bf16.msra.mxu0 %v5919_v25  ;;  %v7041_v7 = vsub.s32 2, %v7038_v6  ;;  %v7049_v9 = vsub.s32 0, %v7038_v6  ;;  %v5977_v25 = vld [vmem:[%s8485_s29 + $0x10] ss:$24 sps:$4 sm:$0xff]   ;;  %s5533_s6 = sld [smem:[#allocation3 + $0x2]]  ;;  %s7814_s2 = sand.u32 1, %s6608_s30  }
  0x5b   : > { %1434 = vmatprep.subr.bf16.mxu0 %v5922_v26  ;;  %v5979_v26 = vld [vmem:[%s8485_s29 + $0x14] ss:$24 sps:$4 sm:$0xff]   ;;  %s5688_s24 = sshll.u32 %s6779_s15, 7 }
  0x5c   : > { %v923_v10 = vrot.slane %v7046_v8, %v7041_v7  ;;  %v915_v12 = vrot.slane %v7046_v8, %v7049_v9 }
  0x5d   : > { %1476 = vmatpush1.bf16.msra.mxu1 %v5918_v24 }
  0x5e   : > { %1477 = vmatprep.subr.bf16.mxu1 %v5920_v27  ;;  %1435 = vmatpush1.bf16.msra.mxu0 %v5925_v28  ;;  %v5982_v27 = vld [vmem:[%s8485_s29 + $0x44] ss:$24 sps:$4 sm:$0xff]   ;;  %v5980_v28 = vld [vmem:[%s8485_s29 + $0x40] ss:$24 sps:$4 sm:$0xff]  }
  0x5f   : > { %1436 = vmatprep.subr.bf16.mxu0 %v5928_v30  ;;  %v5983_v30 = vld [vmem:[%s8485_s29 + $0x70] ss:$24 sps:$4 sm:$0xff]  }
  0x61   : > { %1478 = vmatpush1.bf16.msra.mxu1 %v5924_v29  ;;  %v5985_v29 = vld [vmem:[%s8485_s29 + $0x74] ss:$24 sps:$4 sm:$0xff]  }
  0x62   : > { %1479 = vmatprep.subr.bf16.mxu1 %v5926_v31  ;;  %1437 = vmatpush1.bf16.msra.mxu0 %v5931_v33  ;;  %v5988_v31 = vld [vmem:[%s8485_s29 + $0xa4] ss:$24 sps:$4 sm:$0xff]   ;;  %v5991_v33 = vld [vmem:[%s8485_s29 + $0xd4] ss:$24 sps:$4 sm:$0xff]  }
  0x63   : > { %1438 = vmatprep.subr.bf16.mxu0 %v5934_v34  ;;  %v5989_v34 = vld [vmem:[%s8485_s29 + $0xd0] ss:$24 sps:$4 sm:$0xff]  }
  0x65   : > { %1480 = vmatpush1.bf16.msra.mxu1 %v5930_v32  ;;  %v5986_v32 = vld [vmem:[%s8485_s29 + $0xa0] ss:$24 sps:$4 sm:$0xff]  }
  0x66   : > { %1481 = vmatprep.subr.bf16.mxu1 %v5932_v35  ;;  %1439 = vmatpush1.bf16.msra.mxu0 %v5937_v36  ;;  %v5994_v35 = vld [vmem:[%s8485_s29 + $0x104] ss:$24 sps:$4 sm:$0xff]   ;;  %v5992_v36 = vld [vmem:[%s8485_s29 + $0x100] ss:$24 sps:$4 sm:$0xff]  }
  0x67   : > { %1440 = vmatprep.subr.bf16.mxu0 %v5940_v38  ;;  %v5995_v38 = vld [vmem:[%s8485_s29 + $0x130] ss:$24 sps:$4 sm:$0xff]  }
  0x69   : > { %1482 = vmatpush1.bf16.msra.mxu1 %v5936_v37  ;;  %v5997_v37 = vld [vmem:[%s8485_s29 + $0x134] ss:$24 sps:$4 sm:$0xff]  }
  0x6a   : > { %1483 = vmatprep.subr.bf16.mxu1 %v5938_v39  ;;  %1441 = vmatpush1.bf16.msra.mxu0 %v5943_v41  ;;  %v6000_v39 = vld [vmem:[%s8485_s29 + $0x164] ss:$24 sps:$4 sm:$0xff]   ;;  %v6003_v41 = vld [vmem:[%s8485_s29 + $0x194] ss:$24 sps:$4 sm:$0xff]  }
  0x6b   : > { %1442 = vmatprep.subr.bf16.mxu0 %v5946_v42  ;;  %v6001_v42 = vld [vmem:[%s8485_s29 + $0x190] ss:$24 sps:$4 sm:$0xff]  }
  0x6d   : > { %1484 = vmatpush1.bf16.msra.mxu1 %v5942_v40  ;;  %v5998_v40 = vld [vmem:[%s8485_s29 + $0x160] ss:$24 sps:$4 sm:$0xff]  }
  0x6e   : > { %1485 = vmatprep.subr.bf16.mxu1 %v5944_v43  ;;  %1443 = vmatpush1.bf16.msra.mxu0 %v5949_v46  ;;  %v6006_v43 = vld [vmem:[%s8485_s29 + $0x1c4] ss:$24 sps:$4 sm:$0xff]   ;;  %v6007_v46 = vld [vmem:[%s8485_s29 + $0x1f0] ss:$24 sps:$4 sm:$0xff]  }
  0x6f   : > { %1444 = vmatprep.subr.bf16.mxu0 %v5952_v49  ;;  %v6015_v49 = vld [vmem:[%s8485_s29 + $0x254] ss:$24 sps:$4 sm:$0xff]  }
  0x71   : > { %1486 = vmatpush1.bf16.msra.mxu1 %v5948_v44  ;;  %v6004_v44 = vld [vmem:[%s8485_s29 + $0x1c0] ss:$24 sps:$4 sm:$0xff]  }
  0x72   : > { %1487 = vmatprep.subr.bf16.mxu1 %v5950_v48  ;;  %1445 = vmatpush1.bf16.msra.mxu0 %v5955_v50  ;;  %v6010_v48 = vld [vmem:[%s8485_s29 + $0x220] ss:$24 sps:$4 sm:$0xff]   ;;  %v6013_v50 = vld [vmem:[%s8485_s29 + $0x250] ss:$24 sps:$4 sm:$0xff]  }
  0x73   : > { %1446 = vmatprep.subr.bf16.mxu0 %v5958_v52  ;;  %v6016_v52 = vld [vmem:[%s8485_s29 + $0x280] ss:$24 sps:$4 sm:$0xff]  }
  0x75   : > { %1488 = vmatpush1.bf16.msra.mxu1 %v5954_v51  ;;  %v6018_v51 = vld [vmem:[%s8485_s29 + $0x284] ss:$24 sps:$4 sm:$0xff]  }
  0x76   : > { %1489 = vmatprep.subr.bf16.mxu1 %v5956_v53  ;;  %1447 = vmatpush1.bf16.msra.mxu0 %v5961_v54  ;;  %v6021_v53 = vld [vmem:[%s8485_s29 + $0x2b4] ss:$24 sps:$4 sm:$0xff]   ;;  %v6019_v54 = vld [vmem:[%s8485_s29 + $0x2b0] ss:$24 sps:$4 sm:$0xff]  }
  0x77   : > { %1448 = vmatprep.subr.bf16.mxu0 %v5964_v56  ;;  %v6022_v56 = vld [vmem:[%s8485_s29 + $0x2e0] ss:$24 sps:$4 sm:$0xff]  }
  0x79   : > { %1490 = vmatpush1.bf16.msra.mxu1 %v5960_v55  ;;  %v6024_v55 = vld [vmem:[%s8485_s29 + $0x2e4] ss:$24 sps:$4 sm:$0xff]  }
  0x7a   : > { %1491 = vmatprep.subr.bf16.mxu1 %v5962_v57  ;;  %1449 = vmatpush1.bf16.msra.mxu0 %v5967_v58  ;;  %v7164_v57 = vand.u32 127, %v912_v5 }
  0x7b   : > { %1450 = vmatprep.subr.bf16.mxu0 %v5970_v60 }
  0x7c   : > { %vm1599_vm2 = vcmp.le.s32.totalorder %v7164_v57, %v7038_v6  ;;  %v6061_v57 = vld [vmem:[%s8489_s1 + $0xc0] ss:$8 sps:$4 sm:$0xff]  }
  0x7d   : > { %1492 = vmatpush1.bf16.msra.mxu1 %v5966_v59 }
  0x7e   : > { %1493 = vmatprep.subr.bf16.mxu1 %v5968_v61  ;;  %1451 = vmatpush1.bf16.msra.mxu0 %v5973_v62 }
  0x7f   : > { %1452 = vmatprep.subr.bf16.mxu0 %v5974_v1 }
  0x81   : > { %1494 = vmatpush1.bf16.msra.mxu1 %v5972_v63 }
  0x82   : > { %1453 = vmatpush1.bf16.msra.mxu0 %v5976_v2  ;;  %5726 = vmatprep.subr.bf16.mxu1 %v6619_v4  ;;  %v930_v2 = vsub.s32 4, %v7038_v6 }
  0x83   : > { %1504 = vmatprep.subr.bf16.mxu0 %v5979_v26 }
  0x84   : > { %1496 = vmatmul.mubr.bf16.vlgmr.msra.gmra.mrb[0].mxu1 %v7030_v3  ;;  %v931_v5 = vrot.slane %v7046_v8, %v930_v2 }
  0x85   : > { %1455 = vmatmul.mubr.bf16.vlgmr.msra.gmra.mrb[0].mxu0 %v7030_v3  ;;  %5728 = vmatprep.mubr.msk.bf16.mxu1 %vm6620_vm0, %v6619_v4 }
  0x86   : > { %1536 = vmatprep.mubr.bf16.mxu0 %v813_v47  ;;  %1505 = vmatpush1.bf16.msra.mxu0 %v5977_v25  ;;  %v6012_v47 = vld [vmem:[%s8485_s29 + $0x224] ss:$24 sps:$4 sm:$0xff]   ;;  %s8492_s29 = sshll.u32 %s6931_s27, 4  ;;  %s5268_s27 = sshll.u32 %s7814_s2, 3 }
  0x87   : > { %1506 = vmatprep.subr.bf16.mxu0 %v5982_v27 }
  0x8a   : > { %1507 = vmatpush1.bf16.msra.mxu0 %v5980_v28 }
  0x8b   : > { %1508 = vmatprep.subr.bf16.mxu0 %v5985_v29 }
  0x8e   : > { %1509 = vmatpush1.bf16.msra.mxu0 %v5983_v30 }
  0x8f   : > { %1510 = vmatprep.subr.bf16.mxu0 %v5988_v31 }
  0x92   : > { %1511 = vmatpush1.bf16.msra.mxu0 %v5986_v32 }
  0x93   : > { %1512 = vmatprep.subr.bf16.mxu0 %v5991_v33 }
  0x96   : > { %1513 = vmatpush1.bf16.msra.mxu0 %v5989_v34 }
  0x97   : > { %1514 = vmatprep.subr.bf16.mxu0 %v5994_v35 }
  0x9a   : > { %1515 = vmatpush1.bf16.msra.mxu0 %v5992_v36 }
  0x9b   : > { %1516 = vmatprep.subr.bf16.mxu0 %v5997_v37 }
  0x9e   : > { %1517 = vmatpush1.bf16.msra.mxu0 %v5995_v38 }
  0x9f   : > { %1518 = vmatprep.subr.bf16.mxu0 %v6000_v39 }
  0xa2   : > { %1519 = vmatpush1.bf16.msra.mxu0 %v5998_v40 }
  0xa3   : > { %1520 = vmatprep.subr.bf16.mxu0 %v6003_v41 }
  0xa6   : > { %1521 = vmatpush1.bf16.msra.mxu0 %v6001_v42 }
  0xa7   : > { %1522 = vmatprep.subr.bf16.mxu0 %v6006_v43 }
  0xaa   : > { %1523 = vmatpush1.bf16.msra.mxu0 %v6004_v44 }
  0xab   : > { %1524 = vmatprep.subr.bf16.mxu0 %v6009_v45  ;;  %v6027_v45 = vld [vmem:[%s8489_s1 + $0x44] ss:$8 sps:$4 sm:$0xff]  }
  0xae   : > { %1525 = vmatpush1.bf16.msra.mxu0 %v6007_v46 }
  0xaf   : > { %1526 = vmatprep.subr.bf16.mxu0 %v6012_v47 }
  0xb2   : > { %1527 = vmatpush1.bf16.msra.mxu0 %v6010_v48 }
  0xb3   : > { %1528 = vmatprep.subr.bf16.mxu0 %v6015_v49  ;;  %v6025_v49 = vld [vmem:[%s8489_s1 + $0x40] ss:$8 sps:$4 sm:$0xff]  }
  0xb6   : > { %1529 = vmatpush1.bf16.msra.mxu0 %v6013_v50 }
  0xb7   : > { %1530 = vmatprep.subr.bf16.mxu0 %v6018_v51  ;;  %v6030_v51 = vld [vmem:[%s8489_s1 + $0x54] ss:$8 sps:$4 sm:$0xff]  }
  0xba   : > { %1531 = vmatpush1.bf16.msra.mxu0 %v6016_v52  ;;  %v6028_v52 = vld [vmem:[%s8489_s1 + $0x50] ss:$8 sps:$4 sm:$0xff]  }
  0xbb   : > { %1532 = vmatprep.subr.bf16.mxu0 %v6021_v53  ;;  %v6033_v53 = vld [vmem:[%s8489_s1 + $0x64] ss:$8 sps:$4 sm:$0xff]  }
  0xbe   : > { %1533 = vmatpush1.bf16.msra.mxu0 %v6019_v54  ;;  %v6031_v54 = vld [vmem:[%s8489_s1 + $0x60] ss:$8 sps:$4 sm:$0xff]  }
  0xbf   : > { %1534 = vmatprep.subr.bf16.mxu0 %v6024_v55  ;;  %v6036_v55 = vld [vmem:[%s8489_s1 + $0x74] ss:$8 sps:$4 sm:$0xff]  }
  0xc2   : > { %1535 = vmatpush1.bf16.msra.mxu0 %v6022_v56  ;;  %v6034_v56 = vld [vmem:[%s8489_s1 + $0x70] ss:$8 sps:$4 sm:$0xff]  }
  0xc5   : > { %1537 = vmatmul.mubr.bf16.vlgmr.msra.gmra.mrb[4].mxu0 %v7030_v3 }
 0x157   : > { %v1497_v11 = vpop.f32.mrb[0].mxu1 }
 0x158   : > { %v1498_v13 = vadd.f32 %v1497_v11, %v923_v10  ;;  %v7055_v14 = vpop.f32.mrb[1].mxu1  ;;  %v1456_v18 = vpop.f32.mrb[0].mxu0 }
 0x159   : > { %v1501_v15 = vpop.f32.mrb[2].mxu1  ;;  %v1457_v19 = vadd.f32 %v1456_v18, %v915_v12  ;;  %v7057_v20 = vpop.f32.mrb[1].mxu0 }
 0x15a   : > { %v1546_v16 = vpack.c.bf16 %v1498_v13, %v1498_v13  ;;  %v1502_v17 = vpop.f32.mrb[3].mxu1  ;;  %v1460_v22 = vpop.f32.mrb[2].mxu0 }
 0x15b   : > { %v1545_v23 = vpack.c.bf16 %v1457_v19, %v1457_v19  ;;  %v1461_v24 = vpop.f32.mrb[3].mxu0 }
 0x15c   : > { %v1553_v21 = vsel %vm1548_vm1, %v1546_v16, 0  ;;  %1674 = vrot.lane.b32.xlu1 %v1546_v16, %s8456_s4 }
 0x15d   : > { %5727 = vmatpush3.bf16.xpose.msra.mxu1 %v1553_v21 }
 0x15e   : > { %5732 = vmatprep.subr.bf16.mxu1 %v6619_v4 }
 0x160   : > { %1671 = vrot.lane.b32.xlu1 %v1545_v23, %s8456_s4 }
 0x164   : > { %5729 = vmatmul.mubr.msk.bf16.vlgmr.msra.gmra.mrb[4].mxu1 %vm1548_vm1, %v1545_v23 }
 0x165   : > { %5734 = vmatprep.mubr.msk.bf16.mxu1 %vm6620_vm0, %v6619_v4 }
 0x198   : > { %v1538_v10 = vpop.f32.mrb[4].mxu0 }
 0x199   : > { %v1539_v11 = vadd.f32 %v1538_v10, %v931_v5  ;;  %v7174_v12 = vpop.f32.mrb[5].mxu0  ;;  %v6045_v5 = vld [vmem:[%s8489_s1 + $0x24] ss:$8 sps:$4 sm:$0xff]   ;;  %v7241_v10 = vsub.s32 3, %v7038_v6 }
 0x19a   : > { %v1542_v13 = vpop.f32.mrb[6].mxu0 }
 0x19b   : > { %v1547_v15 = vpack.c.bf16 %v1539_v11, %v1539_v11  ;;  %v1543_v16 = vpop.f32.mrb[7].mxu0  ;;  %v6043_v11 = vld [vmem:[%s8489_s1 + $0x20] ss:$8 sps:$4 sm:$0xff]   ;;  %v6048_v13 = vld [vmem:[%s8489_s1 + $0x34] ss:$8 sps:$4 sm:$0xff]  }
 0x19c   : > { %v6046_v16 = vld [vmem:[%s8489_s1 + $0x30] ss:$8 sps:$4 sm:$0xff]  }
 0x19d   : > { %v1619_v17 = vsel %vm1617_vm4, %v1547_v15, 0 }
 0x19e   : > { %5733 = vmatpush3.bf16.msra.mxu1 %v1619_v17 }
 0x19f   : > { %5738 = vmatprep.subr.bf16.mxu1 %v6619_v4 }
 0x1ce   : > { %v1675_v24 = vpop.permute.xlu1 %1674 }
 0x1cf   : > { %v1680_v26 = vsel %vm1548_vm1, %v1675_v24, 0 }
 0x1d2   : > { %v1672_v27 = vpop.permute.xlu1 %1671 }
 0x237   : > { %v1589_v58 = vpop.f32.mrb[4].mxu1 }
 0x238   : > { %v1600_v59 = vsel %vm1599_vm2, %v1589_v58, -1e+30  ;;  %v5730_v60 = vpop.f32.mrb[5].mxu1  ;;  %v6039_v58 = vld [vmem:[%s8489_s1 + $0x4] ss:$8 sps:$4 sm:$0xff]  }
 0x239   : > { %v1592_v61 = vpop.f32.mrb[6].mxu1  ;;  %v1602_v62 = vsel %vm1601_vm3, %v1600_v59, -inf }
 0x23a   : > { %1603 = vmax.xlane.f32.xlu0 %v1602_v62  ;;  %v5731_v63 = vpop.f32.mrb[7].mxu1  ;;  %v6037_v61 = vld [vmem:[%s8489_s1] ss:$8 sps:$4 sm:$0xff]  }
 0x2c7   : > { %v1604_v0 = vpop.xlane.xlu0 %1603 }
 0x2c8   : > { %v1605_v1 = vsub.f32 %v1600_v59, %v1604_v0  ;;  %v6622_v59 = vmov 0   ;;  %v6042_v0 = vld [vmem:[%s8489_s1 + $0x14] ss:$8 sps:$4 sm:$0xff]  }
 0x2c9   : > { %2153 = vmatprep.mubr.bf16.mxu0 %v6622_v59 }
 0x2ca   : > { %v1606_v3 = vmul.f32 1.442695, %v1605_v1 }
 0x2cc   : > { %6457 = vpow2.f32 %v1606_v3  ;;  %v6040_v3 = vld [vmem:[%s8489_s1 + $0x10] ss:$8 sps:$4 sm:$0xff]  }
 0x2d6   : > { %v6458_v18 = vpop.eup %6457 }
 0x2d7   : > { %v1608_v19 = vsel %vm1601_vm3, %v6458_v18, 0.0 }
 0x2d8   : > { %1609 = vadd.xlane.f32.xlu0 %v1608_v19 }
 0x365   : > { %v1610_v21 = vpop.xlane.xlu0 %1609 }
 0x366   : > { %6459 = vrcp.f32 %v1610_v21  ;;  %v7260_v21 = vsub.s32 1, %v7038_v6 }
 0x370   : > { %v6460_v22 = vpop.eup %6459 }
 0x371   : > { %v1612_v23 = vmul.f32 %v6460_v22, %v6458_v18  ;;  %v934_v18 = vsub.s32 5, %v7038_v6 }
 0x373   : > { %v1613_v25 = vpack.c.bf16 %v1612_v23, %v1612_v23  ;;  %v935_v23 = vrot.slane %v7046_v8, %v934_v18 }
 0x375   : > { %5735 = vmatmul.mubr.msk.bf16.vlgmr.msra.gmra.mrb[8].mxu1 %vm1601_vm3, %v1613_v25  ;;  %v1541_v25 = vadd.f32 %v7174_v12, %v935_v23 }
 0x376   : > { %5739 = vmatpush3.bf16.xpose.msra.mxu1 %v1680_v26  ;;  %5740 = vmatprep.mubr.msk.bf16.mxu1 %vm6620_vm0, %v6619_v4 }
 0x377   : > { %5744 = vmatprep.subr.bf16.mxu1 %v6619_v4 }
 0x37d   : > { %5741 = vmatmul.mubr.msk.bf16.vlgmr.msra.gmra.mrb[12].mxu1 %vm1548_vm1, %v1672_v27  ;;  %v7272_v27 = vpack.c.bf16 %v1541_v25, %v1541_v25 }
 0x37e   : > { %5746 = vmatprep.mubr.msk.bf16.mxu1 %vm6620_vm0, %v6619_v4 }
 0x448   : > { %v7187_v28 = vpop.f32.mrb[8].mxu1 }
 0x449   : > { %v5736_v29 = vpop.f32.mrb[9].mxu1  ;;  %v1661_v19 = vpack.c.bf16 %v7187_v28, %v7187_v28 }
 0x44a   : > { %v1658_v30 = vpop.f32.mrb[10].mxu1  ;;  %v2027_v29 = vsel %vm1617_vm4, %v7272_v27, 0 }
 0x44b   : > { %v5737_v31 = vpop.f32.mrb[11].mxu1 }
 0x450   : > { %v1716_v32 = vpop.f32.mrb[12].mxu1 }
 0x451   : > { %v1722_v33 = vsel %vm1599_vm2, %v1716_v32, -1e+30  ;;  %v5742_v34 = vpop.f32.mrb[13].mxu1 }
 0x452   : > { %v1719_v35 = vpop.f32.mrb[14].mxu1  ;;  %v1723_v36 = vsel %vm1601_vm3, %v1722_v33, -inf }
 0x453   : > { %1724 = vmax.xlane.f32.xlu0 %v1723_v36  ;;  %v5743_v37 = vpop.f32.mrb[15].mxu1 }
 0x469   : > { %1736 = vrot.lane.b32.xlu0 %v1547_v15, %s8488_s26  ;;  %v927_v15 = vrot.slane %v7046_v8, %v7241_v10 }
 0x46b   : > { %v1500_v17 = vadd.f32 %v7055_v14, %v927_v15  ;;  %v919_v14 = vrot.slane %v7046_v8, %v7260_v21 }
 0x46d   : > { %v1962_v22 = vpack.c.bf16 %v1500_v17, %v1500_v17  ;;  %v1459_v26 = vadd.f32 %v7057_v20, %v919_v14 }
 0x46f   : > { %v1968_v24 = vsel %vm1548_vm1, %v1962_v22, 0  ;;  %v1961_v28 = vpack.c.bf16 %v1459_v26, %v1459_v26 }
 0x4e0   : > { %v1725_v38 = vpop.xlane.xlu0 %1724 }
 0x4e1   : > { %v1726_v39 = vsub.f32 %v1722_v33, %v1725_v38 }
 0x4e3   : > { %v1727_v40 = vmul.f32 1.442695, %v1726_v39 }
 0x4e4   : > { %v1737_v41 = vpop.permute.xlu0 %1736 }
 0x4e5   : > { %6461 = vpow2.f32 %v1727_v40  ;;  %v1742_v42 = vsel %vm1617_vm4, %v1737_v41, 0 }
 0x4e6   : > { %5745 = vmatpush3.bf16.msra.mxu1 %v1742_v42 }
 0x4e7   : > { %1836 = vmatprep.subr.bf16.mxu1 %v6027_v45 }
 0x4ef   : > { %v6462_v43 = vpop.eup %6461 }
 0x4f0   : > { %v1729_v44 = vsel %vm1601_vm3, %v6462_v43, 0.0 }
 0x4f1   : > { %1730 = vadd.xlane.f32.xlu1 %v1729_v44 }
 0x57e   : > { %v1731_v46 = vpop.xlane.xlu1 %1730 }
 0x57f   : > { %6463 = vrcp.f32 %v1731_v46 }
 0x589   : > { %v6464_v47 = vpop.eup %6463 }
 0x58a   : > { %v1733_v48 = vmul.f32 %v6464_v47, %v6462_v43 }
 0x58c   : > { %v1734_v50 = vpack.c.bf16 %v1733_v48, %v1733_v48  ;;  %v6049_v48 = vld [vmem:[%s8489_s1 + $0x80] ss:$8 sps:$4 sm:$0xff]  }
 0x58e   : > { %5747 = vmatmul.mubr.msk.bf16.vlgmr.msra.gmra.mrb[16].mxu1 %vm1601_vm3, %v1734_v50  ;;  %v6054_v50 = vld [vmem:[%s8489_s1 + $0x94] ss:$8 sps:$4 sm:$0xff]  }
 0x58f   : > { %1837 = vmatpush1.bf16.msra.mxu1 %v6025_v49  ;;  %1868 = vmatprep.mubr.bf16.mxu1 %v6622_v59  ;;  %v6051_v49 = vld [vmem:[%s8489_s1 + $0x84] ss:$8 sps:$4 sm:$0xff]  }
 0x590   : > { %1838 = vmatprep.subr.bf16.mxu1 %v6030_v51  ;;  %2121 = vmatprep.subr.bf16.mxu0 %v6051_v49  ;;  %v6052_v51 = vld [vmem:[%s8489_s1 + $0x90] ss:$8 sps:$4 sm:$0xff]  }
 0x591   : > { %2122 = vmatpush1.bf16.msra.mxu0 %v6049_v48 }
 0x592   : > { %2123 = vmatprep.subr.bf16.mxu0 %v6054_v50 }
 0x593   : > { %1839 = vmatpush1.bf16.msra.mxu1 %v6028_v52  ;;  %v6057_v52 = vld [vmem:[%s8489_s1 + $0xa4] ss:$8 sps:$4 sm:$0xff]  }
 0x594   : > { %1840 = vmatprep.subr.bf16.mxu1 %v6033_v53  ;;  %v6055_v53 = vld [vmem:[%s8489_s1 + $0xa0] ss:$8 sps:$4 sm:$0xff]  }
 0x595   : > { %2124 = vmatpush1.bf16.msra.mxu0 %v6052_v51 }
 0x596   : > { %2125 = vmatprep.subr.bf16.mxu0 %v6057_v52 }
 0x597   : > { %1841 = vmatpush1.bf16.msra.mxu1 %v6031_v54  ;;  %v6060_v54 = vld [vmem:[%s8489_s1 + $0xb4] ss:$8 sps:$4 sm:$0xff]  }
 0x598   : > { %1842 = vmatprep.subr.bf16.mxu1 %v6036_v55  ;;  %v6058_v55 = vld [vmem:[%s8489_s1 + $0xb0] ss:$8 sps:$4 sm:$0xff]  }
 0x599   : > { %2126 = vmatpush1.bf16.msra.mxu0 %v6055_v53 }
 0x59a   : > { %2127 = vmatprep.subr.bf16.mxu0 %v6060_v54 }
 0x59b   : > { %1843 = vmatpush1.bf16.msra.mxu1 %v6034_v56 }
 0x59c   : > { %1920 = vmatprep.subr.bf16.mxu1 %v6039_v58 }
 0x59d   : > { %2128 = vmatpush1.bf16.msra.mxu0 %v6058_v55 }
 0x661   : > { %v1778_v60 = vpop.f32.mrb[16].mxu1 }
 0x662   : > { %v1784_v62 = vpack.c.bf16 %v1778_v60, %v1778_v60  ;;  %v5748_v63 = vpop.f32.mrb[17].mxu1 }
 0x663   : > { %v1781_v1 = vpop.f32.mrb[18].mxu1 }
 0x664   : > { %v5749_v2 = vpop.f32.mrb[19].mxu1  ;;  %5381 = vmatmul.mubr.msk.bf16.vlgmr.msra.gmra.mrb[20].mxu1 %vm1548_vm1, %v1784_v62 }
 0x665   : > { %1921 = vmatpush1.bf16.msra.mxu1 %v6037_v61  ;;  %1952 = vmatprep.mubr.bf16.mxu1 %v6622_v59 }
 0x666   : > { %1922 = vmatprep.subr.bf16.mxu1 %v6042_v0 }
 0x669   : > { %1923 = vmatpush1.bf16.msra.mxu1 %v6040_v3 }
 0x66a   : > { %1924 = vmatprep.subr.bf16.mxu1 %v6045_v5 }
 0x66d   : > { %1925 = vmatpush1.bf16.msra.mxu1 %v6043_v11 }
 0x66e   : > { %1926 = vmatprep.subr.bf16.mxu1 %v6048_v13 }
 0x671   : > { %1927 = vmatpush1.bf16.msra.mxu1 %v6046_v16 }
 0x672   : > { %5750 = vmatprep.subr.bf16.mxu1 %v6619_v4 }
 0x674   : > { %5390 = vmatmul.mubr.msk.bf16.vlgmr.msra.gmra.mrb[24].mxu1 %vm1548_vm1, %v1661_v19 }
 0x675   : > { %5752 = vmatprep.mubr.msk.bf16.mxu1 %vm6620_vm0, %v6619_v4 }
 0x67a   : > { %5751 = vmatpush3.bf16.xpose.msra.mxu1 %v1968_v24 }
 0x67b   : > { %5756 = vmatprep.subr.bf16.mxu1 %v6619_v4 }
 0x681   : > { %5753 = vmatmul.mubr.msk.bf16.vlgmr.msra.gmra.mrb[28].mxu1 %vm1548_vm1, %v1961_v28 }
 0x682   : > { %5757 = vmatpush3.bf16.msra.mxu1 %v2027_v29  ;;  %5758 = vmatprep.mubr.msk.bf16.mxu1 %vm6620_vm0, %v6619_v4  ;;  %v6064_v29 = vld [vmem:[%s8489_s1 + $0xd0] ss:$8 sps:$4 sm:$0xff]  }
 0x683   : > { %5762 = vmatprep.subr.bf16.mxu1 %v6619_v4 }
 0x737   : > { %v1870_v8 = vpop.f32.mrb[20].mxu1 }
 0x738   : > { %v1872_v12 = vpop.f32.mrb[21].mxu1 }
 0x739   : > { %v1874_v30 = vpop.f32.mrb[22].mxu1 }
 0x73a   : > { %v1875_v20 = vpop.f32.mrb[23].mxu1  ;;  %v6072_v30 = vld [vmem:[%s8489_s1 + $0xf4] ss:$8 sps:$4 sm:$0xff]  }
 0x73b   : > { %v6070_v20 = vld [vmem:[%s8489_s1 + $0xf0] ss:$8 sps:$4 sm:$0xff]  }
 0x747   : > { %v1954_v31 = vpop.f32.mrb[24].mxu1 }
 0x748   : > { %v7280_v32 = vadd.f32 %v1954_v31, %v1870_v8  ;;  %v1956_v33 = vpop.f32.mrb[25].mxu1  ;;  %v6069_v8 = vld [vmem:[%s8489_s1 + $0xe4] ss:$8 sps:$4 sm:$0xff]  }
 0x749   : > { %v7282_v34 = vadd.f32 %v1956_v33, %v1872_v12  ;;  %v1958_v35 = vpop.f32.mrb[26].mxu1  ;;  %v6067_v12 = vld [vmem:[%s8489_s1 + $0xe0] ss:$8 sps:$4 sm:$0xff]  }
 0x74a   : > { %v1959_v36 = vpop.f32.mrb[27].mxu1 }
 0x754   : > { %v2004_v37 = vpop.f32.mrb[28].mxu1 }
 0x755   : > { %v2010_v38 = vsel %vm1599_vm2, %v2004_v37, -1e+30  ;;  %v5754_v39 = vpop.f32.mrb[29].mxu1 }
 0x756   : > { %v2007_v40 = vpop.f32.mrb[30].mxu1  ;;  %v2011_v41 = vsel %vm1601_vm3, %v2010_v38, -inf }
 0x757   : > { %2012 = vmax.xlane.f32.xlu0 %v2011_v41  ;;  %v5755_v42 = vpop.f32.mrb[31].mxu1 }
 0x76d   : > { %2165 = vrot.lane.b32.xlu0 %v1961_v28, %s8488_s26  ;;  %v6066_v28 = vld [vmem:[%s8489_s1 + $0xd4] ss:$8 sps:$4 sm:$0xff]  }
 0x7e4   : > { %v2013_v43 = vpop.xlane.xlu0 %2012 }
 0x7e5   : > { %v2014_v44 = vsub.f32 %v2010_v38, %v2013_v43 }
 0x7e7   : > { %v2015_v45 = vmul.f32 1.442695, %v2014_v44 }
 0x7e8   : > { %v2166_v0 = vpop.permute.xlu0 %2165 }
 0x7e9   : > { %6465 = vpow2.f32 %v2015_v45 }
 0x7f3   : > { %v6466_v46 = vpop.eup %6465 }
 0x7f4   : > { %v2017_v47 = vsel %vm1601_vm3, %v6466_v46, 0.0 }
 0x7f5   : > { %2018 = vadd.xlane.f32.xlu1 %v2017_v47 }
 0x806   : > { %2168 = vrot.lane.b32.xlu1 %v1962_v22, %s8488_s26 }
 0x882   : > { %v2019_v56 = vpop.xlane.xlu1 %2018 }
 0x883   : > { %6467 = vrcp.f32 %v2019_v56 }
 0x886   : > { %v2169_v61 = vpop.permute.xlu1 %2168 }
 0x887   : > { %v2174_v63 = vsel %vm1548_vm1, %v2169_v61, 0  ;;  %v6502_v61 = vld [vmem:[%s6960_s7 + $0x8] sm:$0xff] }
 0x88d   : > { %v6468_v58 = vpop.eup %6467 }
 0x88e   : > { %v2021_v60 = vmul.f32 %v6468_v58, %v6466_v46  ;;  %v6501_v58 = vld [vmem:[%s6960_s7] sm:$0xff]  ;;  %s8493_s7 = sld [smem:[#allocation19_spill]] }
 0x890   : > { %v2022_v62 = vpack.c.bf16 %v2021_v60, %v2021_v60 }
 0x892   : > { %5759 = vmatmul.mubr.msk.bf16.vlgmr.msra.gmra.mrb[32].mxu1 %vm1601_vm3, %v2022_v62 }
 0x893   : > { %5763 = vmatpush3.bf16.xpose.msra.mxu1 %v2174_v63  ;;  %5764 = vmatprep.mubr.msk.bf16.mxu1 %vm6620_vm0, %v6619_v4 }
 0x894   : > { %5768 = vmatprep.subr.bf16.mxu1 %v6619_v4  ;;  %s808_s8 = scalar_lea.vmem %s8493_s7, %s8492_s29  ;;  %s8494_s7 = sld [smem:[#allocation24_spill]] }
 0x89a   : > { %5765 = vmatmul.mubr.msk.bf16.vlgmr.msra.gmra.mrb[36].mxu1 %vm1548_vm1, %v2166_v0  ;;  %v6073_v0 = vld [vmem:[%s8431_s10] ss:$16 sps:$4 sm:$0xff]  }
 0x89b   : > { %5770 = vmatprep.mubr.msk.bf16.mxu1 %vm6620_vm0, %v6619_v4 }
 0x965   : > { %v2063_v1 = vpop.f32.mrb[32].mxu1 }
 0x966   : > { %v2069_v2 = vpack.c.bf16 %v2063_v1, %v2063_v1  ;;  %v5760_v3 = vpop.f32.mrb[33].mxu1  ;;  %v6075_v1 = vld [vmem:[%s8431_s10 + $0x4] ss:$16 sps:$4 sm:$0xff]  }
 0x967   : > { %v2066_v5 = vpop.f32.mrb[34].mxu1  ;;  %v6082_v3 = vld [vmem:[%s8491_s5] ss:$8 sps:$4 sm:$0xff]  }
 0x968   : > { %v5761_v11 = vpop.f32.mrb[35].mxu1  ;;  %5401 = vmatmul.mubr.msk.bf16.vlgmr.msra.gmra.mrb[8].mxu0 %vm1548_vm1, %v2069_v2  ;;  %v6078_v2 = vld [vmem:[%s8431_s10 + $0x24] ss:$16 sps:$4 sm:$0xff]  }
 0x969   : > { %2362 = vmatprep.mubr.bf16.mxu0 %v6622_v59  ;;  %v6084_v5 = vld [vmem:[%s8491_s5 + $0x4] ss:$8 sps:$4 sm:$0xff]   ;;  %v6076_v11 = vld [vmem:[%s8431_s10 + $0x20] ss:$16 sps:$4 sm:$0xff]  }
 0x96d   : > { %v2210_v13 = vpop.f32.mrb[36].mxu1 }
 0x96e   : > { %v2216_v15 = vsel %vm1599_vm2, %v2210_v13, -1e+30  ;;  %v5766_v16 = vpop.f32.mrb[37].mxu1  ;;  %v6090_v13 = vld [vmem:[%s8491_s5 + $0x14] ss:$8 sps:$4 sm:$0xff]  }
 0x96f   : > { %v2213_v17 = vpop.f32.mrb[38].mxu1  ;;  %v2217_v18 = vsel %vm1601_vm3, %v2216_v15, -inf  ;;  %v6088_v16 = vld [vmem:[%s8491_s5 + $0x10] ss:$8 sps:$4 sm:$0xff]  }
 0x970   : > { %2218 = vmax.xlane.f32.xlu1 %v2217_v18  ;;  %v5767_v19 = vpop.f32.mrb[39].mxu1  ;;  %v6096_v17 = vld [vmem:[%s8491_s5 + $0x24] ss:$8 sps:$4 sm:$0xff]   ;;  %v6079_v18 = vld [vmem:[%s8431_s10 + $0x40] ss:$16 sps:$4 sm:$0xff]  }
 0x971   : > { %v6087_v19 = vld [vmem:[%s8431_s10 + $0x64] ss:$16 sps:$4 sm:$0xff]  }
 0x981   : > { %2230 = vrot.lane.b32.xlu1 %v7272_v27, %s8488_s26  ;;  %v6063_v27 = vld [vmem:[%s8489_s1 + $0xc4] ss:$8 sps:$4 sm:$0xff]   ;;  %s7818_s1 = scalar_lea.vmem [#allocation7], %s5268_s27 }
 0x982   : > { %2330 = vmatprep.subr.bf16.mxu0 %v6063_v27  ;;  %v6106_v27 = vld [vmem:[%s8491_s5 + $0x40] ss:$8 sps:$4 sm:$0xff]   ;;  %s5146_s29 = sshll.u32 %s7818_s1, 4  ;;  %s5147_s29 = int_to_ptr.vmem [resolvable:$true] %s5146_s29 }
 0x983   : > { %2331 = vmatpush1.bf16.msra.mxu0 %v6061_v57  ;;  %v6099_v57 = vld [vmem:[%s8431_s10 + $0xa4] ss:$16 sps:$4 sm:$0xff]  }
 0x984   : > { %2332 = vmatprep.subr.bf16.mxu0 %v6066_v28  ;;  %v6114_v28 = vld [vmem:[%s8491_s5 + $0x54] ss:$8 sps:$4 sm:$0xff]  }
 0x987   : > { %2333 = vmatpush1.bf16.msra.mxu0 %v6064_v29  ;;  %v6097_v29 = vld [vmem:[%s8431_s10 + $0xa0] ss:$16 sps:$4 sm:$0xff]  }
 0x988   : > { %2334 = vmatprep.subr.bf16.mxu0 %v6069_v8  ;;  %v6105_v8 = vld [vmem:[%s8431_s10 + $0xc4] ss:$16 sps:$4 sm:$0xff]  }
 0x98b   : > { %2335 = vmatpush1.bf16.msra.mxu0 %v6067_v12  ;;  %v6112_v12 = vld [vmem:[%s8491_s5 + $0x50] ss:$8 sps:$4 sm:$0xff]  }
 0x98c   : > { %2336 = vmatprep.subr.bf16.mxu0 %v6072_v30  ;;  %v6120_v30 = vld [vmem:[%s8491_s5 + $0x64] ss:$8 sps:$4 sm:$0xff]  }
 0x98f   : > { %2337 = vmatpush1.bf16.msra.mxu0 %v6070_v20  ;;  %v6103_v20 = vld [vmem:[%s8431_s10 + $0xc0] ss:$16 sps:$4 sm:$0xff]  }
 0x990   : > { %3098 = vmatprep.subr.bf16.mxu0 %v6075_v1  ;;  %v6151_v1 = vld [vmem:[%s8431_s10 + $0x1c0] ss:$16 sps:$4 sm:$0xff]  }
 0x9fd   : > { %v2219_v22 = vpop.xlane.xlu1 %2218 }
 0x9fe   : > { %v2220_v23 = vsub.f32 %v2216_v15, %v2219_v22  ;;  %v6081_v15 = vld [vmem:[%s8431_s10 + $0x44] ss:$16 sps:$4 sm:$0xff]   ;;  %v6094_v22 = vld [vmem:[%s8491_s5 + $0x20] ss:$8 sps:$4 sm:$0xff]  }
 0xa00   : > { %v2221_v14 = vmul.f32 1.442695, %v2220_v23  ;;  %v6102_v23 = vld [vmem:[%s8491_s5 + $0x34] ss:$8 sps:$4 sm:$0xff]  }
 0xa01   : > { %v2231_v24 = vpop.permute.xlu1 %2230 }
 0xa02   : > { %6469 = vpow2.f32 %v2221_v14  ;;  %v2236_v25 = vsel %vm1617_vm4, %v2231_v24, 0  ;;  %v6085_v14 = vld [vmem:[%s8431_s10 + $0x60] ss:$16 sps:$4 sm:$0xff]   ;;  %v6093_v24 = vld [vmem:[%s8431_s10 + $0x84] ss:$16 sps:$4 sm:$0xff]  }
 0xa03   : > { %5769 = vmatpush3.bf16.msra.mxu1 %v2236_v25  ;;  %v6100_v25 = vld [vmem:[%s8491_s5 + $0x30] ss:$8 sps:$4 sm:$0xff]  }
 0xa04   : > { %2649 = vmatprep.subr.bf16.mxu1 %v6084_v5  ;;  %v6159_v5 = vld [vmem:[%s8431_s10 + $0x1e4] ss:$16 sps:$4 sm:$0xff]  }
 0xa0c   : > { %v6470_v26 = vpop.eup %6469 }
 0xa0d   : > { %v2223_v6 = vsel %vm1601_vm3, %v6470_v26, 0.0 }
 0xa0e   : > { %2224 = vadd.xlane.f32.xlu0 %v2223_v6  ;;  %v6091_v6 = vld [vmem:[%s8431_s10 + $0x80] ss:$16 sps:$4 sm:$0xff]  }
 0xa3b   : > { %v2155_v31 = vpop.f32.mrb[8].mxu0 }
 0xa3c   : > { %v2162_v33 = vadd.f32 %v2155_v31, %v7280_v32  ;;  %v2157_v35 = vpop.f32.mrb[9].mxu0  ;;  %v2373_v32 = vld [vmem:[%s8490_s0] sm:$0x3]  ;;  %v6111_v31 = vld [vmem:[%s8431_s10 + $0xe4] ss:$16 sps:$4 sm:$0xff]   ;;  %s5512_s0 = sld [smem:[#allocation3 + $0x1]] }
 0xa3d   : > { %v2163_v36 = vadd.f32 %v2157_v35, %v7282_v34  ;;  %v2159_v37 = vpop.f32.mrb[10].mxu0  ;;  %v2378_v34 = vrot.slane %v2373_v32, %v7049_v9  ;;  %v2382_v49 = vrot.slane %v2373_v32, %v7260_v21  ;;  %v6109_v35 = vld [vmem:[%s8431_s10 + $0xe0] ss:$16 sps:$4 sm:$0xff]  }
 0xa3e   : > { %v2160_v38 = vpop.f32.mrb[11].mxu0  ;;  %v6115_v37 = vld [vmem:[%s8431_s10 + $0x100] ss:$16 sps:$4 sm:$0xff]  }
 0xa3f   : > { %v6124_v32 = vld [vmem:[%s8491_s5 + $0x70] ss:$8 sps:$4 sm:$0xff]  }
 0xa9b   : > { %v2225_v39 = vpop.xlane.xlu0 %2224 }
 0xa9c   : > { %6471 = vrcp.f32 %v2225_v39 }
 0xaa6   : > { %v6472_v40 = vpop.eup %6471 }
 0xaa7   : > { %v2227_v41 = vmul.f32 %v6472_v40, %v6470_v26  ;;  %v6108_v26 = vld [vmem:[%s8491_s5 + $0x44] ss:$8 sps:$4 sm:$0xff]  }
 0xaa9   : > { %v2228_v42 = vpack.c.bf16 %v2227_v41, %v2227_v41 }
 0xaab   : > { %5771 = vmatmul.mubr.msk.bf16.vlgmr.msra.gmra.mrb[40].mxu1 %vm1601_vm3, %v2228_v42 }
 0xaac   : > { %2650 = vmatpush1.bf16.msra.mxu1 %v6082_v3  ;;  %v6156_v3 = vld [vmem:[%s8491_s5 + $0xc4] ss:$8 sps:$4 sm:$0xff]  }
 0xaad   : > { %2651 = vmatprep.subr.bf16.mxu1 %v6090_v13  ;;  %v6154_v13 = vld [vmem:[%s8491_s5 + $0xc0] ss:$8 sps:$4 sm:$0xff]  }
 0xab0   : > { %2652 = vmatpush1.bf16.msra.mxu1 %v6088_v16  ;;  %v6157_v16 = vld [vmem:[%s8431_s10 + $0x1e0] ss:$16 sps:$4 sm:$0xff]  }
 0xab1   : > { %2653 = vmatprep.subr.bf16.mxu1 %v6096_v17  ;;  %v6162_v17 = vld [vmem:[%s8491_s5 + $0xd4] ss:$8 sps:$4 sm:$0xff]  }
 0xab4   : > { %2654 = vmatpush1.bf16.msra.mxu1 %v6094_v22 }
 0xab5   : > { %2655 = vmatprep.subr.bf16.mxu1 %v6102_v23  ;;  %v6165_v23 = vld [vmem:[%s8491_s5 + $0xe4] ss:$8 sps:$4 sm:$0xff]  }
 0xab8   : > { %2656 = vmatpush1.bf16.msra.mxu1 %v6100_v25  ;;  %v6166_v25 = vld [vmem:[%s8491_s5 + $0xf0] ss:$8 sps:$4 sm:$0xff]  }
 0xab9   : > { %2657 = vmatprep.subr.bf16.mxu1 %v6108_v26  ;;  %v6171_v26 = vld [vmem:[%s8431_s10 + $0xc] ss:$16 sps:$4 sm:$0xff]  }
 0xabc   : > { %2658 = vmatpush1.bf16.msra.mxu1 %v6106_v27 }
 0xabd   : > { %2659 = vmatprep.subr.bf16.mxu1 %v6114_v28 }
 0xac0   : > { %2660 = vmatpush1.bf16.msra.mxu1 %v6112_v12 }
 0xac1   : > { %2661 = vmatprep.subr.bf16.mxu1 %v6120_v30 }
 0xb7e   : > { %v2272_v43 = vpop.f32.mrb[40].mxu1 }
 0xb7f   : > { %v2278_v44 = vpack.c.bf16 %v2272_v43, %v2272_v43  ;;  %v5772_v45 = vpop.f32.mrb[41].mxu1 }
 0xb80   : > { %v2275_v46 = vpop.f32.mrb[42].mxu1  ;;  %v6123_v45 = vld [vmem:[%s8431_s10 + $0x124] ss:$16 sps:$4 sm:$0xff]  }
 0xb81   : > { %v5773_v47 = vpop.f32.mrb[43].mxu1  ;;  %5412 = vmatmul.mubr.msk.bf16.vlgmr.msra.gmra.mrb[12].mxu0 %vm1548_vm1, %v2278_v44  ;;  %v6121_v46 = vld [vmem:[%s8431_s10 + $0x120] ss:$16 sps:$4 sm:$0xff]  }
 0xb82   : > { %3099 = vmatpush1.bf16.msra.mxu0 %v6073_v0  ;;  %v6126_v47 = vld [vmem:[%s8491_s5 + $0x74] ss:$8 sps:$4 sm:$0xff]  }
 0xb83   : > { %3100 = vmatprep.subr.bf16.mxu0 %v6078_v2  ;;  %v6150_v0 = vld [vmem:[%s8491_s5 + $0xb4] ss:$8 sps:$4 sm:$0xff]  }
 0xb84   : > { %v6153_v2 = vld [vmem:[%s8431_s10 + $0x1c4] ss:$16 sps:$4 sm:$0xff]  }
 0xb86   : > { %3101 = vmatpush1.bf16.msra.mxu0 %v6076_v11  ;;  %v2442_v11 = vld [vmem:[%s808_s8 + $0x8] sm:$0xff] }
 0xb87   : > { %3102 = vmatprep.subr.bf16.mxu0 %v6081_v15  ;;  %v2691_v15 = vpack.c.bf16 %v2442_v11, %v2442_v11  ;;  %v6202_v11 = vld [vmem:[%s8431_s10 + $0x168] ss:$16 sps:$4 sm:$0xff]  }
 0xb89   : > { %3130 = vmatprep.mubr.bf16.mxu0 %v2691_v15 }
 0xb8a   : > { %3103 = vmatpush1.bf16.msra.mxu0 %v6079_v18  ;;  %v2441_v18 = vld [vmem:[%s808_s8] sm:$0xff]  ;;  %s6623_s8 = smov [#allocation7]  }
 0xb8b   : > { %3104 = vmatprep.subr.bf16.mxu0 %v6087_v19  ;;  %v6160_v19 = vld [vmem:[%s8491_s5 + $0xd0] ss:$8 sps:$4 sm:$0xff]   ;;  %v7569_v22 = vpack.c.bf16 %v2441_v18, %v2441_v18  ;;  %v6213_v18 = vld [vmem:[%s8431_s10 + $0x1cc] ss:$16 sps:$4 sm:$0xff]  }
 0xb8e   : > { %3105 = vmatpush1.bf16.msra.mxu0 %v6085_v14  ;;  %v6163_v14 = vld [vmem:[%s8491_s5 + $0xe0] ss:$8 sps:$4 sm:$0xff]  }
 0xb8f   : > { %3106 = vmatprep.subr.bf16.mxu0 %v6093_v24  ;;  %v6168_v24 = vld [vmem:[%s8491_s5 + $0xf4] ss:$8 sps:$4 sm:$0xff]  }
 0xb92   : > { %3107 = vmatpush1.bf16.msra.mxu0 %v6091_v6 }
 0xb93   : > { %3108 = vmatprep.subr.bf16.mxu0 %v6099_v57 }
 0xb96   : > { %3109 = vmatpush1.bf16.msra.mxu0 %v6097_v29 }
 0xb97   : > { %3110 = vmatprep.subr.bf16.mxu0 %v6105_v8 }
 0xb9a   : > { %3111 = vmatpush1.bf16.msra.mxu0 %v6103_v20  ;;  %v2402_v20 = vld [vmem:[%s8494_s7] sm:$0x3]  ;;  %s8496_s7 = sld [smem:[#allocation27_spill]] }
 0xb9b   : > { %3112 = vmatprep.subr.bf16.mxu0 %v6111_v31  ;;  %v2427_v31 = vld [vmem:[%s8495_s14] sm:$0x3]  ;;  %s6518_s14 = scalar_lea.vmem %s5147_s29, 128 }
 0xb9c   : > { %p6519_p10 = scmp.ne.s32.totalorder %s5147_s29, %s6518_s14 }
 0xb9e   : > { %3113 = vmatpush1.bf16.msra.mxu0 %v6109_v35  ;;  %v2422_v35 = vrot.slane %v2402_v20, %v7260_v21  ;;  %p6520_p11 = pnand %p6519_p10, %p6796_p5 }
 0xba0   : > { %p6521_p12 = pneg %p6520_p11 }
 0xc54   : > { %v2364_v48 = vpop.f32.mrb[12].mxu0 }
 0xc55   : > { %v2371_v50 = vadd.f32 %v2364_v48, %v2162_v33  ;;  %v2366_v51 = vpop.f32.mrb[13].mxu0  ;;  %v6118_v33 = vld [vmem:[%s8491_s5 + $0x60] ss:$8 sps:$4 sm:$0xff]  }
 0xc56   : > { %v2372_v52 = vadd.f32 %v2366_v51, %v2163_v36  ;;  %v2368_v53 = vpop.f32.mrb[14].mxu0  ;;  %v6117_v36 = vld [vmem:[%s8431_s10 + $0x104] ss:$16 sps:$4 sm:$0xff]   ;;  %2662 = vmatpush1.bf16.msra.mxu1 %v6118_v33  ;;  %v6127_v48 = vld [vmem:[%s8431_s10 + $0x140] ss:$16 sps:$4 sm:$0xff]   ;;  %v2418_v33 = vrot.slane %v2402_v20, %v7049_v9 }
 0xc57   : > { %v2385_v54 = vadd.f32 %v2378_v34, %v2371_v50  ;;  %v2369_v55 = vpop.f32.mrb[15].mxu0  ;;  %3114 = vmatprep.subr.bf16.mxu0 %v6117_v36  ;;  %v6129_v34 = vld [vmem:[%s8431_s10 + $0x144] ss:$16 sps:$4 sm:$0xff]   ;;  %2663 = vmatprep.subr.bf16.mxu1 %v6126_v47  ;;  %v6130_v50 = vld [vmem:[%s8491_s5 + $0x80] ss:$8 sps:$4 sm:$0xff]  }
 0xc58   : > { %v2386_v56 = vadd.f32 %v2382_v49, %v2372_v52  ;;  %3115 = vmatpush1.bf16.msra.mxu0 %v6115_v37  ;;  %v6132_v49 = vld [vmem:[%s8491_s5 + $0x84] ss:$8 sps:$4 sm:$0xff]   ;;  %v6133_v52 = vld [vmem:[%s8431_s10 + $0x160] ss:$16 sps:$4 sm:$0xff]   ;;  %v6138_v53 = vld [vmem:[%s8491_s5 + $0x94] ss:$8 sps:$4 sm:$0xff]  }
 0xc59   : > { %v7367_v60 = vadd.f32 %v6501_v58, %v2385_v54  ;;  %3116 = vmatprep.subr.bf16.mxu0 %v6123_v45  ;;  %v6135_v51 = vld [vmem:[%s8431_s10 + $0x164] ss:$16 sps:$4 sm:$0xff]   ;;  %v6136_v54 = vld [vmem:[%s8491_s5 + $0x90] ss:$8 sps:$4 sm:$0xff]  }
 0xc5a   : > { %v7370_v62 = vadd.f32 %v6502_v61, %v2386_v56  ;;  %2664 = vmatpush1.bf16.msra.mxu1 %v6124_v32  ;;  %v6141_v55 = vld [vmem:[%s8431_s10 + $0x184] ss:$16 sps:$4 sm:$0xff]   ;;  %v6139_v56 = vld [vmem:[%s8431_s10 + $0x180] ss:$16 sps:$4 sm:$0xff]  }
 0xc5b   : > { %2665 = vmatprep.subr.bf16.mxu1 %v6132_v49  ;;  %v6144_v58 = vld [vmem:[%s8491_s5 + $0xa4] ss:$8 sps:$4 sm:$0xff]   ;;  %v6175_v49 = vld [vmem:[%s8431_s10 + $0x48] ss:$16 sps:$4 sm:$0xff]  }
 0xc5c   : > { %v2389_v63 = vadd.f32 %v7370_v62, %v7367_v60  ;;  %3117 = vmatpush1.bf16.msra.mxu0 %v6121_v46  ;;  %v6147_v61 = vld [vmem:[%s8431_s10 + $0x1a4] ss:$16 sps:$4 sm:$0xff]  }
 0xc5d   : > { %3118 = vmatprep.subr.bf16.mxu0 %v6129_v34  ;;  %v6172_v34 = vld [vmem:[%s8431_s10 + $0x28] ss:$16 sps:$4 sm:$0xff]  }
 0xc5e   : > { %2390 = vadd.xlane.f32.xlu0 %v2389_v63  ;;  %2666 = vmatpush1.bf16.msra.mxu1 %v6130_v50  ;;  %v6148_v63 = vld [vmem:[%s8491_s5 + $0xb0] ss:$8 sps:$4 sm:$0xff]   ;;  %v6180_v50 = vld [vmem:[%s8431_s10 + $0x6c] ss:$16 sps:$4 sm:$0xff]  }
 0xc5f   : > { %2667 = vmatprep.subr.bf16.mxu1 %v6138_v53  ;;  %v6181_v53 = vld [vmem:[%s8431_s10 + $0x88] ss:$16 sps:$4 sm:$0xff]  }
 0xc60   : > { %3119 = vmatpush1.bf16.msra.mxu0 %v6127_v48  ;;  %v6177_v48 = vld [vmem:[%s8431_s10 + $0x4c] ss:$16 sps:$4 sm:$0xff]  }
 0xc61   : > { %3120 = vmatprep.subr.bf16.mxu0 %v6135_v51  ;;  %v6178_v51 = vld [vmem:[%s8431_s10 + $0x68] ss:$16 sps:$4 sm:$0xff]  }
 0xc62   : > { %2668 = vmatpush1.bf16.msra.mxu1 %v6136_v54  ;;  %v6186_v54 = vld [vmem:[%s8431_s10 + $0xac] ss:$16 sps:$4 sm:$0xff]  }
 0xc63   : > { %2669 = vmatprep.subr.bf16.mxu1 %v6144_v58  ;;  %v6187_v58 = vld [vmem:[%s8431_s10 + $0xc8] ss:$16 sps:$4 sm:$0xff]  }
 0xc64   : > { %3121 = vmatpush1.bf16.msra.mxu0 %v6133_v52  ;;  %v6183_v52 = vld [vmem:[%s8431_s10 + $0x8c] ss:$16 sps:$4 sm:$0xff]  }
 0xc65   : > { %3122 = vmatprep.subr.bf16.mxu0 %v6141_v55  ;;  %v6184_v55 = vld [vmem:[%s8431_s10 + $0xa8] ss:$16 sps:$4 sm:$0xff]  }
 0xc68   : > { %3123 = vmatpush1.bf16.msra.mxu0 %v6139_v56  ;;  %v6189_v56 = vld [vmem:[%s8431_s10 + $0xcc] ss:$16 sps:$4 sm:$0xff]  }
 0xc69   : > { %3124 = vmatprep.subr.bf16.mxu0 %v6147_v61  ;;  %v6190_v61 = vld [vmem:[%s8431_s10 + $0xe8] ss:$16 sps:$4 sm:$0xff]  }
 0xceb   : > { %v2391_v38 = vpop.xlane.xlu0 %2390 }
 0xcec   : > { %v2393_v39 = vmul.f32 0.00390625, %v2391_v38  ;;  %v2432_v38 = vrot.slane %v2427_v31, %v7049_v9 }
 0xcee   : > { %v7471_v40 = vsub.f32 %v7367_v60, %v2393_v39  ;;  %v7474_v41 = vsub.f32 %v7370_v62, %v2393_v39  ;;  %v6142_v60 = vld [vmem:[%s8491_s5 + $0xa0] ss:$8 sps:$4 sm:$0xff]   ;;  %v2436_v39 = vrot.slane %v2427_v31, %v7260_v21 }
 0xcef   : > { %v6145_v62 = vld [vmem:[%s8431_s10 + $0x1a0] ss:$16 sps:$4 sm:$0xff]   ;;  %2670 = vmatpush1.bf16.msra.mxu1 %v6142_v60  ;;  %v6192_v60 = vld [vmem:[%s8431_s10 + $0xec] ss:$16 sps:$4 sm:$0xff]  }
 0xcf0   : > { %v2396_v42 = vmul.f32 %v7471_v40, %v7471_v40  ;;  %v2397_v43 = vmul.f32 %v7474_v41, %v7474_v41  ;;  %3125 = vmatpush1.bf16.msra.mxu0 %v6145_v62  ;;  %2671 = vmatprep.subr.bf16.mxu1 %v6150_v0  ;;  %v6195_v62 = vld [vmem:[%s8431_s10 + $0x10c] ss:$16 sps:$4 sm:$0xff]   ;;  %v2477_v31 = vld [vmem:[%s8496_s7] sm:$0x3] }
 0xcf1   : > { %3126 = vmatprep.subr.bf16.mxu0 %v6153_v2  ;;  %v6198_v0 = vld [vmem:[%s8431_s10 + $0x12c] ss:$16 sps:$4 sm:$0xff]  }
 0xcf2   : > { %v2398_v44 = vadd.f32 %v2397_v43, %v2396_v42  ;;  %v6201_v2 = vld [vmem:[%s8431_s10 + $0x14c] ss:$16 sps:$4 sm:$0xff]  }
 0xcf3   : > { %2672 = vmatpush1.bf16.msra.mxu1 %v6148_v63  ;;  %v6193_v63 = vld [vmem:[%s8431_s10 + $0x108] ss:$16 sps:$4 sm:$0xff]  }
 0xcf4   : > { %2399 = vadd.xlane.f32.xlu1 %v2398_v44  ;;  %3127 = vmatpush1.bf16.msra.mxu0 %v6151_v1  ;;  %v6196_v1 = vld [vmem:[%s8431_s10 + $0x128] ss:$16 sps:$4 sm:$0xff]  }
 0xcf5   : > { %2673 = vmatprep.subr.bf16.mxu1 %v6156_v3  ;;  %3128 = vmatprep.subr.bf16.mxu0 %v6159_v5  ;;  %v6199_v3 = vld [vmem:[%s8431_s10 + $0x148] ss:$16 sps:$4 sm:$0xff]   ;;  %v6204_v5 = vld [vmem:[%s8431_s10 + $0x16c] ss:$16 sps:$4 sm:$0xff]  }
 0xcf7   : > { %2674 = vmatpush1.bf16.msra.mxu1 %v6154_v13  ;;  %v6207_v13 = vld [vmem:[%s8431_s10 + $0x18c] ss:$16 sps:$4 sm:$0xff]  }
 0xcf8   : > { %3129 = vmatpush1.bf16.msra.mxu0 %v6157_v16  ;;  %2675 = vmatprep.subr.bf16.mxu1 %v6162_v17  ;;  %v6210_v16 = vld [vmem:[%s8431_s10 + $0x1ac] ss:$16 sps:$4 sm:$0xff]   ;;  %v6208_v17 = vld [vmem:[%s8431_s10 + $0x1a8] ss:$16 sps:$4 sm:$0xff]  }
 0xcf9   : > { %5774 = vmatprep.subr.bf16.mxu0 %v6619_v4 }
 0xcfb   : > { %2676 = vmatpush1.bf16.msra.mxu1 %v6160_v19  ;;  %3131 = vmatmul.mubr.bf16.vlgmr.msra.gmra.mrb[16].mxu0 %v7569_v22  ;;  %v6211_v19 = vld [vmem:[%s8431_s10 + $0x1c8] ss:$16 sps:$4 sm:$0xff]  }
 0xcfc   : > { %2677 = vmatprep.subr.bf16.mxu1 %v6165_v23  ;;  %5776 = vmatprep.mubr.msk.bf16.mxu0 %vm6620_vm0, %v6619_v4  ;;  %v6216_v23 = vld [vmem:[%s8431_s10 + $0x1ec] ss:$16 sps:$4 sm:$0xff]  }
 0xcff   : > { %2678 = vmatpush1.bf16.msra.mxu1 %v6163_v14  ;;  %v6214_v14 = vld [vmem:[%s8431_s10 + $0x1e8] ss:$16 sps:$4 sm:$0xff]  }
 0xd00   : > { %2679 = vmatprep.subr.bf16.mxu1 %v6168_v24  ;;  %v2756_v24 = vld [vmem:[%s8432_s11] sm:$0xf] }
 0xd03   : > { %2680 = vmatpush1.bf16.msra.mxu1 %v6166_v25  ;;  %v2761_v25 = vrot.slane %v2756_v24, %v7049_v9 }
 0xd04   : > { %3139 = vmatprep.subr.bf16.mxu1 %v6171_v26  ;;  %v2765_v26 = vrot.slane %v2756_v24, %v7260_v21 }
 0xd81   : > { %v2400_v6 = vpop.xlane.xlu1 %2399 }
 0xd82   : > { %v2401_v57 = vmul.f32 0.003921569, %v2400_v6 }
 0xd84   : > { %6473 = vrsqrt.f32 %v2401_v57  ;;  %vm2405_vm5 = vcmp.eq.f32.partialorder %v2401_v57, inf  ;;  %v2408_v29 = vand.u32 2147483648, %v2401_v57  ;;  %vm2407_vm6 = vcmp.eq.f32.partialorder %v2401_v57, 0.0 }
 0xd8e   : > { %v6474_v27 = vpop.eup %6473 }
 0xd8f   : > { %v2404_v28 = vmul.f32 %v6474_v27, %v2401_v57 }
 0xd91   : > { %v2406_v8 = vsel %vm2405_vm5, %v2401_v57, %v2404_v28 }
 0xd92   : > { %v2409_v12 = vsel %vm2407_vm6, %v2408_v29, %v2406_v8 }
 0xd93   : > { %v2410_v30 = vadd.f32 1e-06, %v2409_v12 }
 0xd95   : > { %6475 = vrcp.f32 %v2410_v30 }
 0xd9f   : > { %v6476_v36 = vpop.eup %6475 }
 0xda0   : > { %v2413_v37 = vmul.f32 %v6476_v36, %v7474_v41  ;;  %v2412_v42 = vmul.f32 %v6476_v36, %v7471_v40  ;;  %v6169_v41 = vld [vmem:[%s8431_s10 + $0x8] ss:$16 sps:$4 sm:$0xff]   ;;  %v6174_v40 = vld [vmem:[%s8431_s10 + $0x2c] ss:$16 sps:$4 sm:$0xff]  }
 0xda2   : > { %v2426_v43 = vmul.f32 %v2422_v35, %v2413_v37  ;;  %v2425_v44 = vmul.f32 %v2418_v33, %v2412_v42  ;;  %v2482_v33 = vrot.slane %v2477_v31, %v7049_v9  ;;  %v2486_v35 = vrot.slane %v2477_v31, %v7260_v21 }
 0xda4   : > { %v7602_v45 = vadd.f32 %v2436_v39, %v2426_v43  ;;  %v7604_v46 = vadd.f32 %v2432_v38, %v2425_v44 }
 0xda6   : > { %v2444_v47 = vpack.c.bf16 %v7602_v45, %v7602_v45  ;;  %v2443_v32 = vpack.c.bf16 %v7604_v46, %v7604_v46 }
 0xda8   : > { %2681 = vmatprep.mubr.bf16.mxu1 %v2444_v47 }
 0xda9   : > { %2682 = vmatmul.mubr.bf16.vlgmr.msra.gmra.mrb[44].mxu1 %v2443_v32  ;;  %v2769_v32 = vrot.slane %v2756_v24, %v7041_v7 }
 0xdaa   : > { %3140 = vmatpush1.bf16.msra.mxu1 %v6169_v41  ;;  %3171 = vmatprep.mubr.bf16.mxu1 %v2691_v15  ;;  %v6205_v15 = vld [vmem:[%s8431_s10 + $0x188] ss:$16 sps:$4 sm:$0xff]   ;;  %v2773_v41 = vrot.slane %v2756_v24, %v7241_v10 }
 0xdab   : > { %3141 = vmatprep.subr.bf16.mxu1 %v6174_v40 }
 0xdae   : > { %3142 = vmatpush1.bf16.msra.mxu1 %v6172_v34 }
 0xdaf   : > { %3143 = vmatprep.subr.bf16.mxu1 %v6177_v48 }
 0xdb2   : > { %3144 = vmatpush1.bf16.msra.mxu1 %v6175_v49 }
 0xdb3   : > { %3145 = vmatprep.subr.bf16.mxu1 %v6180_v50 }
 0xdb6   : > { %3146 = vmatpush1.bf16.msra.mxu1 %v6178_v51 }
 0xdb7   : > { %3147 = vmatprep.subr.bf16.mxu1 %v6183_v52 }
 0xdba   : > { %3148 = vmatpush1.bf16.msra.mxu1 %v6181_v53 }
 0xdbb   : > { %3149 = vmatprep.subr.bf16.mxu1 %v6186_v54 }
 0xdbe   : > { %3150 = vmatpush1.bf16.msra.mxu1 %v6184_v55 }
 0xdbf   : > { %3151 = vmatprep.subr.bf16.mxu1 %v6189_v56 }
 0xdc2   : > { %3152 = vmatpush1.bf16.msra.mxu1 %v6187_v58 }
 0xdc3   : > { %3153 = vmatprep.subr.bf16.mxu1 %v6192_v60 }
 0xdc6   : > { %3154 = vmatpush1.bf16.msra.mxu1 %v6190_v61 }
 0xdc7   : > { %3155 = vmatprep.subr.bf16.mxu1 %v6195_v62 }
 0xdca   : > { %3156 = vmatpush1.bf16.msra.mxu1 %v6193_v63 }
 0xdcb   : > { %3157 = vmatprep.subr.bf16.mxu1 %v6198_v0 }
 0xdce   : > { %3158 = vmatpush1.bf16.msra.mxu1 %v6196_v1  ;;  %v3132_v6 = vpop.f32.mrb[16].mxu0 }
 0xdcf   : > { %3159 = vmatprep.subr.bf16.mxu1 %v6201_v2  ;;  %v3133_v57 = vadd.f32 %v3132_v6, %v2761_v25  ;;  %v3134_v27 = vpop.f32.mrb[17].mxu0 }
 0xdd0   : > { %v3135_v28 = vadd.f32 %v3134_v27, %v2765_v26  ;;  %v3136_v29 = vpop.f32.mrb[18].mxu0 }
 0xdd1   : > { %v3181_v8 = vpack.c.bf16 %v3133_v57, %v3133_v57  ;;  %v3137_v12 = vpop.f32.mrb[19].mxu0 }
 0xdd2   : > { %3160 = vmatpush1.bf16.msra.mxu1 %v6199_v3  ;;  %v3594_v30 = vpack.c.bf16 %v3135_v28, %v3135_v28 }
 0xdd3   : > { %3161 = vmatprep.subr.bf16.mxu1 %v6204_v5 }
 0xdd4   : > { %v3600_v20 = vsel %vm1548_vm1, %v3594_v30, 0 }
 0xdd6   : > { %3162 = vmatpush1.bf16.msra.mxu1 %v6202_v11 }
 0xdd7   : > { %3163 = vmatprep.subr.bf16.mxu1 %v6207_v13 }
 0xdda   : > { %3164 = vmatpush1.bf16.msra.mxu1 %v6205_v15 }
 0xddb   : > { %3165 = vmatprep.subr.bf16.mxu1 %v6210_v16 }
 0xdde   : > { %3166 = vmatpush1.bf16.msra.mxu1 %v6208_v17 }
 0xddf   : > { %3167 = vmatprep.subr.bf16.mxu1 %v6213_v18 }
 0xde2   : > { %3168 = vmatpush1.bf16.msra.mxu1 %v6211_v19 }
 0xde3   : > { %3169 = vmatprep.subr.bf16.mxu1 %v6216_v23 }
 0xde6   : > { %3170 = vmatpush1.bf16.msra.mxu1 %v6214_v14 }
 0xde7   : > { %5798 = vmatprep.subr.bf16.mxu1 %v6619_v4 }
 0xde9   : > { %3172 = vmatmul.mubr.bf16.vlgmr.msra.gmra.mrb[48].mxu1 %v7569_v22  ;;  %v3187_v22 = vsel %vm1548_vm1, %v3181_v8, 0 }
 0xdea   : > { %5800 = vmatprep.mubr.msk.bf16.mxu1 %vm6620_vm0, %v6619_v4  ;;  %5775 = vmatpush3.bf16.xpose.msra.mxu0 %v3187_v22 }
 0xdeb   : > { %5780 = vmatprep.subr.bf16.mxu0 %v6619_v4 }
 0xdef   : > { %5799 = vmatpush3.bf16.xpose.msra.mxu1 %v3600_v20 }
 0xdf0   : > { %5804 = vmatprep.subr.bf16.mxu1 %v6619_v4 }
 0xe7c   : > { %v2683_v36 = vpop.f32.mrb[44].mxu1 }
 0xe7d   : > { %v2684_v37 = vadd.f32 %v2683_v36, %v2482_v33  ;;  %v2685_v38 = vpop.f32.mrb[45].mxu1 }
 0xe7e   : > { %v2686_v39 = vadd.f32 %v2685_v38, %v2486_v35  ;;  %v2687_v42 = vpop.f32.mrb[46].mxu1 }
 0xe7f   : > { %v3180_v43 = vpack.c.bf16 %v2684_v37, %v2684_v37  ;;  %v2688_v44 = vpop.f32.mrb[47].mxu1 }
 0xe80   : > { %v3593_v47 = vpack.c.bf16 %v2686_v39, %v2686_v39 }
 0xe81   : > { %3300 = vrot.lane.b32.xlu1 %v3180_v43, %s8488_s26  ;;  %5777 = vmatmul.mubr.msk.bf16.vlgmr.msra.gmra.mrb[20].mxu0 %vm1548_vm1, %v3180_v43 }
 0xe82   : > { %5801 = vmatmul.mubr.msk.bf16.vlgmr.msra.gmra.mrb[52].mxu1 %vm1548_vm1, %v3593_v47  ;;  %5782 = vmatprep.mubr.msk.bf16.mxu0 %vm6620_vm0, %v6619_v4 }
 0xe83   : > { %5806 = vmatprep.mubr.msk.bf16.mxu1 %vm6620_vm0, %v6619_v4 }
 0xe85   : > { %3803 = vrot.lane.b32.xlu1 %v3594_v30, %s8488_s26 }
 0xe89   : > { %3800 = vrot.lane.b32.xlu1 %v3593_v47, %s8488_s26 }
 0xebc   : > { %v3173_v40 = vpop.f32.mrb[48].mxu1 }
 0xebd   : > { %v3174_v34 = vadd.f32 %v3173_v40, %v2769_v32  ;;  %v3175_v48 = vpop.f32.mrb[49].mxu1 }
 0xebe   : > { %v3176_v49 = vadd.f32 %v3175_v48, %v2773_v41  ;;  %v3177_v50 = vpop.f32.mrb[50].mxu1 }
 0xebf   : > { %v7732_v51 = vpack.c.bf16 %v3174_v34, %v3174_v34  ;;  %v3178_v52 = vpop.f32.mrb[51].mxu1 }
 0xec0   : > { %v7734_v53 = vpack.c.bf16 %v3176_v49, %v3176_v49 }
 0xec1   : > { %v3248_v54 = vsel %vm1617_vm4, %v7732_v51, 0 }
 0xec2   : > { %v3662_v55 = vsel %vm1617_vm4, %v7734_v53, 0  ;;  %5781 = vmatpush3.bf16.msra.mxu0 %v3248_v54 }
 0xec3   : > { %5805 = vmatpush3.bf16.msra.mxu1 %v3662_v55  ;;  %5786 = vmatprep.subr.bf16.mxu0 %v6619_v4 }
 0xec4   : > { %5810 = vmatprep.subr.bf16.mxu1 %v6619_v4 }
 0xef3   : > { %v3301_v28 = vpop.permute.xlu1 %3300 }
 0xef7   : > { %v3804_v30 = vpop.permute.xlu1 %3803 }
 0xef8   : > { %v3809_v20 = vsel %vm1548_vm1, %v3804_v30, 0 }
 0xefb   : > { %v3801_v31 = vpop.permute.xlu1 %3800 }
 0xf54   : > { %v3223_v56 = vpop.f32.mrb[20].mxu0 }
 0xf55   : > { %v5778_v58 = vpop.f32.mrb[21].mxu0  ;;  %v3636_v60 = vpop.f32.mrb[52].mxu1  ;;  %v3229_v61 = vsel %vm1601_vm3, %v3223_v56, -inf }
 0xf56   : > { %v5802_v62 = vpop.f32.mrb[53].mxu1  ;;  %3230 = vmax.xlane.f32.xlu0 %v3229_v61  ;;  %v3226_v63 = vpop.f32.mrb[22].mxu0  ;;  %v3642_v3 = vsel %vm1601_vm3, %v3636_v60, -inf }
 0xf57   : > { %v5779_v0 = vpop.f32.mrb[23].mxu0  ;;  %v3639_v1 = vpop.f32.mrb[54].mxu1 }
 0xf58   : > { %v5803_v2 = vpop.f32.mrb[55].mxu1 }
 0xf59   : > { %v6219_v2 = vld [vmem:[%s8433_s12 + $0x44] ss:$8 sps:$4 sm:$0xff]  }
 0xf5a   : > { %3643 = vmax.xlane.f32.xlu0 %v3642_v3 }
 0xfe3   : > { %v3231_v5 = vpop.xlane.xlu0 %3230 }
 0xfe4   : > { %v3232_v11 = vsub.f32 %v3223_v56, %v3231_v5 }
 0xfe6   : > { %v3233_v13 = vmul.f32 1.442695, %v3232_v11 }
 0xfe7   : > { %v3644_v17 = vpop.xlane.xlu0 %3643 }
 0xfe8   : > { %6477 = vpow2.f32 %v3233_v13  ;;  %v3645_v18 = vsub.f32 %v3636_v60, %v3644_v17  ;;  %v3241_v13 = vstv %s3240_s9  ;;  %v3654_v17 = vstv %s5533_s6  ;;  %s5545_s6 = sld [smem:[#allocation3 + $0x3]]  ;;  %s8343_s9 = scalar_lea.hbm %s8446_s25, %s5688_s24 }
 0xfea   : > { %v3646_v19 = vmul.f32 1.442695, %v3645_v18  ;;  %v6217_v18 = vld [vmem:[%s8433_s12 + $0x40] ss:$8 sps:$4 sm:$0xff]  }
 0xfec   : > { %6479 = vpow2.f32 %v3646_v19 }
 0xff2   : > { %v6478_v15 = vpop.eup %6477 }
 0xff3   : > { %v3235_v16 = vsel %vm1601_vm3, %v6478_v15, 0.0 }
 0xff4   : > { %3236 = vadd.xlane.f32.xlu0 %v3235_v16 }
 0xff6   : > { %v6480_v23 = vpop.eup %6479 }
 0xff7   : > { %v3648_v14 = vsel %vm1601_vm3, %v6480_v23, 0.0 }
0x100a   : > { %3303 = vrot.lane.b32.xlu0 %v3181_v8, %s8488_s26 }
0x1029   : > { %3649 = vadd.xlane.f32.xlu0 %v3648_v14 }
0x1081   : > { %v3237_v24 = vpop.xlane.xlu0 %3236 }
0x1082   : > { %6481 = vrcp.f32 %v3237_v24  ;;  %v6222_v24 = vld [vmem:[%s8433_s12 + $0x54] ss:$8 sps:$4 sm:$0xff]  }
0x1085   : > { %v3304_v6 = vpop.permute.xlu0 %3303 }
0x1086   : > { %v3309_v27 = vsel %vm1548_vm1, %v3304_v6, 0 }
0x108c   : > { %v6482_v25 = vpop.eup %6481 }
0x108d   : > { %v7747_v26 = vmul.f32 %v6482_v25, %v6478_v15  ;;  %v3363_v15 = vstv %s5512_s0  ;;  %s5119_s0 = scalar_lea.sflag [#allocation8], %s7814_s2 }
0x108f   : > { %v3243_v57 = vpack.c.bf16 %v7747_v26, %v7747_v26  ;;  %v3242_v19 = vmul.f32 %v3241_v13, %v7747_v26  ;;  %v6225_v26 = vld [vmem:[%s8433_s12 + $0x64] ss:$8 sps:$4 sm:$0xff]  }
0x1091   : > { %5783 = vmatmul.mubr.msk.bf16.vlgmr.msra.gmra.mrb[24].mxu0 %vm1601_vm3, %v3243_v57  ;;  %v6220_v57 = vld [vmem:[%s8433_s12 + $0x50] ss:$8 sps:$4 sm:$0xff]  }
0x1092   : > { %5787 = vmatpush3.bf16.xpose.msra.mxu0 %v3309_v27  ;;  %5788 = vmatprep.mubr.msk.bf16.mxu0 %vm6620_vm0, %v6619_v4 }
0x1093   : > { %5792 = vmatprep.subr.bf16.mxu0 %v6619_v4 }
0x1099   : > { %5789 = vmatmul.mubr.msk.bf16.vlgmr.msra.gmra.mrb[28].mxu0 %vm1548_vm1, %v3301_v28  ;;  %v6223_v28 = vld [vmem:[%s8433_s12 + $0x60] ss:$8 sps:$4 sm:$0xff]  }
0x109a   : > { %5794 = vmatprep.mubr.msk.bf16.mxu0 %vm6620_vm0, %v6619_v4 }
0x10b6   : > { %v3650_v29 = vpop.xlane.xlu0 %3649 }
0x10b7   : > { %6483 = vrcp.f32 %v3650_v29  ;;  %v6228_v29 = vld [vmem:[%s8433_s12 + $0x74] ss:$8 sps:$4 sm:$0xff]  }
0x10c1   : > { %v6484_v8 = vpop.eup %6483 }
0x10c2   : > { %v7759_v12 = vmul.f32 %v6484_v8, %v6480_v23  ;;  %v6226_v8 = vld [vmem:[%s8433_s12 + $0x70] ss:$8 sps:$4 sm:$0xff]  }
0x10c4   : > { %v3657_v22 = vpack.c.bf16 %v7759_v12, %v7759_v12  ;;  %v3655_v25 = vmul.f32 %v3654_v17, %v7759_v12 }
0x10c6   : > { %5807 = vmatmul.mubr.msk.bf16.vlgmr.msra.gmra.mrb[56].mxu1 %vm1601_vm3, %v3657_v22  ;;  %v3863_v22 = vstv %s5545_s6  ;;  %s6522_s6 = sshll.u32 %s6623_s8, 4  ;;  %s6523_s6 = int_to_ptr.vmem [resolvable:$false] %s6522_s6 }
0x10c7   : > { %5811 = vmatpush3.bf16.xpose.msra.mxu1 %v3809_v20  ;;  %5812 = vmatprep.mubr.msk.bf16.mxu1 %vm6620_vm0, %v6619_v4  ;;  %p6525_p13 = scmp.lt.s32.totalorder %s5147_s29, %s6523_s6 }
0x10c8   : > { %5816 = vmatprep.subr.bf16.mxu1 %v6619_v4 }
0x10ce   : > { %5813 = vmatmul.mubr.msk.bf16.vlgmr.msra.gmra.mrb[60].mxu1 %vm1548_vm1, %v3801_v31 }
0x10cf   : > { %5818 = vmatprep.mubr.msk.bf16.mxu1 %vm6620_vm0, %v6619_v4 }
0x1164   : > { %v7771_v33 = vpop.f32.mrb[24].mxu0 }
0x1165   : > { %v5784_v35 = vpop.f32.mrb[25].mxu0 }
0x1166   : > { %v3287_v36 = vpop.f32.mrb[26].mxu0 }
0x1167   : > { %v5785_v37 = vpop.f32.mrb[27].mxu0 }
0x116c   : > { %v3345_v38 = vpop.f32.mrb[28].mxu0 }
0x116d   : > { %v5790_v39 = vpop.f32.mrb[29].mxu0  ;;  %v3351_v42 = vsel %vm1601_vm3, %v3345_v38, -inf }
0x116e   : > { %3352 = vmax.xlane.f32.xlu1 %v3351_v42  ;;  %v3348_v43 = vpop.f32.mrb[30].mxu0  ;;  %v6231_v39 = vld [vmem:[%s8433_s12 + $0x4] ss:$8 sps:$4 sm:$0xff]  }
0x116f   : > { %v5791_v44 = vpop.f32.mrb[31].mxu0  ;;  %v6229_v43 = vld [vmem:[%s8433_s12] ss:$8 sps:$4 sm:$0xff]  }
0x1199   : > { %v7774_v47 = vpop.f32.mrb[56].mxu1 }
0x119a   : > { %v5808_v32 = vpop.f32.mrb[57].mxu1 }
0x119b   : > { %v3701_v41 = vpop.f32.mrb[58].mxu1 }
0x119c   : > { %v5809_v40 = vpop.f32.mrb[59].mxu1  ;;  %v6234_v41 = vld [vmem:[%s8433_s12 + $0x14] ss:$8 sps:$4 sm:$0xff]  }
0x11a1   : > { %v3845_v34 = vpop.f32.mrb[60].mxu1 }
0x11a2   : > { %v5814_v48 = vpop.f32.mrb[61].mxu1  ;;  %v3851_v4 = vsel %vm1601_vm3, %v3845_v34, -inf }
0x11a3   : > { %3852 = vmax.xlane.f32.xlu0 %v3851_v4  ;;  %v3848_v49 = vpop.f32.mrb[62].mxu1  ;;  %v6232_v48 = vld [vmem:[%s8433_s12 + $0x10] ss:$8 sps:$4 sm:$0xff]   ;;  %v6237_v4 = vld [vmem:[%s8433_s12 + $0x24] ss:$8 sps:$4 sm:$0xff]  }
0x11a4   : > { %v5815_v50 = vpop.f32.mrb[63].mxu1  ;;  %v6235_v49 = vld [vmem:[%s8433_s12 + $0x20] ss:$8 sps:$4 sm:$0xff]  }
0x11a5   : > { %v6240_v50 = vld [vmem:[%s8433_s12 + $0x34] ss:$8 sps:$4 sm:$0xff]  }
0x11fb   : > { %v3353_v52 = vpop.xlane.xlu1 %3352 }
0x11fc   : > { %v3354_v54 = vsub.f32 %v3345_v38, %v3353_v52  ;;  %v6238_v52 = vld [vmem:[%s8433_s12 + $0x30] ss:$8 sps:$4 sm:$0xff]  }
0x11fe   : > { %v3355_v55 = vmul.f32 1.442695, %v3354_v54  ;;  %v6243_v54 = vld [vmem:[%s8433_s12 + $0x84] ss:$8 sps:$4 sm:$0xff]  }
0x1200   : > { %6485 = vpow2.f32 %v3355_v55  ;;  %v6241_v55 = vld [vmem:[%s8433_s12 + $0x80] ss:$8 sps:$4 sm:$0xff]  }
0x120a   : > { %v6486_v56 = vpop.eup %6485 }
0x120b   : > { %v3357_v58 = vsel %vm1601_vm3, %v6486_v56, 0.0 }
0x120c   : > { %3358 = vadd.xlane.f32.xlu0 %v3357_v58  ;;  %v6246_v58 = vld [vmem:[%s8433_s12 + $0x94] ss:$8 sps:$4 sm:$0xff]  }
0x1222   : > { %3368 = vrot.lane.b32.xlu0 %v7732_v51, %s8488_s26 }
0x1226   : > { %3868 = vrot.lane.b32.xlu0 %v7734_v53, %s8488_s26  ;;  %s4025_s26 = sld [smem:[#allocation2]] }
0x122c   : > { %v4026_v36 = vstv %s4025_s26  ;;  %s6524_s26 = scalar_lea.vmem %s6523_s6, 256 }
0x122d   : > { %p6526_p0 = scmp.lt.s32.totalorder %s6524_s26, %s6518_s14 }
0x122f   : > { %p6527_p1 = por %p6526_p0, %p6525_p13 }
0x1230   : > { %v3853_v60 = vpop.xlane.xlu0 %3852 }
0x1231   : > { %v3854_v61 = vsub.f32 %v3845_v34, %v3853_v60  ;;  %v6244_v60 = vld [vmem:[%s8433_s12 + $0x90] ss:$8 sps:$4 sm:$0xff]   ;;  %p6528_p2 = pnand %p6527_p1, %p6521_p12 }
0x1233   : > { %v3855_v62 = vmul.f32 1.442695, %v3854_v61  ;;  %v6249_v61 = vld [vmem:[%s8433_s12 + $0xa4] ss:$8 sps:$4 sm:$0xff]  }
0x1235   : > { %6487 = vpow2.f32 %v3855_v62  ;;  %v6252_v62 = vld [vmem:[%s8433_s12 + $0xb4] ss:$8 sps:$4 sm:$0xff]  }
0x123f   : > { %v6488_v63 = vpop.eup %6487 }
0x1240   : > { %v3857_v0 = vsel %vm1601_vm3, %v6488_v63, 0.0 }
0x1241   : > { %3858 = vadd.xlane.f32.xlu1 %v3857_v0  ;;  %v6255_v0 = vld [vmem:[%s8433_s12 + $0xc4] ss:$8 sps:$4 sm:$0xff]  }
0x1299   : > { %v3359_v1 = vpop.xlane.xlu0 %3358 }
0x129a   : > { %6489 = vrcp.f32 %v3359_v1  ;;  %v6253_v1 = vld [vmem:[%s8433_s12 + $0xc0] ss:$8 sps:$4 sm:$0xff]  }
0x129d   : > { %v3369_v51 = vpop.permute.xlu0 %3368 }
0x129e   : > { %v3374_v53 = vsel %vm1617_vm4, %v3369_v51, 0  ;;  %v6258_v51 = vld [vmem:[%s8433_s12 + $0xd4] ss:$8 sps:$4 sm:$0xff]  }
0x129f   : > { %5793 = vmatpush3.bf16.msra.mxu0 %v3374_v53  ;;  %v6256_v53 = vld [vmem:[%s8433_s12 + $0xd0] ss:$8 sps:$4 sm:$0xff]  }
0x12a0   : > { %3468 = vmatprep.subr.bf16.mxu0 %v6219_v2  ;;  %v3704_v2 = vpack.c.bf16 %v7774_v47, %v7774_v47  ;;  %v6259_v47 = vld [vmem:[%s8433_s12 + $0xe0] ss:$8 sps:$4 sm:$0xff]  }
0x12a1   : > { %v3869_v3 = vpop.permute.xlu0 %3868 }
0x12a2   : > { %v3874_v5 = vsel %vm1617_vm4, %v3869_v3, 0  ;;  %v6261_v3 = vld [vmem:[%s8433_s12 + $0xe4] ss:$8 sps:$4 sm:$0xff]  }
0x12a3   : > { %5817 = vmatpush3.bf16.msra.mxu1 %v3874_v5  ;;  %v6264_v5 = vld [vmem:[%s8433_s12 + $0xf4] ss:$8 sps:$4 sm:$0xff]  }
0x12a4   : > { %v6490_v11 = vpop.eup %6489 }
0x12a5   : > { %v3361_v16 = vmul.f32 %v6490_v11, %v6486_v56  ;;  %v3290_v56 = vpack.c.bf16 %v7771_v33, %v7771_v33  ;;  %v6247_v33 = vld [vmem:[%s8433_s12 + $0xa0] ss:$8 sps:$4 sm:$0xff]  }
0x12a7   : > { %v3364_v23 = vmul.f32 %v3363_v15, %v3361_v16  ;;  %v3366_v14 = vpack.c.bf16 %v3361_v16, %v3361_v16 }
0x12a9   : > { %5795 = vmatmul.mubr.msk.bf16.vlgmr.msra.gmra.mrb[32].mxu0 %vm1601_vm3, %v3366_v14  ;;  %v3365_v6 = vadd.f32 %v3364_v23, %v3242_v19 }
0x12aa   : > { %3469 = vmatpush1.bf16.msra.mxu0 %v6217_v18  ;;  %3500 = vmatprep.mubr.bf16.mxu0 %v6622_v59 }
0x12ab   : > { %3470 = vmatprep.subr.bf16.mxu0 %v6222_v24  ;;  %v3656_v27 = vadd.f32 %v3655_v25, %v3365_v6 }
0x12ae   : > { %3471 = vmatpush1.bf16.msra.mxu0 %v6220_v57 }
0x12af   : > { %3472 = vmatprep.subr.bf16.mxu0 %v6225_v26 }
0x12b2   : > { %3473 = vmatpush1.bf16.msra.mxu0 %v6223_v28 }
0x12b3   : > { %3474 = vmatprep.subr.bf16.mxu0 %v6228_v29 }
0x12b6   : > { %3475 = vmatpush1.bf16.msra.mxu0 %v6226_v8 }
0x12b7   : > { %3552 = vmatprep.subr.bf16.mxu0 %v6231_v39 }
0x12ce   : > { %v3859_v12 = vpop.xlane.xlu1 %3858 }
0x12cf   : > { %6491 = vrcp.f32 %v3859_v12 }
0x12d9   : > { %v6492_v30 = vpop.eup %6491 }
0x12da   : > { %v3861_v20 = vmul.f32 %v6492_v30, %v6488_v63  ;;  %v6250_v63 = vld [vmem:[%s8433_s12 + $0xb0] ss:$8 sps:$4 sm:$0xff]  }
0x12dc   : > { %v3866_v31 = vpack.c.bf16 %v3861_v20, %v3861_v20  ;;  %v3864_v35 = vmul.f32 %v3863_v22, %v3861_v20  ;;  %v4011_v20 = vld [vmem:[%s8434_s13] sm:$0x3] }
0x12de   : > { %5819 = vmatmul.mubr.msk.bf16.vlgmr.msra.gmra.mrb[64].mxu1 %vm1601_vm3, %v3866_v31  ;;  %v3865_v37 = vadd.f32 %v3864_v35, %v3656_v27  ;;  %v4016_v31 = vrot.slane %v4011_v20, %v7049_v9 }
0x12e0   : > { %v4027_v38 = vadd.f32 %v4026_v36, %v3865_v37  ;;  %v4020_v36 = vrot.slane %v4011_v20, %v7260_v21  ;;  %v6322_v20 = vld [vmem:[%s8439_s18 + $0x128] ss:$16 sps:$4 sm:$0xff]  }
0x12e2   : > { %4028 = vst.msk [vmem:[%s7818_s1] sm:$0xff] %vm1601_vm3, %v4027_v38 }
0x137c   : > { %v3410_v42 = vpop.f32.mrb[32].mxu0 }
0x137d   : > { %v3416_v44 = vpack.c.bf16 %v3410_v42, %v3410_v42  ;;  %v5796_v32 = vpop.f32.mrb[33].mxu0 }
0x137e   : > { %v3413_v40 = vpop.f32.mrb[34].mxu0 }
0x137f   : > { %v5797_v34 = vpop.f32.mrb[35].mxu0  ;;  %5522 = vmatmul.mubr.msk.bf16.vlgmr.msra.gmra.mrb[36].mxu0 %vm1548_vm1, %v3416_v44 }
0x1380   : > { %3553 = vmatpush1.bf16.msra.mxu0 %v6229_v43  ;;  %3584 = vmatprep.mubr.bf16.mxu0 %v6622_v59 }
0x1381   : > { %3554 = vmatprep.subr.bf16.mxu0 %v6234_v41 }
0x1384   : > { %3555 = vmatpush1.bf16.msra.mxu0 %v6232_v48  ;;  %v6265_v48 = vld [vmem:[%s8439_s18] ss:$16 sps:$4 sm:$0xff]  }
0x1385   : > { %3556 = vmatprep.subr.bf16.mxu0 %v6237_v4  ;;  %v6267_v4 = vld [vmem:[%s8439_s18 + $0x4] ss:$16 sps:$4 sm:$0xff]  }
0x1386   : > { %4490 = vmatprep.subr.bf16.mxu1 %v6267_v4  ;;  %v6343_v4 = vld [vmem:[%s8439_s18 + $0x1a0] ss:$16 sps:$4 sm:$0xff]  }
0x1387   : > { %4491 = vmatpush1.bf16.msra.mxu1 %v6265_v48  ;;  %v6348_v48 = vld [vmem:[%s8439_s18 + $0x1ac] ss:$16 sps:$4 sm:$0xff]  }
0x1388   : > { %3557 = vmatpush1.bf16.msra.mxu0 %v6235_v49  ;;  %v6268_v49 = vld [vmem:[%s8439_s18 + $0x8] ss:$16 sps:$4 sm:$0xff]  }
0x1389   : > { %3558 = vmatprep.subr.bf16.mxu0 %v6240_v50  ;;  %v6276_v50 = vld [vmem:[%s8439_s18 + $0x2c] ss:$16 sps:$4 sm:$0xff]  }
0x138c   : > { %3559 = vmatpush1.bf16.msra.mxu0 %v6238_v52  ;;  %v6271_v52 = vld [vmem:[%s8439_s18 + $0x20] ss:$16 sps:$4 sm:$0xff]  }
0x138d   : > { %3756 = vmatprep.subr.bf16.mxu0 %v6243_v54  ;;  %v6274_v54 = vld [vmem:[%s8439_s18 + $0x28] ss:$16 sps:$4 sm:$0xff]  }
0x138f   : > { %5531 = vmatmul.mubr.msk.bf16.vlgmr.msra.gmra.mrb[40].mxu0 %vm1548_vm1, %v3290_v56  ;;  %v6282_v56 = vld [vmem:[%s8439_s18 + $0x4c] ss:$16 sps:$4 sm:$0xff]  }
0x1390   : > { %3757 = vmatpush1.bf16.msra.mxu0 %v6241_v55  ;;  %3788 = vmatprep.mubr.bf16.mxu0 %v6622_v59  ;;  %v6279_v55 = vld [vmem:[%s8439_s18 + $0x44] ss:$16 sps:$4 sm:$0xff]  }
0x1391   : > { %3758 = vmatprep.subr.bf16.mxu0 %v6246_v58  ;;  %v6277_v58 = vld [vmem:[%s8439_s18 + $0x40] ss:$16 sps:$4 sm:$0xff]  }
0x1394   : > { %3759 = vmatpush1.bf16.msra.mxu0 %v6244_v60  ;;  %v6280_v60 = vld [vmem:[%s8439_s18 + $0x48] ss:$16 sps:$4 sm:$0xff]  }
0x1395   : > { %3760 = vmatprep.subr.bf16.mxu0 %v6249_v61  ;;  %v6285_v61 = vld [vmem:[%s8439_s18 + $0x64] ss:$16 sps:$4 sm:$0xff]  }
0x1398   : > { %3761 = vmatpush1.bf16.msra.mxu0 %v6247_v33  ;;  %v6288_v33 = vld [vmem:[%s8439_s18 + $0x6c] ss:$16 sps:$4 sm:$0xff]  }
0x1399   : > { %3762 = vmatprep.subr.bf16.mxu0 %v6252_v62  ;;  %v6283_v62 = vld [vmem:[%s8439_s18 + $0x60] ss:$16 sps:$4 sm:$0xff]  }
0x139c   : > { %3763 = vmatpush1.bf16.msra.mxu0 %v6250_v63  ;;  %v6286_v63 = vld [vmem:[%s8439_s18 + $0x68] ss:$16 sps:$4 sm:$0xff]  }
0x139d   : > { %3968 = vmatprep.subr.bf16.mxu0 %v6255_v0  ;;  %v6291_v0 = vld [vmem:[%s8439_s18 + $0x84] ss:$16 sps:$4 sm:$0xff]  }
0x139f   : > { %5543 = vmatmul.mubr.msk.bf16.vlgmr.msra.gmra.mrb[44].mxu0 %vm1548_vm1, %v3704_v2  ;;  %v6289_v2 = vld [vmem:[%s8439_s18 + $0x80] ss:$16 sps:$4 sm:$0xff]  }
0x13a0   : > { %3969 = vmatpush1.bf16.msra.mxu0 %v6253_v1  ;;  %4000 = vmatprep.mubr.bf16.mxu0 %v6622_v59  ;;  %v6262_v59 = vld [vmem:[%s8433_s12 + $0xf0] ss:$8 sps:$4 sm:$0xff]   ;;  %v6294_v1 = vld [vmem:[%s8439_s18 + $0x8c] ss:$16 sps:$4 sm:$0xff]  }
0x13a1   : > { %3970 = vmatprep.subr.bf16.mxu0 %v6258_v51  ;;  %v6292_v51 = vld [vmem:[%s8439_s18 + $0x88] ss:$16 sps:$4 sm:$0xff]  }
0x13a4   : > { %3971 = vmatpush1.bf16.msra.mxu0 %v6256_v53  ;;  %v6297_v53 = vld [vmem:[%s8439_s18 + $0xa4] ss:$16 sps:$4 sm:$0xff]  }
0x13a5   : > { %3972 = vmatprep.subr.bf16.mxu0 %v6261_v3  ;;  %v6300_v3 = vld [vmem:[%s8439_s18 + $0xac] ss:$16 sps:$4 sm:$0xff]  }
0x13a8   : > { %3973 = vmatpush1.bf16.msra.mxu0 %v6259_v47  ;;  %v6295_v47 = vld [vmem:[%s8439_s18 + $0xa0] ss:$16 sps:$4 sm:$0xff]  }
0x13a9   : > { %3974 = vmatprep.subr.bf16.mxu0 %v6264_v5  ;;  %v6298_v5 = vld [vmem:[%s8439_s18 + $0xa8] ss:$16 sps:$4 sm:$0xff]  }
0x13ac   : > { %3975 = vmatpush1.bf16.msra.mxu0 %v6262_v59  ;;  %v6303_v59 = vld [vmem:[%s8439_s18 + $0xc4] ss:$16 sps:$4 sm:$0xff]  }
0x13b1   : > { %v3910_v11 = vpop.f32.mrb[64].mxu1 }
0x13b2   : > { %v3916_v13 = vpack.c.bf16 %v3910_v11, %v3910_v11  ;;  %v5820_v15 = vpop.f32.mrb[65].mxu1  ;;  %v6306_v11 = vld [vmem:[%s8439_s18 + $0xcc] ss:$16 sps:$4 sm:$0xff]  }
0x13b3   : > { %v3913_v16 = vpop.f32.mrb[66].mxu1  ;;  %v6304_v15 = vld [vmem:[%s8439_s18 + $0xc8] ss:$16 sps:$4 sm:$0xff]  }
0x13b4   : > { %v5821_v17 = vpop.f32.mrb[67].mxu1  ;;  %5555 = vmatmul.mubr.msk.bf16.vlgmr.msra.gmra.mrb[48].mxu0 %vm1548_vm1, %v3916_v13  ;;  %v6301_v13 = vld [vmem:[%s8439_s18 + $0xc0] ss:$16 sps:$4 sm:$0xff]  }
0x1452   : > { %v3502_v18 = vpop.f32.mrb[36].mxu0 }
0x1453   : > { %v3504_v19 = vpop.f32.mrb[37].mxu0 }
0x1454   : > { %v3506_v23 = vpop.f32.mrb[38].mxu0 }
0x1455   : > { %v3507_v14 = vpop.f32.mrb[39].mxu0 }
0x1462   : > { %v3586_v24 = vpop.f32.mrb[40].mxu0 }
0x1463   : > { %v3587_v25 = vadd.f32 %v3586_v24, %v3502_v18  ;;  %v3588_v6 = vpop.f32.mrb[41].mxu0 }
0x1464   : > { %v3589_v57 = vadd.f32 %v3588_v6, %v3504_v19  ;;  %v3590_v26 = vpop.f32.mrb[42].mxu0  ;;  %v6312_v6 = vld [vmem:[%s8439_s18 + $0xec] ss:$16 sps:$4 sm:$0xff]  }
0x1465   : > { %v3591_v27 = vpop.f32.mrb[43].mxu0  ;;  %v6310_v26 = vld [vmem:[%s8439_s18 + $0xe8] ss:$16 sps:$4 sm:$0xff]  }
0x1466   : > { %v6315_v27 = vld [vmem:[%s8439_s18 + $0x104] ss:$16 sps:$4 sm:$0xff]  }
0x1472   : > { %v3790_v28 = vpop.f32.mrb[44].mxu0 }
0x1473   : > { %v3797_v29 = vadd.f32 %v3790_v28, %v3587_v25  ;;  %v3792_v8 = vpop.f32.mrb[45].mxu0  ;;  %v6309_v25 = vld [vmem:[%s8439_s18 + $0xe4] ss:$16 sps:$4 sm:$0xff]   ;;  %v6318_v28 = vld [vmem:[%s8439_s18 + $0x10c] ss:$16 sps:$4 sm:$0xff]  }
0x1474   : > { %v3798_v12 = vadd.f32 %v3792_v8, %v3589_v57  ;;  %v3794_v30 = vpop.f32.mrb[46].mxu0  ;;  %v6307_v57 = vld [vmem:[%s8439_s18 + $0xe0] ss:$16 sps:$4 sm:$0xff]   ;;  %v6316_v8 = vld [vmem:[%s8439_s18 + $0x108] ss:$16 sps:$4 sm:$0xff]  }
0x1475   : > { %v3795_v22 = vpop.f32.mrb[47].mxu0  ;;  %v6324_v30 = vld [vmem:[%s8439_s18 + $0x12c] ss:$16 sps:$4 sm:$0xff]  }
0x1476   : > { %v6319_v22 = vld [vmem:[%s8439_s18 + $0x120] ss:$16 sps:$4 sm:$0xff]  }
0x1487   : > { %v4002_v35 = vpop.f32.mrb[48].mxu0 }
0x1488   : > { %v4009_v37 = vadd.f32 %v4002_v35, %v3797_v29  ;;  %v4004_v38 = vpop.f32.mrb[49].mxu0  ;;  %v6313_v29 = vld [vmem:[%s8439_s18 + $0x100] ss:$16 sps:$4 sm:$0xff]   ;;  %v6330_v35 = vld [vmem:[%s8439_s18 + $0x14c] ss:$16 sps:$4 sm:$0xff]  }
0x1489   : > { %v4010_v39 = vadd.f32 %v4004_v38, %v3798_v12  ;;  %v4006_v42 = vpop.f32.mrb[50].mxu0  ;;  %v6321_v12 = vld [vmem:[%s8439_s18 + $0x124] ss:$16 sps:$4 sm:$0xff]  }
0x148a   : > { %v4023_v43 = vadd.f32 %v4016_v31, %v4009_v37  ;;  %v4007_v44 = vpop.f32.mrb[51].mxu0  ;;  %v6327_v31 = vld [vmem:[%s8439_s18 + $0x144] ss:$16 sps:$4 sm:$0xff]   ;;  %v6328_v37 = vld [vmem:[%s8439_s18 + $0x148] ss:$16 sps:$4 sm:$0xff]  }
0x148b   : > { %v4024_v32 = vadd.f32 %v4020_v36, %v4010_v39  ;;  %v6325_v36 = vld [vmem:[%s8439_s18 + $0x140] ss:$16 sps:$4 sm:$0xff]   ;;  %v6333_v38 = vld [vmem:[%s8439_s18 + $0x164] ss:$16 sps:$4 sm:$0xff]   ;;  %v6336_v39 = vld [vmem:[%s8439_s18 + $0x16c] ss:$16 sps:$4 sm:$0xff]  }
0x148c   : > { %v4029_v41 = vadd.f32 %v4023_v43, %v7604_v46  ;;  %v6270_v46 = vld [vmem:[%s8439_s18 + $0xc] ss:$16 sps:$4 sm:$0xff]   ;;  %v6331_v42 = vld [vmem:[%s8439_s18 + $0x160] ss:$16 sps:$4 sm:$0xff]   ;;  %v6334_v43 = vld [vmem:[%s8439_s18 + $0x168] ss:$16 sps:$4 sm:$0xff]  }
0x148d   : > { %v4030_v40 = vadd.f32 %v4024_v32, %v7602_v45  ;;  %v6273_v45 = vld [vmem:[%s8439_s18 + $0x24] ss:$16 sps:$4 sm:$0xff]   ;;  %4531 = vmatprep.subr.bf16.mxu0 %v6270_v46  ;;  %v6342_v32 = vld [vmem:[%s8439_s18 + $0x18c] ss:$16 sps:$4 sm:$0xff]  }
0x148e   : > { %4532 = vmatpush1.bf16.msra.mxu0 %v6268_v49  ;;  %4492 = vmatprep.subr.bf16.mxu1 %v6273_v45  ;;  %v6339_v44 = vld [vmem:[%s8439_s18 + $0x184] ss:$16 sps:$4 sm:$0xff]   ;;  %v6346_v49 = vld [vmem:[%s8439_s18 + $0x1a8] ss:$16 sps:$4 sm:$0xff]   ;;  %v6354_v45 = vld [vmem:[%s8439_s18 + $0x1cc] ss:$16 sps:$4 sm:$0xff]  }
0x148f   : > { %v4031_v34 = vadd.f32 %v4030_v40, %v4029_v41  ;;  %4533 = vmatprep.subr.bf16.mxu0 %v6276_v50  ;;  %4493 = vmatpush1.bf16.msra.mxu1 %v6271_v52  ;;  %v6351_v46 = vld [vmem:[%s8439_s18 + $0x1c4] ss:$16 sps:$4 sm:$0xff]   ;;  %v6349_v50 = vld [vmem:[%s8439_s18 + $0x1c0] ss:$16 sps:$4 sm:$0xff]   ;;  %v6352_v52 = vld [vmem:[%s8439_s18 + $0x1c8] ss:$16 sps:$4 sm:$0xff]  }
0x1490   : > { %4494 = vmatprep.subr.bf16.mxu1 %v6279_v55  ;;  %v6360_v55 = vld [vmem:[%s8439_s18 + $0x1ec] ss:$16 sps:$4 sm:$0xff]  }
0x1491   : > { %4032 = vadd.xlane.f32.xlu1 %v4031_v34  ;;  %v6345_v34 = vld [vmem:[%s8439_s18 + $0x1a4] ss:$16 sps:$4 sm:$0xff]  }
0x1492   : > { %4534 = vmatpush1.bf16.msra.mxu0 %v6274_v54  ;;  %v6357_v54 = vld [vmem:[%s8439_s18 + $0x1e4] ss:$16 sps:$4 sm:$0xff]  }
0x1493   : > { %4535 = vmatprep.subr.bf16.mxu0 %v6282_v56  ;;  %4495 = vmatpush1.bf16.msra.mxu1 %v6277_v58  ;;  %v6355_v56 = vld [vmem:[%s8439_s18 + $0x1e0] ss:$16 sps:$4 sm:$0xff]   ;;  %v6358_v58 = vld [vmem:[%s8439_s18 + $0x1e8] ss:$16 sps:$4 sm:$0xff]  }
0x1494   : > { %4496 = vmatprep.subr.bf16.mxu1 %v6285_v61  ;;  %v6366_v61 = vld [vmem:[%s8441_s20 + $0x104] ss:$8 sps:$4 sm:$0xff]  }
0x1496   : > { %4536 = vmatpush1.bf16.msra.mxu0 %v6280_v60  ;;  %v6363_v60 = vld [vmem:[%s8441_s20 + $0x4] ss:$8 sps:$4 sm:$0xff]  }
0x1497   : > { %4537 = vmatprep.subr.bf16.mxu0 %v6288_v33  ;;  %4497 = vmatpush1.bf16.msra.mxu1 %v6283_v62 }
0x1498   : > { %4498 = vmatprep.subr.bf16.mxu1 %v6291_v0 }
0x149a   : > { %4538 = vmatpush1.bf16.msra.mxu0 %v6286_v63 }
0x149b   : > { %4539 = vmatprep.subr.bf16.mxu0 %v6294_v1  ;;  %4499 = vmatpush1.bf16.msra.mxu1 %v6289_v2 }
0x149c   : > { %4500 = vmatprep.subr.bf16.mxu1 %v6297_v53 }
0x149e   : > { %4540 = vmatpush1.bf16.msra.mxu0 %v6292_v51 }
0x149f   : > { %4541 = vmatprep.subr.bf16.mxu0 %v6300_v3  ;;  %4501 = vmatpush1.bf16.msra.mxu1 %v6295_v47  ;;  %v4043_v3 = vld [vmem:[%s8437_s16] sm:$0x3] }
0x14a0   : > { %4502 = vmatprep.subr.bf16.mxu1 %v6303_v59  ;;  %v4068_v47 = vld [vmem:[%s8438_s17] sm:$0x3]  ;;  %v4063_v59 = vrot.slane %v4043_v3, %v7260_v21 }
0x14a2   : > { %4542 = vmatpush1.bf16.msra.mxu0 %v6298_v5  ;;  %v4059_v5 = vrot.slane %v4043_v3, %v7049_v9  ;;  %v6430_v3 = vld [vmem:[%s8441_s20 + $0x1b0] ss:$8 sps:$4 sm:$0xff]  }
0x14a3   : > { %4543 = vmatprep.subr.bf16.mxu0 %v6306_v11  ;;  %4503 = vmatpush1.bf16.msra.mxu1 %v6301_v13 }
0x14a4   : > { %4504 = vmatprep.subr.bf16.mxu1 %v6309_v25 }
0x14a6   : > { %4544 = vmatpush1.bf16.msra.mxu0 %v6304_v15  ;;  %v4073_v15 = vrot.slane %v4068_v47, %v7049_v9 }
0x14a7   : > { %4545 = vmatprep.subr.bf16.mxu0 %v6312_v6  ;;  %4505 = vmatpush1.bf16.msra.mxu1 %v6307_v57 }
0x14a8   : > { %4506 = vmatprep.subr.bf16.mxu1 %v6315_v27  ;;  %v6372_v27 = vld [vmem:[%s8441_s20 + $0x114] ss:$8 sps:$4 sm:$0xff]  }
0x14aa   : > { %4546 = vmatpush1.bf16.msra.mxu0 %v6310_v26  ;;  %v6369_v26 = vld [vmem:[%s8441_s20 + $0x14] ss:$8 sps:$4 sm:$0xff]  }
0x14ab   : > { %4547 = vmatprep.subr.bf16.mxu0 %v6318_v28  ;;  %4507 = vmatpush1.bf16.msra.mxu1 %v6313_v29  ;;  %v6367_v28 = vld [vmem:[%s8441_s20 + $0x10] ss:$8 sps:$4 sm:$0xff]  }
0x14ac   : > { %4508 = vmatprep.subr.bf16.mxu1 %v6321_v12  ;;  %v6370_v29 = vld [vmem:[%s8441_s20 + $0x110] ss:$8 sps:$4 sm:$0xff]   ;;  %v6378_v12 = vld [vmem:[%s8441_s20 + $0x124] ss:$8 sps:$4 sm:$0xff]  }
0x14ae   : > { %4548 = vmatpush1.bf16.msra.mxu0 %v6316_v8  ;;  %v6375_v8 = vld [vmem:[%s8441_s20 + $0x24] ss:$8 sps:$4 sm:$0xff]  }
0x14af   : > { %4549 = vmatprep.subr.bf16.mxu0 %v6324_v30  ;;  %4509 = vmatpush1.bf16.msra.mxu1 %v6319_v22  ;;  %v6373_v30 = vld [vmem:[%s8441_s20 + $0x20] ss:$8 sps:$4 sm:$0xff]  }
0x14b0   : > { %4510 = vmatprep.subr.bf16.mxu1 %v6327_v31  ;;  %v6376_v22 = vld [vmem:[%s8441_s20 + $0x120] ss:$8 sps:$4 sm:$0xff]   ;;  %v6384_v31 = vld [vmem:[%s8441_s20 + $0x134] ss:$8 sps:$4 sm:$0xff]  }
0x14b2   : > { %4550 = vmatpush1.bf16.msra.mxu0 %v6322_v20  ;;  %v6381_v20 = vld [vmem:[%s8441_s20 + $0x34] ss:$8 sps:$4 sm:$0xff]  }
0x14b3   : > { %4551 = vmatprep.subr.bf16.mxu0 %v6330_v35  ;;  %4511 = vmatpush1.bf16.msra.mxu1 %v6325_v36  ;;  %v6379_v35 = vld [vmem:[%s8441_s20 + $0x30] ss:$8 sps:$4 sm:$0xff]  }
0x14b4   : > { %4512 = vmatprep.subr.bf16.mxu1 %v6333_v38  ;;  %v6382_v36 = vld [vmem:[%s8441_s20 + $0x130] ss:$8 sps:$4 sm:$0xff]   ;;  %v6390_v38 = vld [vmem:[%s8441_s20 + $0x144] ss:$8 sps:$4 sm:$0xff]  }
0x14b6   : > { %4552 = vmatpush1.bf16.msra.mxu0 %v6328_v37  ;;  %v6387_v37 = vld [vmem:[%s8441_s20 + $0x44] ss:$8 sps:$4 sm:$0xff]  }
0x14b7   : > { %4553 = vmatprep.subr.bf16.mxu0 %v6336_v39  ;;  %4513 = vmatpush1.bf16.msra.mxu1 %v6331_v42  ;;  %v6385_v39 = vld [vmem:[%s8441_s20 + $0x40] ss:$8 sps:$4 sm:$0xff]  }
0x14b8   : > { %4514 = vmatprep.subr.bf16.mxu1 %v6339_v44  ;;  %v6388_v42 = vld [vmem:[%s8441_s20 + $0x140] ss:$8 sps:$4 sm:$0xff]   ;;  %v6396_v44 = vld [vmem:[%s8441_s20 + $0x154] ss:$8 sps:$4 sm:$0xff]  }
0x14ba   : > { %4554 = vmatpush1.bf16.msra.mxu0 %v6334_v43  ;;  %v6393_v43 = vld [vmem:[%s8441_s20 + $0x54] ss:$8 sps:$4 sm:$0xff]  }
0x14bb   : > { %4555 = vmatprep.subr.bf16.mxu0 %v6342_v32  ;;  %v6391_v32 = vld [vmem:[%s8441_s20 + $0x50] ss:$8 sps:$4 sm:$0xff]  }
0x151e   : > { %v4033_v16 = vpop.xlane.xlu1 %4032 }
0x151f   : > { %v4034_v17 = vmul.f32 0.00390625, %v4033_v16  ;;  %v4077_v16 = vrot.slane %v4068_v47, %v7260_v21  ;;  %v6435_v47 = vld [vmem:[%s8441_s20 + $0xc4] ss:$8 sps:$4 sm:$0xff]  }
0x1521   : > { %v7996_v18 = vsub.f32 %v4029_v41, %v4034_v17  ;;  %v7998_v19 = vsub.f32 %v4030_v40, %v4034_v17  ;;  %v6337_v41 = vld [vmem:[%s8439_s18 + $0x180] ss:$16 sps:$4 sm:$0xff]   ;;  %v6340_v40 = vld [vmem:[%s8439_s18 + $0x188] ss:$16 sps:$4 sm:$0xff]  }
0x1522   : > { %4515 = vmatpush1.bf16.msra.mxu1 %v6337_v41  ;;  %4556 = vmatpush1.bf16.msra.mxu0 %v6340_v40  ;;  %v6394_v41 = vld [vmem:[%s8441_s20 + $0x150] ss:$8 sps:$4 sm:$0xff]   ;;  %v6399_v40 = vld [vmem:[%s8441_s20 + $0x64] ss:$8 sps:$4 sm:$0xff]  }
0x1523   : > { %v4037_v23 = vmul.f32 %v7996_v18, %v7996_v18  ;;  %v4038_v14 = vmul.f32 %v7998_v19, %v7998_v19  ;;  %4516 = vmatprep.subr.bf16.mxu1 %v6345_v34  ;;  %4557 = vmatprep.subr.bf16.mxu0 %v6348_v48  ;;  %v6402_v34 = vld [vmem:[%s8441_s20 + $0x164] ss:$8 sps:$4 sm:$0xff]   ;;  %v6397_v48 = vld [vmem:[%s8441_s20 + $0x60] ss:$8 sps:$4 sm:$0xff]  }
0x1525   : > { %v4039_v24 = vadd.f32 %v4038_v14, %v4037_v23 }
0x1526   : > { %4517 = vmatpush1.bf16.msra.mxu1 %v6343_v4  ;;  %4558 = vmatpush1.bf16.msra.mxu0 %v6346_v49  ;;  %v6400_v4 = vld [vmem:[%s8441_s20 + $0x160] ss:$8 sps:$4 sm:$0xff]   ;;  %v6405_v49 = vld [vmem:[%s8441_s20 + $0x74] ss:$8 sps:$4 sm:$0xff]  }
0x1527   : > { %4040 = vadd.xlane.f32.xlu0 %v4039_v24  ;;  %4518 = vmatprep.subr.bf16.mxu1 %v6351_v46  ;;  %v6408_v46 = vld [vmem:[%s8441_s20 + $0x174] ss:$8 sps:$4 sm:$0xff]  }
0x1528   : > { %4559 = vmatprep.subr.bf16.mxu0 %v6354_v45  ;;  %v6403_v45 = vld [vmem:[%s8441_s20 + $0x70] ss:$8 sps:$4 sm:$0xff]  }
0x152a   : > { %4519 = vmatpush1.bf16.msra.mxu1 %v6349_v50  ;;  %4560 = vmatpush1.bf16.msra.mxu0 %v6352_v52  ;;  %v6406_v50 = vld [vmem:[%s8441_s20 + $0x170] ss:$8 sps:$4 sm:$0xff]   ;;  %v6411_v52 = vld [vmem:[%s8441_s20 + $0x84] ss:$8 sps:$4 sm:$0xff]  }
0x152b   : > { %4520 = vmatprep.subr.bf16.mxu1 %v6357_v54  ;;  %4561 = vmatprep.subr.bf16.mxu0 %v6360_v55  ;;  %v6414_v54 = vld [vmem:[%s8441_s20 + $0x184] ss:$8 sps:$4 sm:$0xff]   ;;  %v6409_v55 = vld [vmem:[%s8441_s20 + $0x80] ss:$8 sps:$4 sm:$0xff]  }
0x152e   : > { %4521 = vmatpush1.bf16.msra.mxu1 %v6355_v56  ;;  %4562 = vmatpush1.bf16.msra.mxu0 %v6358_v58  ;;  %v6412_v56 = vld [vmem:[%s8441_s20 + $0x180] ss:$8 sps:$4 sm:$0xff]   ;;  %v6417_v58 = vld [vmem:[%s8441_s20 + $0x94] ss:$8 sps:$4 sm:$0xff]  }
0x152f   : > { %4976 = vmatprep.subr.bf16.mxu1 %v6363_v60  ;;  %5017 = vmatprep.subr.bf16.mxu0 %v6366_v61  ;;  %v6420_v60 = vld [vmem:[%s8441_s20 + $0x194] ss:$8 sps:$4 sm:$0xff]   ;;  %v6415_v61 = vld [vmem:[%s8441_s20 + $0x90] ss:$8 sps:$4 sm:$0xff]  }
0x15b4   : > { %v4041_v33 = vpop.xlane.xlu0 %4040 }
0x15b5   : > { %v4042_v62 = vmul.f32 0.003921569, %v4041_v33  ;;  %v6418_v33 = vld [vmem:[%s8441_s20 + $0x190] ss:$8 sps:$4 sm:$0xff]  }
0x15b7   : > { %6493 = vrsqrt.f32 %v4042_v62  ;;  %vm4046_vm7 = vcmp.eq.f32.partialorder %v4042_v62, inf  ;;  %v4049_v1 = vand.u32 2147483648, %v4042_v62  ;;  %vm4048_vm8 = vcmp.eq.f32.partialorder %v4042_v62, 0.0 }
0x15c1   : > { %v6494_v63 = vpop.eup %6493 }
0x15c2   : > { %v4045_v0 = vmul.f32 %v6494_v63, %v4042_v62  ;;  %v6426_v63 = vld [vmem:[%s8441_s20 + $0x1a4] ss:$8 sps:$4 sm:$0xff]  }
0x15c4   : > { %v4047_v2 = vsel %vm4046_vm7, %v4042_v62, %v4045_v0  ;;  %v6423_v62 = vld [vmem:[%s8441_s20 + $0xa4] ss:$8 sps:$4 sm:$0xff]   ;;  %v6421_v0 = vld [vmem:[%s8441_s20 + $0xa0] ss:$8 sps:$4 sm:$0xff]  }
0x15c5   : > { %v4050_v51 = vsel %vm4048_vm8, %v4049_v1, %v4047_v2  ;;  %v6424_v1 = vld [vmem:[%s8441_s20 + $0x1a0] ss:$8 sps:$4 sm:$0xff]   ;;  %v6429_v2 = vld [vmem:[%s8441_s20 + $0xb4] ss:$8 sps:$4 sm:$0xff]  }
0x15c6   : > { %v4051_v53 = vadd.f32 1e-06, %v4050_v51  ;;  %v6432_v51 = vld [vmem:[%s8441_s20 + $0x1b4] ss:$8 sps:$4 sm:$0xff]  }
0x15c8   : > { %6495 = vrcp.f32 %v4051_v53  ;;  %v6427_v53 = vld [vmem:[%s8441_s20 + $0xb0] ss:$8 sps:$4 sm:$0xff]  }
0x15d2   : > { %v6496_v11 = vpop.eup %6495 }
0x15d3   : > { %v4054_v13 = vmul.f32 %v6496_v11, %v7998_v19  ;;  %v4053_v17 = vmul.f32 %v6496_v11, %v7996_v18  ;;  %v6361_v19 = vld [vmem:[%s8441_s20] ss:$8 sps:$4 sm:$0xff]  }
0x15d4   : > { %v6364_v18 = vld [vmem:[%s8441_s20 + $0x100] ss:$8 sps:$4 sm:$0xff]  }
0x15d5   : > { %v4067_v23 = vmul.f32 %v4063_v59, %v4054_v13  ;;  %v4066_v14 = vmul.f32 %v4059_v5, %v4053_v17  ;;  %v6438_v5 = vld [vmem:[%s8441_s20 + $0x1c4] ss:$8 sps:$4 sm:$0xff]   ;;  %v6433_v59 = vld [vmem:[%s8441_s20 + $0xc0] ss:$8 sps:$4 sm:$0xff]   ;;  %v6441_v13 = vld [vmem:[%s8441_s20 + $0xd4] ss:$8 sps:$4 sm:$0xff]  }
0x15d6   : > { %v6436_v11 = vld [vmem:[%s8441_s20 + $0x1c0] ss:$8 sps:$4 sm:$0xff]   ;;  %v6442_v17 = vld [vmem:[%s8441_s20 + $0x1d0] ss:$8 sps:$4 sm:$0xff]  }
0x15d7   : > { %v8130_v24 = vadd.f32 %v4077_v16, %v4067_v23  ;;  %v8132_v25 = vadd.f32 %v4073_v15, %v4066_v14  ;;  %v6444_v15 = vld [vmem:[%s8441_s20 + $0x1d4] ss:$8 sps:$4 sm:$0xff]   ;;  %v6439_v16 = vld [vmem:[%s8441_s20 + $0xd0] ss:$8 sps:$4 sm:$0xff]   ;;  %v6447_v23 = vld [vmem:[%s8441_s20 + $0xe4] ss:$8 sps:$4 sm:$0xff]  }
0x15d8   : > { %v6450_v14 = vld [vmem:[%s8441_s20 + $0x1e4] ss:$8 sps:$4 sm:$0xff]  }
0x15d9   : > { %v4083_v6 = vpack.c.bf16 %v8130_v24, %v8130_v24  ;;  %v4082_v57 = vpack.c.bf16 %v8132_v25, %v8132_v25 }
0x15db   : > { %4522 = vmatprep.mubr.bf16.mxu1 %v4083_v6  ;;  %4563 = vmatprep.mubr.bf16.mxu0 %v4083_v6  ;;  %v6445_v6 = vld [vmem:[%s8441_s20 + $0xe0] ss:$8 sps:$4 sm:$0xff]  }
0x15dc   : > { %4523 = vmatmul.mubr.bf16.vlgmr.msra.gmra.mrb[68].mxu1 %v4082_v57  ;;  %4564 = vmatmul.mubr.bf16.vlgmr.msra.gmra.mrb[52].mxu0 %v4082_v57  ;;  %v6448_v57 = vld [vmem:[%s8441_s20 + $0x1e0] ss:$8 sps:$4 sm:$0xff]  }
0x15dd   : > { %4977 = vmatpush1.bf16.msra.mxu1 %v6361_v19  ;;  %5018 = vmatpush1.bf16.msra.mxu0 %v6364_v18  ;;  %v6453_v19 = vld [vmem:[%s8441_s20 + $0xf4] ss:$8 sps:$4 sm:$0xff]  }
0x15de   : > { %4978 = vmatprep.subr.bf16.mxu1 %v6369_v26  ;;  %5019 = vmatprep.subr.bf16.mxu0 %v6372_v27  ;;  %v6456_v18 = vld [vmem:[%s8441_s20 + $0x1f4] ss:$8 sps:$4 sm:$0xff]   ;;  %v6451_v26 = vld [vmem:[%s8441_s20 + $0xf0] ss:$8 sps:$4 sm:$0xff]  }
0x15df   : > { %v6454_v27 = vld [vmem:[%s8441_s20 + $0x1f0] ss:$8 sps:$4 sm:$0xff]  }
0x15e1   : > { %4979 = vmatpush1.bf16.msra.mxu1 %v6367_v28  ;;  %5020 = vmatpush1.bf16.msra.mxu0 %v6370_v29  ;;  %v4148_v28 = vld [vmem:[%s8440_s19] sm:$0xf] }
0x15e2   : > { %4980 = vmatprep.subr.bf16.mxu1 %v6375_v8  ;;  %5021 = vmatprep.subr.bf16.mxu0 %v6378_v12  ;;  %v4153_v29 = vrot.slane %v4148_v28, %v7049_v9  ;;  %v4161_v8 = vrot.slane %v4148_v28, %v7041_v7  ;;  %v4157_v12 = vrot.slane %v4148_v28, %v7260_v21 }
0x15e5   : > { %4981 = vmatpush1.bf16.msra.mxu1 %v6373_v30  ;;  %5022 = vmatpush1.bf16.msra.mxu0 %v6376_v22  ;;  %v4165_v30 = vrot.slane %v4148_v28, %v7241_v10 }
0x15e6   : > { %4982 = vmatprep.subr.bf16.mxu1 %v6381_v20  ;;  %5023 = vmatprep.subr.bf16.mxu0 %v6384_v31 }
0x15e9   : > { %4983 = vmatpush1.bf16.msra.mxu1 %v6379_v35  ;;  %5024 = vmatpush1.bf16.msra.mxu0 %v6382_v36 }
0x15ea   : > { %4984 = vmatprep.subr.bf16.mxu1 %v6387_v37  ;;  %5025 = vmatprep.subr.bf16.mxu0 %v6390_v38 }
0x15ed   : > { %4985 = vmatpush1.bf16.msra.mxu1 %v6385_v39  ;;  %5026 = vmatpush1.bf16.msra.mxu0 %v6388_v42 }
0x15ee   : > { %4986 = vmatprep.subr.bf16.mxu1 %v6393_v43  ;;  %5027 = vmatprep.subr.bf16.mxu0 %v6396_v44 }
0x15f1   : > { %4987 = vmatpush1.bf16.msra.mxu1 %v6391_v32  ;;  %5028 = vmatpush1.bf16.msra.mxu0 %v6394_v41 }
0x15f2   : > { %4988 = vmatprep.subr.bf16.mxu1 %v6399_v40  ;;  %5029 = vmatprep.subr.bf16.mxu0 %v6402_v34 }
0x15f5   : > { %4989 = vmatpush1.bf16.msra.mxu1 %v6397_v48  ;;  %5030 = vmatpush1.bf16.msra.mxu0 %v6400_v4 }
0x15f6   : > { %4990 = vmatprep.subr.bf16.mxu1 %v6405_v49  ;;  %5031 = vmatprep.subr.bf16.mxu0 %v6408_v46  ;;  %v4644_v46 = vld [vmem:[%s8442_s21] sm:$0x3] }
0x15f9   : > { %4991 = vmatpush1.bf16.msra.mxu1 %v6403_v45  ;;  %5032 = vmatpush1.bf16.msra.mxu0 %v6406_v50  ;;  %v4649_v45 = vrot.slane %v4644_v46, %v7049_v9  ;;  %v4653_v50 = vrot.slane %v4644_v46, %v7260_v21 }
0x15fa   : > { %4992 = vmatprep.subr.bf16.mxu1 %v6411_v52  ;;  %5033 = vmatprep.subr.bf16.mxu0 %v6414_v54 }
0x15fd   : > { %4993 = vmatpush1.bf16.msra.mxu1 %v6409_v55  ;;  %5034 = vmatpush1.bf16.msra.mxu0 %v6412_v56 }
0x15fe   : > { %4994 = vmatprep.subr.bf16.mxu1 %v6417_v58  ;;  %5035 = vmatprep.subr.bf16.mxu0 %v6420_v60 }
0x1601   : > { %4995 = vmatpush1.bf16.msra.mxu1 %v6415_v61  ;;  %5036 = vmatpush1.bf16.msra.mxu0 %v6418_v33 }
0x1602   : > { %4996 = vmatprep.subr.bf16.mxu1 %v6423_v62  ;;  %5037 = vmatprep.subr.bf16.mxu0 %v6426_v63 }
0x1605   : > { %4997 = vmatpush1.bf16.msra.mxu1 %v6421_v0  ;;  %5038 = vmatpush1.bf16.msra.mxu0 %v6424_v1 }
0x1606   : > { %4998 = vmatprep.subr.bf16.mxu1 %v6429_v2  ;;  %5039 = vmatprep.subr.bf16.mxu0 %v6432_v51 }
0x1609   : > { %4999 = vmatpush1.bf16.msra.mxu1 %v6427_v53  ;;  %5040 = vmatpush1.bf16.msra.mxu0 %v6430_v3 }
0x160a   : > { %5000 = vmatprep.subr.bf16.mxu1 %v6435_v47  ;;  %5041 = vmatprep.subr.bf16.mxu0 %v6438_v5 }
0x160d   : > { %5001 = vmatpush1.bf16.msra.mxu1 %v6433_v59  ;;  %5042 = vmatpush1.bf16.msra.mxu0 %v6436_v11 }
0x160e   : > { %5002 = vmatprep.subr.bf16.mxu1 %v6441_v13  ;;  %5043 = vmatprep.subr.bf16.mxu0 %v6444_v15 }
0x1611   : > { %5003 = vmatpush1.bf16.msra.mxu1 %v6439_v16  ;;  %5044 = vmatpush1.bf16.msra.mxu0 %v6442_v17 }
0x1612   : > { %5004 = vmatprep.subr.bf16.mxu1 %v6447_v23  ;;  %5045 = vmatprep.subr.bf16.mxu0 %v6450_v14 }
0x1615   : > { %5005 = vmatpush1.bf16.msra.mxu1 %v6445_v6  ;;  %5046 = vmatpush1.bf16.msra.mxu0 %v6448_v57 }
0x1616   : > { %5006 = vmatprep.subr.bf16.mxu1 %v6453_v19  ;;  %5047 = vmatprep.subr.bf16.mxu0 %v6456_v18 }
0x1619   : > { %5007 = vmatpush1.bf16.msra.mxu1 %v6451_v26  ;;  %5048 = vmatpush1.bf16.msra.mxu0 %v6454_v27 }
0x16af   : > { %v4524_v22 = vpop.f32.mrb[68].mxu1  ;;  %v4565_v20 = vpop.f32.mrb[52].mxu0 }
0x16b0   : > { %v4525_v31 = vadd.f32 %v4524_v22, %v4153_v29  ;;  %v4566_v35 = vadd.f32 %v4565_v20, %v4161_v8  ;;  %v4526_v36 = vpop.f32.mrb[69].mxu1  ;;  %v4567_v37 = vpop.f32.mrb[53].mxu0 }
0x16b1   : > { %v4527_v38 = vadd.f32 %v4526_v36, %v4157_v12  ;;  %v4568_v39 = vadd.f32 %v4567_v37, %v4165_v30  ;;  %v4528_v42 = vpop.f32.mrb[70].mxu1  ;;  %v4569_v43 = vpop.f32.mrb[54].mxu0 }
0x16b2   : > { %v4572_v44 = vmax.f32 %v4525_v31, 0.0  ;;  %v4574_v32 = vmax.f32 %v4566_v35, 0.0  ;;  %v4529_v41 = vpop.f32.mrb[71].mxu1  ;;  %v4570_v40 = vpop.f32.mrb[55].mxu0 }
0x16b3   : > { %v4573_v34 = vmax.f32 %v4527_v38, 0.0  ;;  %v4575_v7 = vmax.f32 %v4568_v39, 0.0 }
0x16b4   : > { %v4576_v49 = vpack.c.bf16 %v4572_v44, %v4572_v44  ;;  %v4578_v10 = vpack.c.bf16 %v4574_v32, %v4574_v32 }
0x16b5   : > { %v4577_v48 = vpack.c.bf16 %v4573_v34, %v4573_v34  ;;  %v4579_v4 = vpack.c.bf16 %v4575_v7, %v4575_v7 }
0x16b7   : > { %5008 = vmatprep.mubr.bf16.mxu1 %v4577_v48  ;;  %5049 = vmatprep.mubr.bf16.mxu0 %v4579_v4 }
0x16b8   : > { %5009 = vmatmul.mubr.bf16.vlgmr.msra.gmra.mrb[72].mxu1 %v4576_v49  ;;  %5050 = vmatmul.mubr.bf16.vlgmr.msra.gmra.mrb[56].mxu0 %v4578_v10 }
0x178b   : > { %v5010_v52 = vpop.f32.mrb[72].mxu1  ;;  %v5051_v54 = vpop.f32.mrb[56].mxu0 }
0x178c   : > { %v5011_v55 = vadd.f32 %v5010_v52, %v4649_v45  ;;  %v5012_v56 = vpop.f32.mrb[73].mxu1  ;;  %v5053_v58 = vpop.f32.mrb[57].mxu0 }
0x178d   : > { %v5013_v60 = vadd.f32 %v5012_v56, %v4653_v50  ;;  %v5014_v61 = vpop.f32.mrb[74].mxu1  ;;  %v5055_v33 = vpop.f32.mrb[58].mxu0 }
0x178e   : > { %v5052_v62 = vadd.f32 %v5051_v54, %v5011_v55  ;;  %v5015_v63 = vpop.f32.mrb[75].mxu1  ;;  %v5056_v0 = vpop.f32.mrb[59].mxu0 }
0x178f   : > { %v5054_v1 = vadd.f32 %v5053_v58, %v5013_v60 }
0x1790   : > { %v5058_v2 = vadd.f32 %v5052_v62, %v8132_v25 }
0x1791   : > { %v5059_v51 = vadd.f32 %v5054_v1, %v8130_v24 }
0x1793   : > { %v5060_v53 = vadd.f32 %v5059_v51, %v5058_v2 }
0x1795   : > { %5061 = vadd.xlane.f32.xlu1 %v5060_v53 }
0x1822   : > { %v5062_v3 = vpop.xlane.xlu1 %5061 }
0x1823   : > { %v5063_v47 = vmul.f32 0.00390625, %v5062_v3 }
0x1825   : > { %v5064_v5 = vsub.f32 %v5058_v2, %v5063_v47  ;;  %v5065_v59 = vsub.f32 %v5059_v51, %v5063_v47 }
0x1827   : > { %v5066_v11 = vmul.f32 %v5064_v5, %v5064_v5  ;;  %v5067_v13 = vmul.f32 %v5065_v59, %v5065_v59 }
0x1829   : > { %v5068_v15 = vadd.f32 %v5067_v13, %v5066_v11 }
0x182b   : > { %5069 = vadd.xlane.f32.xlu1 %v5068_v15 }
0x182c   : > { %6531 = shalt.err (!%p6528_p2)
}
0x182d   : > { %s6532_s1 = scalar_lea.hbm %s8343_s9, 128  ;;  %s6536_s23 = scalar_lea.hbm %s8446_s25, 256 }
0x182e   : > { %p6533_p3 = scmp.ne.s32.totalorder %s8343_s9, %s6532_s1  ;;  %p6537_p8 = scmp.lt.u32.totalorder %s8343_s9, %s8446_s25 }
0x182f   : > { %p6538_p9 = scmp.lt.u32.totalorder %s6536_s23, %s6532_s1  ;;  %p6540_p11 = scmp.lt.u32.totalorder %s6532_s1, %s8343_s9 }
0x1830   : > { %p6534_p4 = pnand %p6533_p3, %p6796_p5 }
0x1831   : > { %p6539_p10 = por %p6538_p9, %p6537_p8 }
0x1832   : > { %p6535_p7 = pneg %p6534_p4 }
0x1833   : > { %p6541_p12 = por %p6540_p11, %p6539_p10 }
0x1835   : > { %p6542_p13 = pnand %p6541_p12, %p6535_p7 }
0x1837   : > { %6545 = shalt.err (!%p6542_p13)
}
0x1838   : > { %5827 = dma.vmem_to_hbm [thread:$0]  (%p6796_p5), %s5147_s29, 128, %s8343_s9, %s5119_s0   ;;  %v5072_v19 = vld [vmem:[%s8443_s22] sm:$0x3] }
0x1839   : > { %s5267_s7 = sshll.u32 %s7814_s2, 4  ;;  %s8497_s9 = sld [smem:[#allocation29_spill]]  ;;  %v5088_v26 = vrot.slane %v5072_v19, %v7049_v9  ;;  %v5092_v27 = vrot.slane %v5072_v19, %v7260_v21 }
0x183a   : > { %s5693_s0 = sshll.u32 %s6779_s15, 8  ;;  %s791_s26 = scalar_lea.vmem [#allocation6], %s5267_s7 }
0x183b   : > { %s5133_s1 = sshll.u32 %s791_s26, 4  ;;  %s8498_s23 = sld [smem:[#allocation30_spill]]  ;;  %s8380_s1 = int_to_ptr.vmem [resolvable:$true] %s5133_s1 }
0x183c   : > { %s5114_s4 = scalar_lea.sflag [#allocation4], %s7814_s2  ;;  %s6546_s15 = scalar_lea.vmem %s8380_s1, 256 }
0x183d   : > { %p6547_p0 = scmp.ne.s32.totalorder %s8380_s1, %s6546_s15  ;;  %s6624_s7 = smov [#allocation6]  }
0x183e   : > { %s6550_s14 = sshll.u32 %s6624_s7, 4  ;;  %s6551_s14 = int_to_ptr.vmem [resolvable:$false] %s6550_s14 }
0x183f   : > { %v5097_v18 = vld [vmem:[%s8497_s9] sm:$0x3]  ;;  %p6548_p1 = pnand %p6547_p0, %p6796_p5  ;;  %s6552_s8 = scalar_lea.vmem %s6551_s14, 512 }
0x1840   : > { %v5102_v12 = vrot.slane %v5097_v18, %v7049_v9  ;;  %v5106_v30 = vrot.slane %v5097_v18, %v7260_v21  ;;  %p6553_p3 = scmp.lt.s32.totalorder %s8380_s1, %s6551_s14  ;;  %p6554_p4 = scmp.lt.s32.totalorder %s6552_s8, %s6546_s15 }
0x1841   : > { %s8378_s24 = scalar_lea.hbm %s8498_s23, %s5693_s0  ;;  %p6549_p2 = pneg %p6548_p1 }
0x1842   : > { %p6555_p7 = por %p6554_p4, %p6553_p3 }
0x1844   : > { %p6556_p8 = pnand %p6555_p7, %p6549_p2 }
0x18b8   : > { %v5070_v24 = vpop.xlane.xlu1 %5069 }
0x18b9   : > { %v5071_v25 = vmul.f32 0.003921569, %v5070_v24 }
0x18bb   : > { %6497 = vrsqrt.f32 %v5071_v25  ;;  %vm5075_vm9 = vcmp.eq.f32.partialorder %v5071_v25, inf  ;;  %v5078_v23 = vand.u32 2147483648, %v5071_v25  ;;  %vm5077_vm10 = vcmp.eq.f32.partialorder %v5071_v25, 0.0 }
0x18c5   : > { %v6498_v16 = vpop.eup %6497 }
0x18c6   : > { %v5074_v17 = vmul.f32 %v6498_v16, %v5071_v25 }
0x18c8   : > { %v5076_v14 = vsel %vm5075_vm9, %v5071_v25, %v5074_v17 }
0x18c9   : > { %v5079_v6 = vsel %vm5077_vm10, %v5078_v23, %v5076_v14 }
0x18ca   : > { %v5080_v57 = vadd.f32 1e-06, %v5079_v6 }
0x18cc   : > { %6499 = vrcp.f32 %v5080_v57 }
0x18d6   : > { %v6500_v28 = vpop.eup %6499 }
0x18d7   : > { %v5082_v29 = vmul.f32 %v6500_v28, %v5064_v5  ;;  %v5083_v8 = vmul.f32 %v6500_v28, %v5065_v59 }
0x18d9   : > { %v5095_v22 = vmul.f32 %v5088_v26, %v5082_v29  ;;  %v5096_v20 = vmul.f32 %v5092_v27, %v5083_v8 }
0x18db   : > { %v5109_v31 = vadd.f32 %v5102_v12, %v5095_v22  ;;  %v5110_v35 = vadd.f32 %v5106_v30, %v5096_v20 }
0x18dd   : > { %5111 = vst [vmem:[%s791_s26] sm:$0xff] %v5109_v31  ;;  %5112 = vst [vmem:[%s791_s26 + $0x8] sm:$0xff] %v5110_v35 }
0x18de   : > { %6559 = shalt.err (!%p6556_p8)
}
0x18df   : > { %s6560_s2 = scalar_lea.hbm %s8378_s24, 256  ;;  %s6564_s9 = scalar_lea.hbm %s8498_s23, 512 }
0x18e0   : > { %p6561_p9 = scmp.ne.s32.totalorder %s8378_s24, %s6560_s2  ;;  %p6565_p12 = scmp.lt.u32.totalorder %s8378_s24, %s8498_s23 }
0x18e1   : > { %p6566_p13 = scmp.lt.u32.totalorder %s6564_s9, %s6560_s2  ;;  %p6568_p1 = scmp.lt.u32.totalorder %s6560_s2, %s8378_s24 }
0x18e2   : > { %p6562_p10 = pnand %p6561_p9, %p6796_p5 }
0x18e3   : > { %p6567_p0 = por %p6566_p13, %p6565_p12 }
0x18e4   : > { %p6563_p11 = pneg %p6562_p10 }
0x18e5   : > { %p6569_p2 = por %p6568_p1, %p6567_p0 }
0x18e7   : > { %p6570_p3 = pnand %p6569_p2, %p6563_p11 }
0x18e9   : > { %6573 = shalt.err (!%p6570_p3)
}
0x18ea   : > { %5826 = dma.vmem_to_hbm [thread:$0]  (%p6796_p5), %s8380_s1, 256, %s8378_s24, %s5114_s4  }
0x18eb PF: > { %s8499_s27 = sld [smem:[#allocation14_spill]]  ;;  %s8500_s3 = sld [smem:[#allocation12_spill]] }
0x18f1   : > { %p5843_p4 = scmp.ge.s32.totalorder %s8499_s27, 2  ;;  %s5158_s7 = sand.u32 1, %s8500_s3  }
0x18f2   : > { %s5159_s14 = scalar_lea.sflag [#allocation4], %s5158_s7 }
0x18f3   : > { %p5835_p7 = pnand %p5843_p4, %p6800_p6 }
0x18f5   : > { %6595 = dma.done.wait (!%p5835_p7), %s5159_s14, 256  }
0x18f6   : > { %6597 = vsyncadd (!%p5835_p7), %s5159_s14, 4294967040  ;;  %s5168_s8 = scalar_lea.sflag [#allocation8], %s5158_s7 }
0x18f7   : > { %6599 = dma.done.wait (!%p5835_p7), %s5168_s8, 128  }
0x18f8   : > { %6601 = vsyncadd (!%p5835_p7), %s5168_s8, 4294967168  ;;  %s8502_s3 = sld [smem:[#allocation15_spill]]  ;;  %s8503_s28 = sld [smem:[#allocation13_spill]] }
0x18f9   : > { %s8504_s7 = sld [smem:[#allocation16_spill]]  ;;  %s8505_s6 = smov %s6608_s30 }
0x18fe   : > { %p41_p5 = scmp.ge.s32.totalorder %s8502_s3, 4   ;;  %s8506_s30 = smov %s8503_s28 }
0x1900   :  { %43 = sbr.rel (!%p41_p5) target bundleno = 21 (0x15), region = 176 }
0x1907   :  { %5173 = vsyncpa [#allocation4], 1 }
0x1908   :  { %5175 = vsyncpa [#allocation4 + $0x1], 1 }
0x1909   :  { %5176 = vsyncpa [#allocation8], 1 }
0x190a   :  { %5178 = vsyncpa [#allocation8 + $0x1], 1 }
0x190b   :  { %5179 = vsyncpa [#allocation5], 1 }
0x190c   :  { %5181 = vsyncpa [#allocation5 + $0x1], 1 }

</bundles_post_ra>
